<compile_context>
chip_gen: v7x
topology: tpu7x:2x2x1
jax: 0.10.0
libtpu: 0.0.40
codegen_flags: <defaults>
</compile_context>

<pallas_src>
import functools

import jax
import jax.numpy as jnp
from jax.experimental import pallas as pl
from jax.experimental.pallas import tpu as pltpu


# ----------------------------------------------------------------------------
# helpers
# ----------------------------------------------------------------------------
def _round_up(x, m):
    return ((x + m - 1) // m) * m


def _pad_rows(m):
    """Batch padding: >=16 rows (sublane-dense bf16 LHS), 256-aligned when big."""
    return _round_up(m, 256) if m >= 256 else _round_up(m, 16)


def _row_tile(m_padded):
    return 256 if m_padded >= 256 else m_padded


# ----------------------------------------------------------------------------
# Fused vision kernel:
#   vis  = cast_bf16(x_f32) @ W_feat + b_feat          (f32 accumulate)
#   cls  = cast_bf16(vis) @ W_cls  + b_cls             -> (tm, 128) f32
#   proj = cast_bf16(vis) @ W_proj + b_proj            -> (tm, 512) f32
# All weights resident in VMEM (block index constant across the 1-D M grid).
# ----------------------------------------------------------------------------
def _fused_vision_kernel(x_ref, fw_ref, fb_ref, cw_ref, cb_ref, pw_ref, pb_ref,
                         cls_ref, proj_ref):
    x = x_ref[...].astype(jnp.bfloat16)
    vis = jnp.dot(x, fw_ref[...], preferred_element_type=jnp.float32) + fb_ref[...]
    vis_b = vis.astype(jnp.bfloat16)
    cls_ref[...] = (
        jnp.dot(vis_b, cw_ref[...], preferred_element_type=jnp.float32) + cb_ref[...]
    )
    proj_ref[...] = (
        jnp.dot(vis_b, pw_ref[...], preferred_element_type=jnp.float32) + pb_ref[...]
    )


def fused_vision_forward(img_flat, feat_w, feat_b, cls_w, cls_b, proj_w, proj_b):
    M, K = img_flat.shape
    _, F = feat_w.shape        # 1024
    _, NC = cls_w.shape        # num_classes padded to 128
    _, NP = proj_w.shape       # 512
    assert NC % 128 == 0 and NP % 128 == 0 and F % 128 == 0

    tm = _row_tile(M)
    grid = (M // tm,)

    cost = pl.CostEstimate(
        flops=2 * M * F * K + 2 * M * NC * F + 2 * M * NP * F,
        transcendentals=0,
        bytes_accessed=(
            img_flat.size * img_flat.dtype.itemsize
            + (feat_w.size + cls_w.size + proj_w.size) * 2
            + (feat_b.size + cls_b.size + proj_b.size) * 4
            + M * (NC + NP) * 4
        ),
    )

    return pl.pallas_call(
        _fused_vision_kernel,
        out_shape=(
            jax.ShapeDtypeStruct((M, NC), jnp.float32),
            jax.ShapeDtypeStruct((M, NP), jnp.float32),
        ),
        grid_spec=pltpu.PrefetchScalarGridSpec(
            num_scalar_prefetch=0,
            grid=grid,
            in_specs=[
                pl.BlockSpec((tm, K), lambda i: (i, 0)),   # x rows
                pl.BlockSpec((K, F), lambda i: (0, 0)),    # feat weight (resident)
                pl.BlockSpec((1, F), lambda i: (0, 0)),    # feat bias
                pl.BlockSpec((F, NC), lambda i: (0, 0)),   # cls weight (resident)
                pl.BlockSpec((1, NC), lambda i: (0, 0)),   # cls bias
                pl.BlockSpec((F, NP), lambda i: (0, 0)),   # proj weight (resident)
                pl.BlockSpec((1, NP), lambda i: (0, 0)),   # proj bias
            ],
            out_specs=(
                pl.BlockSpec((tm, NC), lambda i: (i, 0)),
                pl.BlockSpec((tm, NP), lambda i: (i, 0)),
            ),
        ),
        compiler_params=pltpu.CompilerParams(
            dimension_semantics=("parallel",),
        ),
        cost_estimate=cost,
    )(img_flat, feat_w, feat_b, cls_w, cls_b, proj_w, proj_b)


# ----------------------------------------------------------------------------
# Text kernel: mean-pool over sequence (f32) + linear to 512, fused.
#   texts: (M, S, E) f32     w: (E, 512) bf16     b: (1, 512) f32
# ----------------------------------------------------------------------------
def _text_kernel(t_ref, w_ref, b_ref, o_ref):
    t = t_ref[...]                                      # (tm, S, E) f32
    inv_s = 1.0 / t_ref.shape[1]
    pooled = (jnp.sum(t, axis=1) * inv_s).astype(jnp.bfloat16)   # (tm, E)
    o_ref[...] = (
        jnp.dot(pooled, w_ref[...], preferred_element_type=jnp.float32) + b_ref[...]
    )


def text_forward(texts, text_w, text_b):
    M, S, E = texts.shape
    _, N = text_w.shape
    assert N % 128 == 0

    tm = _row_tile(M)
    grid = (M // tm,)

    cost = pl.CostEstimate(
        flops=2 * M * N * E + M * S * E,
        transcendentals=0,
        bytes_accessed=(
            texts.size * texts.dtype.itemsize
            + text_w.size * 2 + text_b.size * 4 + M * N * 4
        ),
    )

    return pl.pallas_call(
        _text_kernel,
        out_shape=jax.ShapeDtypeStruct((M, N), jnp.float32),
        grid_spec=pltpu.PrefetchScalarGridSpec(
            num_scalar_prefetch=0,
            grid=grid,
            in_specs=[
                pl.BlockSpec((tm, S, E), lambda i: (i, 0, 0)),  # full S/E extents
                pl.BlockSpec((E, N), lambda i: (0, 0)),         # resident weight
                pl.BlockSpec((1, N), lambda i: (0, 0)),          # bias
            ],
            out_specs=pl.BlockSpec((tm, N), lambda i: (i, 0)),
        ),
        compiler_params=pltpu.CompilerParams(
            dimension_semantics=("parallel",),
        ),
        cost_estimate=cost,
    )(texts, text_w, text_b)


# ----------------------------------------------------------------------------
# Deterministic parameter construction (synthetic; no checkpoint load).
# Weights stored pre-transposed (in, out), out dim padded to 128, bf16; bias f32.
# ----------------------------------------------------------------------------
def _make_linear_params(key, in_features, out_features, pad_to=None):
    pad = out_features if pad_to is None else pad_to
    kw, kb = jax.random.split(key)
    w = 0.02 * jax.random.normal(kw, (in_features, out_features), jnp.float32)
    b = 0.01 * jax.random.normal(kb, (out_features,), jnp.float32)
    w = jnp.pad(w, ((0, 0), (0, pad - out_features))).astype(jnp.bfloat16)
    b = jnp.pad(b, (0, pad - out_features)).reshape(1, pad)
    return w, b


def init_params(key, *, img_flat_dim, text_embed_dim, num_classes):
    keys = jax.random.split(key, 4)
    num_classes_pad = _round_up(num_classes, 128)

    # TODO(synk): the real MHSAN backbone (multi-head selection network) is an
    # external module not defined in the spec; stubbed as linear feature
    # extractor (-> 1024) + linear classifier head.
    feat_w, feat_b = _make_linear_params(keys[0], img_flat_dim, 1024)
    cls_w, cls_b = _make_linear_params(keys[1], 1024, num_classes,
                                       pad_to=num_classes_pad)
    # vis_proj: the layer this module actually owns (nn.Linear(1024, 512)).
    proj_w, proj_b = _make_linear_params(keys[2], 1024, 512)
    # TODO(synk): real text_encoder is an external module; stubbed as
    # mean-pool over sequence + linear to 512.
    text_w, text_b = _make_linear_params(keys[3], text_embed_dim, 512)

    params = {
        "mhsan_feat_w": feat_w, "mhsan_feat_b": feat_b,
        "cls_w": cls_w, "cls_b": cls_b,
        "proj_w": proj_w, "proj_b": proj_b,
        "text_w": text_w, "text_b": text_b,
    }
    return params


# ----------------------------------------------------------------------------
# Forward pass mirroring MHSAN_with_Text.forward(images, texts)
# ----------------------------------------------------------------------------
@functools.partial(jax.jit, static_argnames=("num_classes",))
def mhsan_with_text_forward(params, images, texts, *, num_classes):
    B = images.shape[0]
    M = _pad_rows(B)

    img_flat = images.reshape(B, -1)                      # NCHW -> (B, CHW) f32
    if M != B:
        img_flat = jnp.pad(img_flat, ((0, M - B), (0, 0)))
        texts_p = jnp.pad(texts, ((0, M - B), (0, 0), (0, 0)))
    else:
        texts_p = texts

    # --- mhsan_model(images) + vis_proj fused: one pallas_call ---------------
    cls_full, proj_full = fused_vision_forward(
        img_flat,
        params["mhsan_feat_w"], params["mhsan_feat_b"],
        params["cls_w"], params["cls_b"],
        params["proj_w"], params["proj_b"])

    # --- text_encoder(texts) -> text_feature ---------------------------------
    text_full = text_forward(texts_p, params["text_w"], params["text_b"])

    cls_output = cls_full[:B, :num_classes]
    vis_feature_proj = proj_full[:B]
    text_feature = text_full[:B]
    return cls_output, vis_feature_proj, text_feature


if __name__ == "__main__":
    key = jax.random.PRNGKey(0)
    k_img, k_txt, k_par = jax.random.split(key, 3)

    # Small deterministic example inputs.
    B, C, H, W = 2, 3, 16, 16          # images: NCHW
    S, E = 8, 32                       # texts: (batch, seq, embed)
    num_classes = 10
    num_classes_pad = _round_up(num_classes, 128)

    images = jax.random.normal(k_img, (B, C, H, W), jnp.float32)
    texts = jax.random.normal(k_txt, (B, S, E), jnp.float32)

    params = init_params(k_par, img_flat_dim=C * H * W, text_embed_dim=E,
                         num_classes=num_classes)

    cls_output, vis_feature_proj, text_feature = mhsan_with_text_forward(
        params, images, texts, num_classes=num_classes)
    jax.block_until_ready((cls_output, vis_feature_proj, text_feature))

    # shape checks
    assert cls_output.shape == (B, num_classes)
    assert vis_feature_proj.shape == (B, 512)
    assert text_feature.shape == (B, 512)

    # numerical sanity check vs. plain-JAX reference (same bf16 operands).
    img_flat = images.reshape(B, -1).astype(jnp.bfloat16)
    vis_ref = jnp.dot(img_flat, params["mhsan_feat_w"],
                      preferred_element_type=jnp.float32) + params["mhsan_feat_b"]
    vis_ref_b = vis_ref.astype(jnp.bfloat16)
    cls_ref = jnp.dot(vis_ref_b, params["cls_w"],
                      preferred_element_type=jnp.float32) + params["cls_b"]
    proj_ref = jnp.dot(vis_ref_b, params["proj_w"],
                       preferred_element_type=jnp.float32) + params["proj_b"]
    text_ref = jnp.dot(jnp.mean(texts, axis=1).astype(jnp.bfloat16),
                       params["text_w"],
                       preferred_element_type=jnp.float32) + params["text_b"]

    assert jnp.allclose(cls_output, cls_ref[:, :num_classes],
                        atol=1e-2, rtol=1e-2)
    assert jnp.allclose(vis_feature_proj, proj_ref[:, :512],
                        atol=1e-2, rtol=1e-2)
    assert jnp.allclose(text_feature, text_ref, atol=1e-2, rtol=1e-2)

    print("KERNEL_OK")
</pallas_src>

<mosaic_0001>
module attributes {stable_mosaic.version = 11 : i64} {
  func.func @_fused_vision_kernel(%arg0: i32, %arg1: memref<16x768xf32, #tpu.memory_space<vmem>>, %arg2: memref<768x1024xbf16, #tpu.memory_space<vmem>>, %arg3: memref<1x1024xf32, #tpu.memory_space<vmem>>, %arg4: memref<1024x128xbf16, #tpu.memory_space<vmem>>, %arg5: memref<1x128xf32, #tpu.memory_space<vmem>>, %arg6: memref<1024x512xbf16, #tpu.memory_space<vmem>>, %arg7: memref<1x512xf32, #tpu.memory_space<vmem>>, %arg8: memref<16x128xf32, #tpu.memory_space<vmem>>, %arg9: memref<16x512xf32, #tpu.memory_space<vmem>>) attributes {dimension_semantics = [#tpu.dimension_semantics<parallel>], iteration_bounds = array<i64: 1>, scalar_prefetch = 0 : i64, scratch_operands = 0 : i64, tpu.core_type = #tpu.core_type<tc>, window_params = [{transform_indices = @transform_0, window_bounds = array<i64: 16, 768>}, {pipeline_mode = #tpu.pipeline_mode<synchronous>, transform_indices = @transform_1, window_bounds = array<i64: 768, 1024>}, {pipeline_mode = #tpu.pipeline_mode<synchronous>, transform_indices = @transform_2, window_bounds = array<i64: 1, 1024>}, {pipeline_mode = #tpu.pipeline_mode<synchronous>, transform_indices = @transform_3, window_bounds = array<i64: 1024, 128>}, {pipeline_mode = #tpu.pipeline_mode<synchronous>, transform_indices = @transform_4, window_bounds = array<i64: 1, 128>}, {pipeline_mode = #tpu.pipeline_mode<synchronous>, transform_indices = @transform_5, window_bounds = array<i64: 1024, 512>}, {pipeline_mode = #tpu.pipeline_mode<synchronous>, transform_indices = @transform_6, window_bounds = array<i64: 1, 512>}, {transform_indices = @transform_7, window_bounds = array<i64: 16, 128>}, {transform_indices = @transform_8, window_bounds = array<i64: 16, 512>}]} {
    %c0 = arith.constant 0 : index
    %c0_0 = arith.constant 0 : index
    %0 = vector.load %arg1[%c0, %c0_0] : memref<16x768xf32, #tpu.memory_space<vmem>>, vector<16x768xf32>
    %1 = arith.truncf %0 : vector<16x768xf32> to vector<16x768xbf16>
    %c0_1 = arith.constant 0 : index
    %c0_2 = arith.constant 0 : index
    %2 = vector.load %arg2[%c0_1, %c0_2] : memref<768x1024xbf16, #tpu.memory_space<vmem>>, vector<768x1024xbf16>
    %cst = arith.constant dense<0.000000e+00> : vector<16x1024xf32>
    %3 = tpu.matmul %1, %2, %cst {dimension_numbers = #tpu.dot_dimension_numbers<[1], [0], [0], [1], [0, 0, 1, 1], [], []>} : vector<16x768xbf16>, vector<768x1024xbf16>, vector<16x1024xf32> -> vector<16x1024xf32>
    %c0_3 = arith.constant 0 : index
    %c0_4 = arith.constant 0 : index
    %4 = vector.load %arg3[%c0_3, %c0_4] : memref<1x1024xf32, #tpu.memory_space<vmem>>, vector<1x1024xf32>
    %5 = vector.broadcast %4 : vector<1x1024xf32> to vector<16x1024xf32>
    %6 = arith.addf %3, %5 : vector<16x1024xf32>
    %7 = arith.truncf %6 : vector<16x1024xf32> to vector<16x1024xbf16>
    %c0_5 = arith.constant 0 : index
    %c0_6 = arith.constant 0 : index
    %8 = vector.load %arg4[%c0_5, %c0_6] : memref<1024x128xbf16, #tpu.memory_space<vmem>>, vector<1024x128xbf16>
    %cst_7 = arith.constant dense<0.000000e+00> : vector<16x128xf32>
    %9 = tpu.matmul %7, %8, %cst_7 {dimension_numbers = #tpu.dot_dimension_numbers<[1], [0], [0], [1], [0, 0, 1, 1], [], []>} : vector<16x1024xbf16>, vector<1024x128xbf16>, vector<16x128xf32> -> vector<16x128xf32>
    %c0_8 = arith.constant 0 : index
    %c0_9 = arith.constant 0 : index
    %10 = vector.load %arg5[%c0_8, %c0_9] : memref<1x128xf32, #tpu.memory_space<vmem>>, vector<1x128xf32>
    %11 = vector.broadcast %10 : vector<1x128xf32> to vector<16x128xf32>
    %12 = arith.addf %9, %11 : vector<16x128xf32>
    %c0_10 = arith.constant 0 : index
    %c0_11 = arith.constant 0 : index
    %13 = vector.load %arg8[%c0_10, %c0_11] : memref<16x128xf32, #tpu.memory_space<vmem>>, vector<16x128xf32>
    tpu.vector_store %arg8[%c0_10, %c0_11], %12 {strides = array<i32>} : memref<16x128xf32, #tpu.memory_space<vmem>>, vector<16x128xf32>,
    %c0_12 = arith.constant 0 : index
    %c0_13 = arith.constant 0 : index
    %14 = vector.load %arg6[%c0_12, %c0_13] : memref<1024x512xbf16, #tpu.memory_space<vmem>>, vector<1024x512xbf16>
    %cst_14 = arith.constant dense<0.000000e+00> : vector<16x512xf32>
    %15 = tpu.matmul %7, %14, %cst_14 {dimension_numbers = #tpu.dot_dimension_numbers<[1], [0], [0], [1], [0, 0, 1, 1], [], []>} : vector<16x1024xbf16>, vector<1024x512xbf16>, vector<16x512xf32> -> vector<16x512xf32>
    %c0_15 = arith.constant 0 : index
    %c0_16 = arith.constant 0 : index
    %16 = vector.load %arg7[%c0_15, %c0_16] : memref<1x512xf32, #tpu.memory_space<vmem>>, vector<1x512xf32>
    %17 = vector.broadcast %16 : vector<1x512xf32> to vector<16x512xf32>
    %18 = arith.addf %15, %17 : vector<16x512xf32>
    %c0_17 = arith.constant 0 : index
    %c0_18 = arith.constant 0 : index
    %19 = vector.load %arg9[%c0_17, %c0_18] : memref<16x512xf32, #tpu.memory_space<vmem>>, vector<16x512xf32>
    tpu.vector_store %arg9[%c0_17, %c0_18], %18 {strides = array<i32>} : memref<16x512xf32, #tpu.memory_space<vmem>>, vector<16x512xf32>,
    return
  }
  func.func @transform_0(%arg0: i32) -> (i32, i32) {
    %c0_i32 = arith.constant 0 : i32
    %c0_i32_0 = arith.constant 0 : i32
    return %arg0, %c0_i32 : i32, i32
  }
  func.func @transform_1(%arg0: i32) -> (i32, i32) {
    %c0_i32 = arith.constant 0 : i32
    %c0_i32_0 = arith.constant 0 : i32
    %c0_i32_1 = arith.constant 0 : i32
    return %c0_i32, %c0_i32_0 : i32, i32
  }
  func.func @transform_2(%arg0: i32) -> (i32, i32) {
    %c0_i32 = arith.constant 0 : i32
    %c0_i32_0 = arith.constant 0 : i32
    %c0_i32_1 = arith.constant 0 : i32
    return %c0_i32, %c0_i32_0 : i32, i32
  }
  func.func @transform_3(%arg0: i32) -> (i32, i32) {
    %c0_i32 = arith.constant 0 : i32
    %c0_i32_0 = arith.constant 0 : i32
    %c0_i32_1 = arith.constant 0 : i32
    return %c0_i32, %c0_i32_0 : i32, i32
  }
  func.func @transform_4(%arg0: i32) -> (i32, i32) {
    %c0_i32 = arith.constant 0 : i32
    %c0_i32_0 = arith.constant 0 : i32
    %c0_i32_1 = arith.constant 0 : i32
    return %c0_i32, %c0_i32_0 : i32, i32
  }
  func.func @transform_5(%arg0: i32) -> (i32, i32) {
    %c0_i32 = arith.constant 0 : i32
    %c0_i32_0 = arith.constant 0 : i32
    %c0_i32_1 = arith.constant 0 : i32
    return %c0_i32, %c0_i32_0 : i32, i32
  }
  func.func @transform_6(%arg0: i32) -> (i32, i32) {
    %c0_i32 = arith.constant 0 : i32
    %c0_i32_0 = arith.constant 0 : i32
    %c0_i32_1 = arith.constant 0 : i32
    return %c0_i32, %c0_i32_0 : i32, i32
  }
  func.func @transform_7(%arg0: i32) -> (i32, i32) {
    %c0_i32 = arith.constant 0 : i32
    %c0_i32_0 = arith.constant 0 : i32
    return %arg0, %c0_i32 : i32, i32
  }
  func.func @transform_8(%arg0: i32) -> (i32, i32) {
    %c0_i32 = arith.constant 0 : i32
    %c0_i32_0 = arith.constant 0 : i32
    return %arg0, %c0_i32 : i32, i32
  }
}

module attributes {stable_mosaic.version = 11 : i64} {
  func.func @_text_kernel(%arg0: i32, %arg1: memref<16x8x32xf32, #tpu.memory_space<vmem>>, %arg2: memref<32x512xbf16, #tpu.memory_space<vmem>>, %arg3: memref<1x512xf32, #tpu.memory_space<vmem>>, %arg4: memref<16x512xf32, #tpu.memory_space<vmem>>) attributes {dimension_semantics = [#tpu.dimension_semantics<parallel>], iteration_bounds = array<i64: 1>, scalar_prefetch = 0 : i64, scratch_operands = 0 : i64, tpu.core_type = #tpu.core_type<tc>, window_params = [{transform_indices = @transform_0, window_bounds = array<i64: 16, 8, 32>}, {pipeline_mode = #tpu.pipeline_mode<synchronous>, transform_indices = @transform_1, window_bounds = array<i64: 32, 512>}, {pipeline_mode = #tpu.pipeline_mode<synchronous>, transform_indices = @transform_2, window_bounds = array<i64: 1, 512>}, {transform_indices = @transform_3, window_bounds = array<i64: 16, 512>}]} {
    %c0 = arith.constant 0 : index
    %c0_0 = arith.constant 0 : index
    %c0_1 = arith.constant 0 : index
    %0 = vector.load %arg1[%c0, %c0_0, %c0_1] : memref<16x8x32xf32, #tpu.memory_space<vmem>>, vector<16x8x32xf32>
    %cst = arith.constant dense<0.000000e+00> : vector<16x32xf32>
    %1 = vector.multi_reduction <add>, %0, %cst [1] : vector<16x8x32xf32> to vector<16x32xf32>
    %cst_2 = arith.constant 1.250000e-01 : f32
    %2 = vector.broadcast %cst_2 : f32 to vector<16x32xf32>
    %3 = arith.mulf %1, %2 : vector<16x32xf32>
    %4 = arith.truncf %3 : vector<16x32xf32> to vector<16x32xbf16>
    %c0_3 = arith.constant 0 : index
    %c0_4 = arith.constant 0 : index
    %5 = vector.load %arg2[%c0_3, %c0_4] : memref<32x512xbf16, #tpu.memory_space<vmem>>, vector<32x512xbf16>
    %cst_5 = arith.constant dense<0.000000e+00> : vector<16x512xf32>
    %6 = tpu.matmul %4, %5, %cst_5 {dimension_numbers = #tpu.dot_dimension_numbers<[1], [0], [0], [1], [0, 0, 1, 1], [], []>} : vector<16x32xbf16>, vector<32x512xbf16>, vector<16x512xf32> -> vector<16x512xf32>
    %c0_6 = arith.constant 0 : index
    %c0_7 = arith.constant 0 : index
    %7 = vector.load %arg3[%c0_6, %c0_7] : memref<1x512xf32, #tpu.memory_space<vmem>>, vector<1x512xf32>
    %8 = vector.broadcast %7 : vector<1x512xf32> to vector<16x512xf32>
    %9 = arith.addf %6, %8 : vector<16x512xf32>
    %c0_8 = arith.constant 0 : index
    %c0_9 = arith.constant 0 : index
    %10 = vector.load %arg4[%c0_8, %c0_9] : memref<16x512xf32, #tpu.memory_space<vmem>>, vector<16x512xf32>
    tpu.vector_store %arg4[%c0_8, %c0_9], %9 {strides = array<i32>} : memref<16x512xf32, #tpu.memory_space<vmem>>, vector<16x512xf32>,
    return
  }
  func.func @transform_0(%arg0: i32) -> (i32, i32, i32) {
    %c0_i32 = arith.constant 0 : i32
    %c0_i32_0 = arith.constant 0 : i32
    %c0_i32_1 = arith.constant 0 : i32
    return %arg0, %c0_i32, %c0_i32_0 : i32, i32, i32
  }
  func.func @transform_1(%arg0: i32) -> (i32, i32) {
    %c0_i32 = arith.constant 0 : i32
    %c0_i32_0 = arith.constant 0 : i32
    %c0_i32_1 = arith.constant 0 : i32
    return %c0_i32, %c0_i32_0 : i32, i32
  }
  func.func @transform_2(%arg0: i32) -> (i32, i32) {
    %c0_i32 = arith.constant 0 : i32
    %c0_i32_0 = arith.constant 0 : i32
    %c0_i32_1 = arith.constant 0 : i32
    return %c0_i32, %c0_i32_0 : i32, i32
  }
  func.func @transform_3(%arg0: i32) -> (i32, i32) {
    %c0_i32 = arith.constant 0 : i32
    %c0_i32_0 = arith.constant 0 : i32
    return %arg0, %c0_i32 : i32, i32
  }
}

</mosaic_0001>

<bundles_post_ra>
// kernel: mhsan_with_text_forward.3
= control target key start
LH: loop header
LB: loop body
LE: loop exit
PB: predicated region body
PF: predicated region fallthrough
CT: control target
= control target key end

     0   :  { %v424_v1 = vmov 0   ;;  %vm31_vm0 = vcmask 261120   ;;  %vm238_vm1 = vcmask 1041409   ;;  %vm240_vm2 = vcmask 1042434   ;;  %s589_s1 = inlined_call_operand.vmem [shape: bf16[32,512], index: 1, kind: input, shape index: {}]   ;;  %s590_s0 = inlined_call_operand.vmem [shape: f32[16,8,32], index: 0, kind: input, shape index: {}]   ;;  %s591_s2 = inlined_call_operand.vmem [shape: f32[1,512], index: 2, kind: input, shape index: {}]   ;;  %s592_s3 = inlined_call_operand.vmem [shape: f32[16,512], index: 3, kind: output, shape index: {}]  }
   0x1   :  { %v412_v0 = vld [vmem:[%s589_s1 + $0x4] ss:$16 sps:$4 sm:$0xff]   ;;  %335 = vmatprep.mubr.bf16.mxu0 %v424_v1  ;;  %378 = vmatprep.mubr.bf16.mxu1 %v424_v1  ;;  %v414_v2 = vld [vmem:[%s589_s1 + $0xc] ss:$16 sps:$4 sm:$0xff]   ;;  %v416_v3 = vld [vmem:[%s589_s1] ss:$16 sps:$4 sm:$0xff]  }
   0x2   :  { %303 = vmatprep.subr.bf16.mxu0 %v412_v0  ;;  %v417_v4 = vld [vmem:[%s589_s1 + $0x8] ss:$16 sps:$4 sm:$0xff]   ;;  %346 = vmatprep.subr.bf16.mxu1 %v414_v2  ;;  %v418_v5 = vld [vmem:[%s589_s1 + $0x24] ss:$16 sps:$4 sm:$0xff]   ;;  %v420_v6 = vld [vmem:[%s589_s1 + $0x2c] ss:$16 sps:$4 sm:$0xff]  }
   0x3   :  { %304 = vmatpush1.bf16.msra.mxu0 %v416_v3  ;;  %347 = vmatpush1.bf16.msra.mxu1 %v417_v4  ;;  %v422_v7 = vld [vmem:[%s589_s1 + $0x20] ss:$16 sps:$4 sm:$0xff]   ;;  %v423_v8 = vld [vmem:[%s589_s1 + $0x28] ss:$16 sps:$4 sm:$0xff]   ;;  %vm242_vm3 = vcmask 1043459   ;;  %vm244_vm4 = vcmask 1044484  }
   0x4   :  { %305 = vmatprep.subr.bf16.mxu0 %v418_v5  ;;  %v15_v9 = vld [vmem:[%s590_s0] sm:$0xff]  ;;  %v16_v10 = vld [vmem:[%s590_s0 + $0x8] sm:$0xff]  ;;  %348 = vmatprep.subr.bf16.mxu1 %v420_v6  ;;  %v17_v11 = vld [vmem:[%s590_s0 + $0x10] sm:$0xff]  ;;  %vm246_vm5 = vcmask 1045509   ;;  %vm248_vm6 = vcmask 1046534   ;;  %vm250_vm7 = vcmask 1047559  }
   0x5   :  { %v18_v12 = vld [vmem:[%s590_s0 + $0x18] sm:$0xff]  ;;  %v19_v13 = vld [vmem:[%s590_s0 + $0x20] sm:$0xff]  ;;  %v32_v14 = vsel %vm31_vm0, %v15_v9, 0.0  ;;  %v39_v15 = vsel %vm31_vm0, %v16_v10, 0.0  ;;  %v20_v16 = vld [vmem:[%s590_s0 + $0x28] sm:$0xff]  ;;  %v46_v21 = vsel %vm31_vm0, %v17_v11, 0.0 }
   0x6   :  { %v21_v17 = vld [vmem:[%s590_s0 + $0x30] sm:$0xff]  ;;  %v22_v18 = vld [vmem:[%s590_s0 + $0x38] sm:$0xff]  ;;  %v33_v19 = vrot.slane %v32_v14, 4  ;;  %v40_v20 = vrot.slane %v39_v15, 4  ;;  %v47_v22 = vrot.slane %v46_v21, 4  ;;  %v53_v23 = vsel %vm31_vm0, %v18_v12, 0.0 }
   0x7   :  { %306 = vmatpush1.bf16.msra.mxu0 %v422_v7  ;;  %349 = vmatpush1.bf16.msra.mxu1 %v423_v8  ;;  %v60_v24 = vsel %vm31_vm0, %v19_v13, 0.0  ;;  %v54_v27 = vrot.slane %v53_v23, 4  ;;  %v67_v30 = vsel %vm31_vm0, %v20_v16, 0.0  ;;  %v74_v31 = vsel %vm31_vm0, %v21_v17, 0.0  ;;  %v23_v53 = vld [vmem:[%s590_s0 + $0x40] sm:$0xff]  ;;  %v24_v54 = vld [vmem:[%s590_s0 + $0x48] sm:$0xff] }
   0x8   :  { %v34_v25 = vadd.f32 %v33_v19, %v32_v14  ;;  %v41_v26 = vadd.f32 %v40_v20, %v39_v15  ;;  %v61_v28 = vrot.slane %v60_v24, 4  ;;  %v48_v29 = vadd.f32 %v47_v22, %v46_v21  ;;  %v25_v60 = vld [vmem:[%s590_s0 + $0x50] sm:$0xff]  ;;  %v26_v61 = vld [vmem:[%s590_s0 + $0x58] sm:$0xff]  ;;  %v27_v62 = vld [vmem:[%s590_s0 + $0x60] sm:$0xff] }
   0x9   :  { %v81_v32 = vsel %vm31_vm0, %v22_v18, 0.0  ;;  %v55_v35 = vadd.f32 %v54_v27, %v53_v23  ;;  %v68_v38 = vrot.slane %v67_v30, 4  ;;  %v75_v39 = vrot.slane %v74_v31, 4  ;;  %v28_v6 = vld [vmem:[%s590_s0 + $0x68] sm:$0xff]  ;;  %v29_v11 = vld [vmem:[%s590_s0 + $0x70] sm:$0xff]  ;;  %v30_v12 = vld [vmem:[%s590_s0 + $0x78] sm:$0xff] }
   0xa   :  { %v35_v33 = vrot.slane %v34_v25, 2  ;;  %v42_v34 = vrot.slane %v41_v26, 2  ;;  %v62_v36 = vadd.f32 %v61_v28, %v60_v24  ;;  %v49_v37 = vrot.slane %v48_v29, 2 }
   0xb   :  { %v82_v40 = vrot.slane %v81_v32, 4  ;;  %v56_v43 = vrot.slane %v55_v35, 2  ;;  %v69_v46 = vadd.f32 %v68_v38, %v67_v30  ;;  %v76_v47 = vadd.f32 %v75_v39, %v74_v31 }
   0xc   :  { %v36_v41 = vadd.f32 %v35_v33, %v34_v25  ;;  %v43_v42 = vadd.f32 %v42_v34, %v41_v26  ;;  %v63_v44 = vrot.slane %v62_v36, 2  ;;  %v50_v45 = vadd.f32 %v49_v37, %v48_v29 }
   0xd   :  { %v83_v48 = vadd.f32 %v82_v40, %v81_v32  ;;  %v57_v51 = vadd.f32 %v56_v43, %v55_v35  ;;  %v70_v56 = vrot.slane %v69_v46, 2  ;;  %v77_v57 = vrot.slane %v76_v47, 2 }
   0xe   :  { %v37_v49 = vrot.slane %v36_v41, 1  ;;  %v44_v50 = vrot.slane %v43_v42, 1  ;;  %v64_v52 = vadd.f32 %v63_v44, %v62_v36  ;;  %v51_v55 = vrot.slane %v50_v45, 1 }
   0xf   :  { %v84_v58 = vrot.slane %v83_v48, 2  ;;  %v58_v59 = vrot.slane %v57_v51, 1  ;;  %v71_v0 = vadd.f32 %v70_v56, %v69_v46  ;;  %v78_v1 = vadd.f32 %v77_v57, %v76_v47 }
  0x10   :  { %v65_v63 = vrot.slane %v64_v52, 1  ;;  %v516_v2 = vadd.f32 %v37_v49, %v36_v41  ;;  %v518_v3 = vadd.f32 %v44_v50, %v43_v42  ;;  %v88_v4 = vsel %vm31_vm0, %v23_v53, 0.0 }
  0x11   :  { %v95_v5 = vsel %vm31_vm0, %v24_v54, 0.0  ;;  %v525_v7 = vadd.f32 %v51_v55, %v50_v45  ;;  %v527_v8 = vadd.f32 %v58_v59, %v57_v51  ;;  %v85_v9 = vadd.f32 %v84_v58, %v83_v48 }
  0x12   :  { %v89_v10 = vrot.slane %v88_v4, 4  ;;  %v96_v13 = vrot.slane %v95_v5, 4  ;;  %v102_v14 = vsel %vm31_vm0, %v25_v60, 0.0  ;;  %v109_v15 = vsel %vm31_vm0, %v26_v61, 0.0 }
  0x13   :  { %v116_v16 = vsel %vm31_vm0, %v27_v62, 0.0  ;;  %v538_v17 = vadd.f32 %v65_v63, %v64_v52  ;;  %v72_v18 = vrot.slane %v71_v0, 1  ;;  %v79_v19 = vrot.slane %v78_v1, 1 }
  0x14   :  { %v90_v20 = vadd.f32 %v89_v10, %v88_v4  ;;  %v97_v21 = vadd.f32 %v96_v13, %v95_v5  ;;  %v103_v22 = vrot.slane %v102_v14, 4  ;;  %v110_v23 = vrot.slane %v109_v15, 4 }
  0x15   :  { %v117_v24 = vrot.slane %v116_v16, 4  ;;  %v123_v26 = vsel %vm31_vm0, %v28_v6, 0.0  ;;  %v130_v27 = vsel %vm31_vm0, %v29_v11, 0.0  ;;  %v137_v28 = vsel %vm31_vm0, %v30_v12, 0.0 }
  0x16   :  { %v91_v25 = vrot.slane %v90_v20, 2  ;;  %v98_v29 = vrot.slane %v97_v21, 2  ;;  %v104_v30 = vadd.f32 %v103_v22, %v102_v14  ;;  %v111_v31 = vadd.f32 %v110_v23, %v109_v15 }
  0x17   :  { %v118_v32 = vadd.f32 %v117_v24, %v116_v16  ;;  %v124_v34 = vrot.slane %v123_v26, 4  ;;  %v131_v35 = vrot.slane %v130_v27, 4  ;;  %v138_v36 = vrot.slane %v137_v28, 4 }
  0x18   :  { %v92_v33 = vadd.f32 %v91_v25, %v90_v20  ;;  %v99_v37 = vadd.f32 %v98_v29, %v97_v21  ;;  %v105_v38 = vrot.slane %v104_v30, 2  ;;  %v112_v39 = vrot.slane %v111_v31, 2 }
  0x19   :  { %v119_v40 = vrot.slane %v118_v32, 2  ;;  %v125_v42 = vadd.f32 %v124_v34, %v123_v26  ;;  %v132_v43 = vadd.f32 %v131_v35, %v130_v27  ;;  %v139_v44 = vadd.f32 %v138_v36, %v137_v28 }
  0x1a   :  { %v93_v41 = vrot.slane %v92_v33, 1  ;;  %v100_v45 = vrot.slane %v99_v37, 1  ;;  %v106_v46 = vadd.f32 %v105_v38, %v104_v30  ;;  %v113_v47 = vadd.f32 %v112_v39, %v111_v31 }
  0x1b   :  { %v120_v48 = vadd.f32 %v119_v40, %v118_v32  ;;  %v86_v49 = vrot.slane %v85_v9, 1  ;;  %v126_v50 = vrot.slane %v125_v42, 2  ;;  %v133_v51 = vrot.slane %v132_v43, 2 }
  0x1c   :  { %v140_v52 = vrot.slane %v139_v44, 2  ;;  %v73_v53 = vadd.f32 %v72_v18, %v71_v0  ;;  %v107_v54 = vrot.slane %v106_v46, 1  ;;  %v114_v55 = vrot.slane %v113_v47, 1 }
  0x1d   :  { %v121_v56 = vrot.slane %v120_v48, 1  ;;  %v80_v57 = vadd.f32 %v79_v19, %v78_v1  ;;  %v127_v58 = vadd.f32 %v126_v50, %v125_v42  ;;  %v134_v59 = vadd.f32 %v133_v51, %v132_v43 }
  0x1e   :  { %v141_v60 = vadd.f32 %v140_v52, %v139_v44  ;;  %v94_v61 = vadd.f32 %v93_v41, %v92_v33  ;;  %v101_v62 = vadd.f32 %v100_v45, %v99_v37  ;;  %v108_v63 = vadd.f32 %v107_v54, %v106_v46 }
  0x1f   :  { %v115_v4 = vadd.f32 %v114_v55, %v113_v47  ;;  %v122_v5 = vadd.f32 %v121_v56, %v120_v48  ;;  %v128_v6 = vrot.slane %v127_v58, 1  ;;  %v135_v10 = vrot.slane %v134_v59, 1 }
  0x20   :  { %v142_v11 = vrot.slane %v141_v60, 1  ;;  %v87_v12 = vadd.f32 %v86_v49, %v85_v9  ;;  %v144_v13 = vmul.f32 0.125, %v516_v2  ;;  %v145_v0 = vmul.f32 0.125, %v518_v3 }
  0x21   :  { %v146_v14 = vmul.f32 0.125, %v525_v7  ;;  %v129_v15 = vadd.f32 %v128_v6, %v127_v58  ;;  %v136_v1 = vadd.f32 %v135_v10, %v134_v59  ;;  %v147_v18 = vmul.f32 0.125, %v527_v8 }
  0x22   :  { %v143_v16 = vadd.f32 %v142_v11, %v141_v60  ;;  %v152_v19 = vmul.f32 0.125, %v94_v61  ;;  %v153_v20 = vmul.f32 0.125, %v101_v62  ;;  %v154_v21 = vmul.f32 0.125, %v108_v63 }
  0x23   :  { %v155_v22 = vmul.f32 0.125, %v115_v4  ;;  %v148_v23 = vmul.f32 0.125, %v538_v17  ;;  %v149_v9 = vmul.f32 0.125, %v73_v53  ;;  %v150_v24 = vmul.f32 0.125, %v80_v57 }
  0x24   :  { %v156_v2 = vmul.f32 0.125, %v122_v5  ;;  %v151_v3 = vmul.f32 0.125, %v87_v12  ;;  %v157_v25 = vmul.f32 0.125, %v129_v15  ;;  %v160_v7 = vpack.c.bf16 %v144_v13, %v144_v13 }
  0x25   :  { %v161_v26 = vpack.c.bf16 %v145_v0, %v145_v0  ;;  %v158_v27 = vmul.f32 0.125, %v136_v1  ;;  %v159_v28 = vmul.f32 0.125, %v143_v16  ;;  %v162_v8 = vpack.c.bf16 %v146_v14, %v146_v14 }
  0x26   :  { %v163_v29 = vpack.c.bf16 %v147_v18, %v147_v18  ;;  %v168_v30 = vpack.c.bf16 %v152_v19, %v152_v19  ;;  %v169_v31 = vpack.c.bf16 %v153_v20, %v153_v20  ;;  %v170_v32 = vpack.c.bf16 %v154_v21, %v154_v21  ;;  %v184_v18 = vld [vmem:[%s591_s2] sm:$0xf] }
  0x27   :  { %v171_v33 = vpack.c.bf16 %v155_v22, %v155_v22  ;;  %v164_v34 = vpack.c.bf16 %v148_v23, %v148_v23  ;;  %v165_v35 = vpack.c.bf16 %v149_v9, %v149_v9  ;;  %v166_v17 = vpack.c.bf16 %v150_v24, %v150_v24 }
  0x28   :  { %v172_v36 = vpack.c.bf16 %v156_v2, %v156_v2  ;;  %v167_v37 = vpack.c.bf16 %v151_v3, %v151_v3  ;;  %v173_v38 = vpack.c.bf16 %v157_v25, %v157_v25  ;;  %v222_v39 = vunpack.c.l.b16 %v160_v7 }
  0x29   :  { %v223_v40 = vunpack.c.l.b16 %v161_v26  ;;  %v174_v41 = vpack.c.bf16 %v158_v27, %v158_v27  ;;  %v175_v42 = vpack.c.bf16 %v159_v28, %v159_v28  ;;  %v224_v43 = vunpack.c.l.b16 %v162_v8 }
  0x2a   :  { %v225_v44 = vunpack.c.l.b16 %v163_v29  ;;  %v230_v45 = vunpack.c.l.b16 %v168_v30  ;;  %v231_v46 = vunpack.c.l.b16 %v169_v31  ;;  %v232_v47 = vunpack.c.l.b16 %v170_v32 }
  0x2b   :  { %v233_v48 = vunpack.c.l.b16 %v171_v33  ;;  %v226_v49 = vunpack.c.l.b16 %v164_v34  ;;  %v234_v50 = vunpack.c.l.b16 %v172_v36  ;;  %v227_v51 = vunpack.c.l.b16 %v165_v35 }
  0x2c   :  { %v235_v52 = vunpack.c.l.b16 %v173_v38  ;;  %v239_v53 = vsel %vm238_vm1, %v223_v40, %v222_v39  ;;  %v252_v54 = vsel %vm238_vm1, %v231_v46, %v230_v45  ;;  %v228_v55 = vunpack.c.l.b16 %v166_v17 }
  0x2d   :  { %v236_v56 = vunpack.c.l.b16 %v174_v41  ;;  %v241_v57 = vsel %vm240_vm2, %v224_v43, %v239_v53  ;;  %v253_v58 = vsel %vm240_vm2, %v232_v47, %v252_v54  ;;  %v229_v59 = vunpack.c.l.b16 %v167_v37 }
  0x2e   :  { %v237_v60 = vunpack.c.l.b16 %v175_v42  ;;  %v243_v61 = vsel %vm242_vm3, %v225_v44, %v241_v57  ;;  %v254_v62 = vsel %vm242_vm3, %v233_v48, %v253_v58  ;;  %v186_v14 = vlaneseq }
  0x2f   :  { %v245_v63 = vsel %vm244_vm4, %v226_v49, %v243_v61  ;;  %v255_v4 = vsel %vm244_vm4, %v234_v50, %v254_v62 }
  0x30   :  { %v247_v5 = vsel %vm246_vm5, %v227_v51, %v245_v63  ;;  %v256_v6 = vsel %vm246_vm5, %v235_v52, %v255_v4  ;;  %v187_v15 = vshrl.u32 %v186_v14, 7 }
  0x31   :  { %v249_v10 = vsel %vm248_vm6, %v228_v55, %v247_v5  ;;  %v257_v11 = vsel %vm248_vm6, %v236_v56, %v256_v6 }
  0x32   :  { %v251_v12 = vsel %vm250_vm7, %v229_v59, %v249_v10  ;;  %v258_v13 = vsel %vm250_vm7, %v237_v60, %v257_v11  ;;  %v188_v1 = vsub.s32 0, %v187_v15  ;;  %v196_v16 = vsub.s32 2, %v187_v15 }
  0x33   :  { %v259_v0 = vpack.c.b16 %v258_v13, %v251_v12  ;;  %v192_v19 = vsub.s32 1, %v187_v15  ;;  %v200_v20 = vsub.s32 3, %v187_v15 }
  0x34   :  { %v189_v21 = vrot.slane %v184_v18, %v188_v1  ;;  %v197_v22 = vrot.slane %v184_v18, %v196_v16 }
  0x35   :  { %409 = vmatmul.mubr.msk.bf16.vlgmr.msra.gmra.mrb[0].mxu0 %vm31_vm0, %v259_v0  ;;  %410 = vmatmul.mubr.msk.bf16.vlgmr.msra.gmra.mrb[0].mxu1 %vm31_vm0, %v259_v0  ;;  %v193_v23 = vrot.slane %v184_v18, %v192_v19  ;;  %v201_v9 = vrot.slane %v184_v18, %v200_v20 }
 0x108   :  { %v337_v24 = vpop.f32.mrb[0].mxu0  ;;  %v380_v2 = vpop.f32.mrb[0].mxu1 }
 0x109   :  { %v338_v3 = vadd.f32 %v337_v24, %v189_v21  ;;  %v381_v25 = vadd.f32 %v380_v2, %v197_v22  ;;  %v339_v7 = vpop.f32.mrb[1].mxu0  ;;  %v382_v26 = vpop.f32.mrb[1].mxu1 }
 0x10a   :  { %v340_v27 = vadd.f32 %v339_v7, %v193_v23  ;;  %v383_v28 = vadd.f32 %v382_v26, %v201_v9  ;;  %v341_v8 = vpop.f32.mrb[2].mxu0  ;;  %v384_v29 = vpop.f32.mrb[2].mxu1 }
 0x10b   :  { %389 = vst [vmem:[%s592_s3] sm:$0xff] %v338_v3  ;;  %391 = vst [vmem:[%s592_s3 + $0x10] sm:$0xff] %v381_v25  ;;  %v342_v30 = vadd.f32 %v341_v8, %v189_v21  ;;  %v385_v31 = vadd.f32 %v384_v29, %v197_v22  ;;  %v343_v32 = vpop.f32.mrb[3].mxu0  ;;  %v386_v33 = vpop.f32.mrb[3].mxu1 }
 0x10c   :  { %390 = vst [vmem:[%s592_s3 + $0x8] sm:$0xff] %v340_v27  ;;  %392 = vst [vmem:[%s592_s3 + $0x18] sm:$0xff] %v383_v28  ;;  %v344_v34 = vadd.f32 %v343_v32, %v193_v23  ;;  %v387_v35 = vadd.f32 %v386_v33, %v201_v9 }
 0x10d   :  { %393 = vst [vmem:[%s592_s3 + $0x20] sm:$0xff] %v342_v30  ;;  %395 = vst [vmem:[%s592_s3 + $0x30] sm:$0xff] %v385_v31 }
 0x10e   :  { %394 = vst [vmem:[%s592_s3 + $0x28] sm:$0xff] %v344_v34  ;;  %396 = vst [vmem:[%s592_s3 + $0x38] sm:$0xff] %v387_v35 }

// kernel: mhsan_with_text_forward.2
= control target key start
LH: loop header
LB: loop body
LE: loop exit
PB: predicated region body
PF: predicated region fallthrough
CT: control target
= control target key end

     0   :  { %14 = vsyncpa [#allocation3], 0  ;;  %s7386_s0 = inlined_call_operand.vmem [shape: f32[16,768], index: 0, kind: input, shape index: {}]   ;;  %s7387_s1 = inlined_call_operand.hbm [shape: bf16[768,1024], index: 1, kind: input, shape index: {}]   ;;  %s7388_s2 = inlined_call_operand.hbm [shape: f32[1,1024], index: 2, kind: input, shape index: {}]   ;;  %s7389_s3 = inlined_call_operand.hbm [shape: bf16[1024,128], index: 3, kind: input, shape index: {}]   ;;  %s7390_s4 = inlined_call_operand.hbm [shape: f32[1,128], index: 4, kind: input, shape index: {}]   ;;  %s7391_s5 = inlined_call_operand.hbm [shape: bf16[1024,512], index: 5, kind: input, shape index: {}]   ;;  %s7392_s6 = inlined_call_operand.hbm [shape: f32[1,512], index: 6, kind: input, shape index: {}]   ;;  %s7393_s7 = inlined_call_operand.vmem [shape: f32[16,128], index: 7, kind: output, shape index: {0}]   ;;  %s7394_s8 = inlined_call_operand.vmem [shape: f32[16,512], index: 8, kind: output, shape index: {1}]  }
   0x1   :  { %15 = vsyncpa [#allocation5], 0 }
   0x2   :  { %16 = vsyncpa [#allocation8], 0 }
   0x3   :  { %17 = vsyncpa [#allocation11], 0  ;;  %s7073_s27 = smov [#allocation4]   ;;  %s7074_s29 = smov [#allocation7]  }
   0x4   :  { %s38_s28 = sshll.u32 %s7073_s27, 4  ;;  %s60_s30 = sshll.u32 %s7074_s29, 4  ;;  %s39_s28 = int_to_ptr.vmem [resolvable:$true] %s38_s28  ;;  %s61_s30 = int_to_ptr.vmem [resolvable:$true] %s60_s30 }
   0x5   :  { %s6933_s11 = scalar_lea.hbm %s7388_s2, 128 }
   0x6   :  { %p6934_p0 = scmp.ne.s32.totalorder %s7388_s2, %s6933_s11  ;;  %p6937_p1 = scmp.lt.u32.totalorder %s6933_s11, %s7388_s2 }
   0x8   :  { %p6939_p2 = pnand %p6937_p1, %p6934_p0 }
   0xa   :  { %6942 = shalt.err (!%p6939_p2)
}
   0xb   :  { %s6943_s16 = scalar_lea.vmem %s39_s28, 128  ;;  %p6948_p4 = scmp.lt.s32.totalorder %s39_s28, %s39_s28 }
   0xc   :  { %p6944_p3 = scmp.ne.s32.totalorder %s39_s28, %s6943_s16  ;;  %p6949_p5 = scmp.lt.s32.totalorder %s6943_s16, %s6943_s16 }
   0xe   :  { %p6950_p6 = por %p6949_p5, %p6948_p4 }
  0x10   :  { %p6951_p7 = pnand %p6950_p6, %p6944_p3 }
  0x12   :  { %6954 = shalt.err (!%p6951_p7)
}
  0x13   :  { %41 = dma.hbm_to_vmem [thread:$0]  %s7388_s2, 128, %s39_s28, [#allocation5]  }
  0x14   :  { %s6955_s21 = scalar_lea.hbm %s7390_s4, 16 }
  0x15   :  { %p6956_p8 = scmp.ne.s32.totalorder %s7390_s4, %s6955_s21  ;;  %p6959_p9 = scmp.lt.u32.totalorder %s6955_s21, %s7390_s4 }
  0x17   :  { %p6961_p10 = pnand %p6959_p9, %p6956_p8 }
  0x19   :  { %6964 = shalt.err (!%p6961_p10)
}
  0x1a   :  { %s6965_s26 = scalar_lea.vmem %s61_s30, 16  ;;  %s6969_s27 = scalar_lea.vmem %s61_s30, 32 }
  0x1b   :  { %p6966_p11 = scmp.ne.s32.totalorder %s61_s30, %s6965_s26  ;;  %p6970_p12 = scmp.lt.s32.totalorder %s61_s30, %s61_s30 }
  0x1c   :  { %p6971_p13 = scmp.lt.s32.totalorder %s6969_s27, %s6965_s26 }
  0x1e   :  { %p6972_p0 = por %p6971_p13, %p6970_p12 }
  0x20   :  { %p6973_p1 = pnand %p6972_p0, %p6966_p11 }
  0x22   :  { %6976 = shalt.err (!%p6973_p1)
}
  0x23   :  { %63 = dma.hbm_to_vmem [thread:$0]  %s7390_s4, 16, %s61_s30, [#allocation8]  }
  0x24   :  { %s7075_s29 = smov [#allocation2]   ;;  %s6977_s12 = scalar_lea.hbm %s7387_s1, 49152 }
  0x25   :  { %s25_s9 = sshll.u32 %s7075_s29, 4  ;;  %p6978_p2 = scmp.ne.s32.totalorder %s7387_s1, %s6977_s12  ;;  %s26_s9 = int_to_ptr.vmem [resolvable:$true] %s25_s9 }
  0x26   :  { %p6981_p3 = scmp.lt.u32.totalorder %s6977_s12, %s7387_s1 }
  0x28   :  { %p6983_p4 = pnand %p6981_p3, %p6978_p2 }
  0x2a   :  { %6986 = shalt.err (!%p6983_p4)
}
  0x2b   :  { %s6987_s17 = scalar_lea.vmem %s26_s9, 49152  ;;  %p6992_p6 = scmp.lt.s32.totalorder %s26_s9, %s26_s9 }
  0x2c   :  { %p6988_p5 = scmp.ne.s32.totalorder %s26_s9, %s6987_s17  ;;  %p6993_p7 = scmp.lt.s32.totalorder %s6987_s17, %s6987_s17 }
  0x2e   :  { %p6994_p8 = por %p6993_p7, %p6992_p6 }
  0x30   :  { %p6995_p9 = pnand %p6994_p8, %p6988_p5 }
  0x32   :  { %6998 = shalt.err (!%p6995_p9)
}
  0x33   :  { %s7076_s4 = smov 512   ;;  %s7077_s30 = smov 32  }
  0x34   :  { %31 = dma.hbm_to_vmem [thread:$0]  %s7387_s1, 49152, %s26_s9, [#allocation3], %s7076_s4, %s7076_s4, %s7077_s30  }
  0x35   :  { %s7078_s20 = smov [#allocation6]   ;;  %s6999_s24 = scalar_lea.hbm %s7389_s3, 8192 }
  0x36   :  { %s47_s21 = sshll.u32 %s7078_s20, 4  ;;  %p7000_p10 = scmp.ne.s32.totalorder %s7389_s3, %s6999_s24  ;;  %s48_s21 = int_to_ptr.vmem [resolvable:$true] %s47_s21 }
  0x37   :  { %p7003_p11 = scmp.lt.u32.totalorder %s6999_s24, %s7389_s3 }
  0x39   :  { %p7005_p12 = pnand %p7003_p11, %p7000_p10 }
  0x3b   :  { %7008 = shalt.err (!%p7005_p12)
}
  0x3c   :  { %s7009_s28 = scalar_lea.vmem %s48_s21, 8192  ;;  %p7014_p0 = scmp.lt.s32.totalorder %s48_s21, %s48_s21 }
  0x3d   :  { %p7010_p13 = scmp.ne.s32.totalorder %s48_s21, %s7009_s28  ;;  %p7015_p1 = scmp.lt.s32.totalorder %s7009_s28, %s7009_s28 }
  0x3f   :  { %p7016_p2 = por %p7015_p1, %p7014_p0 }
  0x41   :  { %p7017_p3 = pnand %p7016_p2, %p7010_p13 }
  0x43   :  { %7020 = shalt.err (!%p7017_p3)
}
  0x44   :  { %s7079_s1 = smov 64   ;;  %s7080_s29 = smov 4  }
  0x45   :  { %53 = dma.hbm_to_vmem [thread:$0]  %s7389_s3, 8192, %s48_s21, [#allocation5], %s7079_s1, %s7079_s1, %s7080_s29  }
  0x46   :  { %s7081_s11 = smov [#allocation9]   ;;  %s7021_s15 = scalar_lea.hbm %s7391_s5, 32768 }
  0x47   :  { %s69_s12 = sshll.u32 %s7081_s11, 4  ;;  %p7022_p4 = scmp.ne.s32.totalorder %s7391_s5, %s7021_s15  ;;  %s70_s12 = int_to_ptr.vmem [resolvable:$true] %s69_s12 }
  0x48   :  { %p7025_p5 = scmp.lt.u32.totalorder %s7021_s15, %s7391_s5 }
  0x4a   :  { %p7027_p6 = pnand %p7025_p5, %p7022_p4 }
  0x4c   :  { %7030 = shalt.err (!%p7027_p6)
}
  0x4d   :  { %s7031_s18 = scalar_lea.vmem %s70_s12, 32768  ;;  %p7036_p8 = scmp.lt.s32.totalorder %s70_s12, %s70_s12 }
  0x4e   :  { %p7032_p7 = scmp.ne.s32.totalorder %s70_s12, %s7031_s18  ;;  %p7037_p9 = scmp.lt.s32.totalorder %s7031_s18, %s7031_s18 }
  0x50   :  { %p7038_p10 = por %p7037_p9, %p7036_p8 }
  0x52   :  { %p7039_p11 = pnand %p7038_p10, %p7032_p7 }
  0x54   :  { %7042 = shalt.err (!%p7039_p11)
}
  0x55   :  { %s7082_s3 = smov 256   ;;  %s7083_s19 = smov 16  }
  0x56   :  { %75 = dma.hbm_to_vmem [thread:$0]  %s7391_s5, 32768, %s70_s12, [#allocation8], %s7082_s3, %s7082_s3, %s7083_s19  }
  0x57   :  { %s7084_s22 = smov [#allocation10]   ;;  %s7043_s26 = scalar_lea.hbm %s7392_s6, 64 }
  0x58   :  { %s82_s23 = sshll.u32 %s7084_s22, 4  ;;  %p7044_p12 = scmp.ne.s32.totalorder %s7392_s6, %s7043_s26  ;;  %s83_s23 = int_to_ptr.vmem [resolvable:$true] %s82_s23 }
  0x59   :  { %p7047_p13 = scmp.lt.u32.totalorder %s7043_s26, %s7392_s6 }
  0x5b   :  { %p7049_p0 = pnand %p7047_p13, %p7044_p12 }
  0x5d   :  { %7052 = shalt.err (!%p7049_p0)
}
  0x5e   :  { %s7053_s29 = scalar_lea.vmem %s83_s23, 64  ;;  %p7058_p2 = scmp.lt.s32.totalorder %s83_s23, %s83_s23 }
  0x5f   :  { %p7054_p1 = scmp.ne.s32.totalorder %s83_s23, %s7053_s29  ;;  %p7059_p3 = scmp.lt.s32.totalorder %s7053_s29, %s7053_s29 }
  0x61   :  { %p7060_p4 = por %p7059_p3, %p7058_p2 }
  0x63   :  { %p7061_p5 = pnand %p7060_p4, %p7054_p1 }
  0x65   :  { %7064 = shalt.err (!%p7061_p5)
}
  0x66   :  { %85 = dma.hbm_to_vmem [thread:$0]  %s7392_s6, 64, %s83_s23, [#allocation11]  }
  0x67   :  { %7065 = dma.done.wait [#allocation3], 49152  }
  0x68   :  { %7066 = vsyncadd [#allocation3], 4294918144 }
  0x69   :  { %7067 = dma.done.wait [#allocation5], 8320  }
  0x6a   :  { %7068 = vsyncadd [#allocation5], 4294958976 }
  0x6b   :  { %7069 = dma.done.wait [#allocation8], 32784  }
  0x6c   :  { %7070 = vsyncadd [#allocation8], 4294934512 }
  0x6d   :  { %7071 = dma.done.wait [#allocation11], 64  }
  0x6e   :  { %7072 = vsyncadd [#allocation11], 4294967232  ;;  %v123_v0 = vld [vmem:[#allocation2] sm:$0xff]  ;;  %v124_v2 = vld [vmem:[#allocation2 + $0x8] sm:$0xff] }
  0x6f   :  { %v127_v1 = vld [vmem:[#allocation2 + $0x20] sm:$0xff]  ;;  %v128_v4 = vld [vmem:[#allocation2 + $0x28] sm:$0xff]  ;;  %v112_v54 = vld [vmem:[%s7386_s0 + $0x38] sm:$0xff] }
  0x70   :  { %v5601_v3 = vcombine.high %v123_v0, %v127_v1  ;;  %v5600_v5 = vcombine.low %v123_v0, %v127_v1  ;;  %v131_v6 = vld [vmem:[#allocation2 + $0x40] sm:$0xff]  ;;  %v5603_v8 = vcombine.high %v124_v2, %v128_v4  ;;  %v5602_v9 = vcombine.low %v124_v2, %v128_v4  ;;  %v132_v11 = vld [vmem:[#allocation2 + $0x48] sm:$0xff] }
  0x71   :  { %v135_v7 = vld [vmem:[#allocation2 + $0x60] sm:$0xff]  ;;  %v136_v12 = vld [vmem:[#allocation2 + $0x68] sm:$0xff] }
  0x72   :  { %v5609_v10 = vcombine.high %v131_v6, %v135_v7  ;;  %v139_v13 = vld [vmem:[#allocation2 + $0x80] sm:$0xff]  ;;  %2469 = vmatprep.subr.bf16.mxu0 %v5601_v3  ;;  %v5611_v14 = vcombine.high %v132_v11, %v136_v12  ;;  %v140_v16 = vld [vmem:[#allocation2 + $0x88] sm:$0xff]  ;;  %2598 = vmatprep.subr.bf16.mxu1 %v5603_v8  ;;  %v5608_v18 = vcombine.low %v131_v6, %v135_v7 }
  0x73   :  { %v143_v15 = vld [vmem:[#allocation2 + $0xa0] sm:$0xff]  ;;  %v144_v17 = vld [vmem:[#allocation2 + $0xa8] sm:$0xff]  ;;  %2470 = vmatpush1.bf16.msra.mxu0 %v5600_v5  ;;  %2599 = vmatpush1.bf16.msra.mxu1 %v5602_v9  ;;  %v5610_v19 = vcombine.low %v132_v11, %v136_v12 }
  0x74   :  { %2471 = vmatprep.subr.bf16.mxu0 %v5609_v10  ;;  %v5617_v20 = vcombine.high %v139_v13, %v143_v15  ;;  %2600 = vmatprep.subr.bf16.mxu1 %v5611_v14  ;;  %v5619_v21 = vcombine.high %v140_v16, %v144_v17  ;;  %v147_v22 = vld [vmem:[#allocation2 + $0xc0] sm:$0xff]  ;;  %v148_v24 = vld [vmem:[#allocation2 + $0xc8] sm:$0xff]  ;;  %v5616_v26 = vcombine.low %v139_v13, %v143_v15 }
  0x75   :  { %v151_v23 = vld [vmem:[#allocation2 + $0xe0] sm:$0xff]  ;;  %v152_v25 = vld [vmem:[#allocation2 + $0xe8] sm:$0xff]  ;;  %v5618_v27 = vcombine.low %v140_v16, %v144_v17 }
  0x76   :  { %v5625_v28 = vcombine.high %v147_v22, %v151_v23  ;;  %v5627_v29 = vcombine.high %v148_v24, %v152_v25  ;;  %v155_v30 = vld [vmem:[#allocation2 + $0x100] sm:$0xff]  ;;  %v156_v32 = vld [vmem:[#allocation2 + $0x108] sm:$0xff]  ;;  %v5624_v34 = vcombine.low %v147_v22, %v151_v23  ;;  %v5626_v35 = vcombine.low %v148_v24, %v152_v25 }
  0x77   :  { %2472 = vmatpush1.bf16.msra.mxu0 %v5608_v18  ;;  %2601 = vmatpush1.bf16.msra.mxu1 %v5610_v19  ;;  %v159_v31 = vld [vmem:[#allocation2 + $0x120] sm:$0xff]  ;;  %v160_v33 = vld [vmem:[#allocation2 + $0x128] sm:$0xff] }
  0x78   :  { %2473 = vmatprep.subr.bf16.mxu0 %v5617_v20  ;;  %2602 = vmatprep.subr.bf16.mxu1 %v5619_v21  ;;  %v5633_v36 = vcombine.high %v155_v30, %v159_v31  ;;  %v5635_v37 = vcombine.high %v156_v32, %v160_v33  ;;  %v163_v38 = vld [vmem:[#allocation2 + $0x140] sm:$0xff]  ;;  %v164_v40 = vld [vmem:[#allocation2 + $0x148] sm:$0xff]  ;;  %v5632_v42 = vcombine.low %v155_v30, %v159_v31 }
  0x79   :  { %v167_v39 = vld [vmem:[#allocation2 + $0x160] sm:$0xff]  ;;  %v168_v41 = vld [vmem:[#allocation2 + $0x168] sm:$0xff]  ;;  %v5634_v43 = vcombine.low %v156_v32, %v160_v33 }
  0x7a   :  { %v5641_v44 = vcombine.high %v163_v38, %v167_v39  ;;  %v5643_v45 = vcombine.high %v164_v40, %v168_v41  ;;  %v171_v46 = vld [vmem:[#allocation2 + $0x180] sm:$0xff]  ;;  %v172_v48 = vld [vmem:[#allocation2 + $0x188] sm:$0xff]  ;;  %v5640_v50 = vcombine.low %v163_v38, %v167_v39  ;;  %v5642_v51 = vcombine.low %v164_v40, %v168_v41 }
  0x7b   :  { %2474 = vmatpush1.bf16.msra.mxu0 %v5616_v26  ;;  %2603 = vmatpush1.bf16.msra.mxu1 %v5618_v27  ;;  %v175_v47 = vld [vmem:[#allocation2 + $0x1a0] sm:$0xff]  ;;  %v176_v49 = vld [vmem:[#allocation2 + $0x1a8] sm:$0xff] }
  0x7c   :  { %2475 = vmatprep.subr.bf16.mxu0 %v5625_v28  ;;  %2604 = vmatprep.subr.bf16.mxu1 %v5627_v29  ;;  %v5649_v52 = vcombine.high %v171_v46, %v175_v47  ;;  %v106_v53 = vld [vmem:[%s7386_s0 + $0x8] sm:$0xff]  ;;  %v5651_v55 = vcombine.high %v172_v48, %v176_v49  ;;  %v179_v56 = vld [vmem:[#allocation2 + $0x1c0] sm:$0xff]  ;;  %v5648_v61 = vcombine.low %v171_v46, %v175_v47 }
  0x7d   :  { %v183_v57 = vld [vmem:[#allocation2 + $0x1e0] sm:$0xff]  ;;  %v7208_v58 = vpack.c.bf16 %v112_v54, %v106_v53  ;;  %v180_v59 = vld [vmem:[#allocation2 + $0x1c8] sm:$0xff]  ;;  %v5650_v62 = vcombine.low %v172_v48, %v176_v49 }
  0x7e   :  { %v184_v60 = vld [vmem:[#allocation2 + $0x1e8] sm:$0xff]  ;;  %v5657_v63 = vcombine.high %v179_v56, %v183_v57  ;;  %v187_v1 = vld [vmem:[#allocation2 + $0x200] sm:$0xff]  ;;  %v5656_v5 = vcombine.low %v179_v56, %v183_v57 }
  0x7f   :  { %2476 = vmatpush1.bf16.msra.mxu0 %v5624_v34  ;;  %2605 = vmatpush1.bf16.msra.mxu1 %v5626_v35  ;;  %v5659_v0 = vcombine.high %v180_v59, %v184_v60  ;;  %v191_v2 = vld [vmem:[#allocation2 + $0x220] sm:$0xff]  ;;  %v188_v3 = vld [vmem:[#allocation2 + $0x208] sm:$0xff]  ;;  %v5658_v6 = vcombine.low %v180_v59, %v184_v60 }
  0x80   :  { %2477 = vmatprep.subr.bf16.mxu0 %v5633_v36  ;;  %2606 = vmatprep.subr.bf16.mxu1 %v5635_v37  ;;  %v192_v4 = vld [vmem:[#allocation2 + $0x228] sm:$0xff]  ;;  %v5665_v7 = vcombine.high %v187_v1, %v191_v2  ;;  %v195_v9 = vld [vmem:[#allocation2 + $0x240] sm:$0xff]  ;;  %v5664_v13 = vcombine.low %v187_v1, %v191_v2 }
  0x81   :  { %2501 = vmatprep.mubr.bf16.mxu0 %v7208_v58  ;;  %2630 = vmatprep.mubr.bf16.mxu1 %v7208_v58  ;;  %v5667_v8 = vcombine.high %v188_v3, %v192_v4  ;;  %v199_v10 = vld [vmem:[#allocation2 + $0x260] sm:$0xff]  ;;  %v196_v11 = vld [vmem:[#allocation2 + $0x248] sm:$0xff]  ;;  %v5666_v14 = vcombine.low %v188_v3, %v192_v4 }
  0x82   :  { %v200_v12 = vld [vmem:[#allocation2 + $0x268] sm:$0xff]  ;;  %v5673_v15 = vcombine.high %v195_v9, %v199_v10  ;;  %v203_v17 = vld [vmem:[#allocation2 + $0x280] sm:$0xff]  ;;  %v5672_v21 = vcombine.low %v195_v9, %v199_v10 }
  0x83   :  { %2478 = vmatpush1.bf16.msra.mxu0 %v5632_v42  ;;  %2607 = vmatpush1.bf16.msra.mxu1 %v5634_v43  ;;  %v5675_v16 = vcombine.high %v196_v11, %v200_v12  ;;  %v207_v18 = vld [vmem:[#allocation2 + $0x2a0] sm:$0xff]  ;;  %v204_v19 = vld [vmem:[#allocation2 + $0x288] sm:$0xff]  ;;  %v5674_v22 = vcombine.low %v196_v11, %v200_v12 }
  0x84   :  { %2479 = vmatprep.subr.bf16.mxu0 %v5641_v44  ;;  %2608 = vmatprep.subr.bf16.mxu1 %v5643_v45  ;;  %v208_v20 = vld [vmem:[#allocation2 + $0x2a8] sm:$0xff]  ;;  %v5681_v23 = vcombine.high %v203_v17, %v207_v18  ;;  %v211_v25 = vld [vmem:[#allocation2 + $0x2c0] sm:$0xff]  ;;  %v5680_v29 = vcombine.low %v203_v17, %v207_v18  ;;  %v108_v17 = vld [vmem:[%s7386_s0 + $0x18] sm:$0xff] }
  0x85   :  { %v5683_v24 = vcombine.high %v204_v19, %v208_v20  ;;  %v215_v26 = vld [vmem:[#allocation2 + $0x2e0] sm:$0xff]  ;;  %v212_v27 = vld [vmem:[#allocation2 + $0x2c8] sm:$0xff]  ;;  %v5682_v30 = vcombine.low %v204_v19, %v208_v20 }
  0x86   :  { %v216_v28 = vld [vmem:[#allocation2 + $0x2e8] sm:$0xff]  ;;  %v5689_v31 = vcombine.high %v211_v25, %v215_v26  ;;  %v219_v33 = vld [vmem:[#allocation2 + $0x300] sm:$0xff]  ;;  %v5688_v37 = vcombine.low %v211_v25, %v215_v26 }
  0x87   :  { %2480 = vmatpush1.bf16.msra.mxu0 %v5640_v50  ;;  %2609 = vmatpush1.bf16.msra.mxu1 %v5642_v51  ;;  %v5691_v32 = vcombine.high %v212_v27, %v216_v28  ;;  %v223_v34 = vld [vmem:[#allocation2 + $0x320] sm:$0xff]  ;;  %v220_v35 = vld [vmem:[#allocation2 + $0x308] sm:$0xff]  ;;  %v5690_v38 = vcombine.low %v212_v27, %v216_v28 }
  0x88   :  { %2481 = vmatprep.subr.bf16.mxu0 %v5649_v52  ;;  %2610 = vmatprep.subr.bf16.mxu1 %v5651_v55  ;;  %v224_v36 = vld [vmem:[#allocation2 + $0x328] sm:$0xff]  ;;  %v5697_v39 = vcombine.high %v219_v33, %v223_v34  ;;  %v227_v41 = vld [vmem:[#allocation2 + $0x340] sm:$0xff]  ;;  %v5696_v45 = vcombine.low %v219_v33, %v223_v34 }
  0x89   :  { %v5699_v40 = vcombine.high %v220_v35, %v224_v36  ;;  %v231_v42 = vld [vmem:[#allocation2 + $0x360] sm:$0xff]  ;;  %v228_v43 = vld [vmem:[#allocation2 + $0x348] sm:$0xff]  ;;  %v5698_v46 = vcombine.low %v220_v35, %v224_v36 }
  0x8a   :  { %v232_v44 = vld [vmem:[#allocation2 + $0x368] sm:$0xff]  ;;  %v5705_v47 = vcombine.high %v227_v41, %v231_v42  ;;  %v235_v49 = vld [vmem:[#allocation2 + $0x380] sm:$0xff]  ;;  %v5704_v53 = vcombine.low %v227_v41, %v231_v42 }
  0x8b   :  { %2482 = vmatpush1.bf16.msra.mxu0 %v5648_v61  ;;  %2611 = vmatpush1.bf16.msra.mxu1 %v5650_v62  ;;  %v5707_v48 = vcombine.high %v228_v43, %v232_v44  ;;  %v239_v50 = vld [vmem:[#allocation2 + $0x3a0] sm:$0xff]  ;;  %v236_v51 = vld [vmem:[#allocation2 + $0x388] sm:$0xff]  ;;  %v5706_v54 = vcombine.low %v228_v43, %v232_v44 }
  0x8c   :  { %2483 = vmatprep.subr.bf16.mxu0 %v5657_v63  ;;  %2612 = vmatprep.subr.bf16.mxu1 %v5659_v0  ;;  %v240_v52 = vld [vmem:[#allocation2 + $0x3a8] sm:$0xff]  ;;  %v5713_v55 = vcombine.high %v235_v49, %v239_v50  ;;  %v243_v57 = vld [vmem:[#allocation2 + $0x3c0] sm:$0xff]  ;;  %v5712_v62 = vcombine.low %v235_v49, %v239_v50 }
  0x8d   :  { %v5715_v56 = vcombine.high %v236_v51, %v240_v52  ;;  %v247_v59 = vld [vmem:[#allocation2 + $0x3e0] sm:$0xff]  ;;  %v244_v60 = vld [vmem:[#allocation2 + $0x3c8] sm:$0xff]  ;;  %v5714_v63 = vcombine.low %v236_v51, %v240_v52 }
  0x8e   :  { %v248_v61 = vld [vmem:[#allocation2 + $0x3e8] sm:$0xff]  ;;  %v5721_v0 = vcombine.high %v243_v57, %v247_v59  ;;  %v251_v2 = vld [vmem:[#allocation2 + $0x400] sm:$0xff] }
  0x8f   :  { %2484 = vmatpush1.bf16.msra.mxu0 %v5656_v5  ;;  %2613 = vmatpush1.bf16.msra.mxu1 %v5658_v6  ;;  %v5723_v1 = vcombine.high %v244_v60, %v248_v61  ;;  %v255_v3 = vld [vmem:[#allocation2 + $0x420] sm:$0xff]  ;;  %v252_v4 = vld [vmem:[#allocation2 + $0x408] sm:$0xff]  ;;  %v5720_v6 = vcombine.low %v243_v57, %v247_v59  ;;  %v5722_v9 = vcombine.low %v244_v60, %v248_v61 }
  0x90   :  { %2485 = vmatprep.subr.bf16.mxu0 %v5665_v7  ;;  %2614 = vmatprep.subr.bf16.mxu1 %v5667_v8  ;;  %v256_v5 = vld [vmem:[#allocation2 + $0x428] sm:$0xff]  ;;  %v105_v7 = vld [vmem:[%s7386_s0] sm:$0xff]  ;;  %v111_v8 = vld [vmem:[%s7386_s0 + $0x30] sm:$0xff]  ;;  %v5729_v10 = vcombine.high %v251_v2, %v255_v3  ;;  %v5728_v19 = vcombine.low %v251_v2, %v255_v3 }
  0x91   :  { %v5731_v11 = vcombine.high %v252_v4, %v256_v5  ;;  %v259_v12 = vld [vmem:[#allocation2 + $0x440] sm:$0xff]  ;;  %v114_v18 = vld [vmem:[%s7386_s0 + $0x48] sm:$0xff]  ;;  %v5730_v20 = vcombine.low %v252_v4, %v256_v5 }
  0x92   :  { %v7226_v25 = vpack.c.bf16 %v114_v18, %v108_v17  ;;  %v268_v26 = vld [vmem:[#allocation2 + $0x488] sm:$0xff]  ;;  %v323_v17 = vld [vmem:[#allocation2 + $0x640] sm:$0xff] }
  0x93   :  { %2486 = vmatpush1.bf16.msra.mxu0 %v5664_v13  ;;  %2615 = vmatpush1.bf16.msra.mxu1 %v5666_v14  ;;  %v263_v13 = vld [vmem:[#allocation2 + $0x460] sm:$0xff]  ;;  %v260_v14 = vld [vmem:[#allocation2 + $0x448] sm:$0xff] }
  0x94   :  { %2487 = vmatprep.subr.bf16.mxu0 %v5673_v15  ;;  %2616 = vmatprep.subr.bf16.mxu1 %v5675_v16  ;;  %v7218_v15 = vpack.c.bf16 %v111_v8, %v105_v7  ;;  %v264_v16 = vld [vmem:[#allocation2 + $0x468] sm:$0xff]  ;;  %v5736_v28 = vcombine.low %v259_v12, %v263_v13  ;;  %v315_v8 = vld [vmem:[#allocation2 + $0x600] sm:$0xff] }
  0x95   :  { %v272_v27 = vld [vmem:[#allocation2 + $0x4a8] sm:$0xff]  ;;  %v327_v18 = vld [vmem:[#allocation2 + $0x660] sm:$0xff] }
  0x96   :  { %v5747_v33 = vcombine.high %v268_v26, %v272_v27  ;;  %v276_v34 = vld [vmem:[#allocation2 + $0x4c8] sm:$0xff] }
  0x97   :  { %2488 = vmatpush1.bf16.msra.mxu0 %v5672_v21  ;;  %2617 = vmatpush1.bf16.msra.mxu1 %v5674_v22  ;;  %v5737_v21 = vcombine.high %v259_v12, %v263_v13  ;;  %v5739_v22 = vcombine.high %v260_v14, %v264_v16  ;;  %v280_v35 = vld [vmem:[#allocation2 + $0x4e8] sm:$0xff] }
  0x98   :  { %2489 = vmatprep.subr.bf16.mxu0 %v5681_v23  ;;  %2618 = vmatprep.subr.bf16.mxu1 %v5683_v24  ;;  %v267_v23 = vld [vmem:[#allocation2 + $0x480] sm:$0xff]  ;;  %v284_v41 = vld [vmem:[#allocation2 + $0x508] sm:$0xff]  ;;  %v5755_v42 = vcombine.high %v276_v34, %v280_v35 }
  0x99   :  { %v271_v24 = vld [vmem:[#allocation2 + $0x4a0] sm:$0xff]  ;;  %v288_v43 = vld [vmem:[#allocation2 + $0x528] sm:$0xff] }
  0x9a   :  { %v5744_v36 = vcombine.low %v267_v23, %v271_v24  ;;  %v292_v49 = vld [vmem:[#allocation2 + $0x548] sm:$0xff]  ;;  %v5763_v50 = vcombine.high %v284_v41, %v288_v43 }
  0x9b   :  { %2490 = vmatpush1.bf16.msra.mxu0 %v5680_v29  ;;  %2619 = vmatpush1.bf16.msra.mxu1 %v5682_v30  ;;  %v5738_v29 = vcombine.low %v260_v14, %v264_v16  ;;  %v5745_v30 = vcombine.high %v267_v23, %v271_v24  ;;  %v296_v51 = vld [vmem:[#allocation2 + $0x568] sm:$0xff]  ;;  %v5801_v24 = vcombine.high %v323_v17, %v327_v18 }
  0x9c   :  { %2491 = vmatprep.subr.bf16.mxu0 %v5689_v31  ;;  %2620 = vmatprep.subr.bf16.mxu1 %v5691_v32  ;;  %v275_v31 = vld [vmem:[#allocation2 + $0x4c0] sm:$0xff]  ;;  %v300_v57 = vld [vmem:[#allocation2 + $0x588] sm:$0xff]  ;;  %v5771_v59 = vcombine.high %v292_v49, %v296_v51 }
  0x9d   :  { %v279_v32 = vld [vmem:[#allocation2 + $0x4e0] sm:$0xff]  ;;  %v304_v60 = vld [vmem:[#allocation2 + $0x5a8] sm:$0xff] }
  0x9e   :  { %v5752_v44 = vcombine.low %v275_v31, %v279_v32  ;;  %v308_v2 = vld [vmem:[#allocation2 + $0x5c8] sm:$0xff]  ;;  %v5779_v3 = vcombine.high %v300_v57, %v304_v60 }
  0x9f   :  { %2492 = vmatpush1.bf16.msra.mxu0 %v5688_v37  ;;  %2621 = vmatpush1.bf16.msra.mxu1 %v5690_v38  ;;  %v5746_v37 = vcombine.low %v268_v26, %v272_v27  ;;  %v5753_v38 = vcombine.high %v275_v31, %v279_v32  ;;  %v312_v4 = vld [vmem:[#allocation2 + $0x5e8] sm:$0xff]  ;;  %v331_v26 = vld [vmem:[#allocation2 + $0x680] sm:$0xff]  ;;  %v5800_v31 = vcombine.low %v323_v17, %v327_v18  ;;  %v107_v17 = vld [vmem:[%s7386_s0 + $0x10] sm:$0xff] }
  0xa0   :  { %2493 = vmatprep.subr.bf16.mxu0 %v5697_v39  ;;  %2622 = vmatprep.subr.bf16.mxu1 %v5699_v40  ;;  %v283_v39 = vld [vmem:[#allocation2 + $0x500] sm:$0xff]  ;;  %v320_v12 = vld [vmem:[#allocation2 + $0x628] sm:$0xff]  ;;  %v5786_v14 = vcombine.low %v308_v2, %v312_v4 }
  0xa1   :  { %v287_v40 = vld [vmem:[#allocation2 + $0x520] sm:$0xff] }
  0xa2   :  { %v5760_v52 = vcombine.low %v283_v39, %v287_v40  ;;  %v335_v27 = vld [vmem:[#allocation2 + $0x6a0] sm:$0xff] }
  0xa3   :  { %2494 = vmatpush1.bf16.msra.mxu0 %v5696_v45  ;;  %2623 = vmatpush1.bf16.msra.mxu1 %v5698_v46  ;;  %v5754_v45 = vcombine.low %v276_v34, %v280_v35  ;;  %v5761_v46 = vcombine.high %v283_v39, %v287_v40  ;;  %v339_v34 = vld [vmem:[#allocation2 + $0x6c0] sm:$0xff]  ;;  %v5808_v39 = vcombine.low %v331_v26, %v335_v27 }
  0xa4   :  { %2495 = vmatprep.subr.bf16.mxu0 %v5705_v47  ;;  %2624 = vmatprep.subr.bf16.mxu1 %v5707_v48  ;;  %v291_v47 = vld [vmem:[#allocation2 + $0x540] sm:$0xff] }
  0xa5   :  { %v295_v48 = vld [vmem:[#allocation2 + $0x560] sm:$0xff] }
  0xa6   :  { %v5768_v61 = vcombine.low %v291_v47, %v295_v48  ;;  %v343_v35 = vld [vmem:[#allocation2 + $0x6e0] sm:$0xff] }
  0xa7   :  { %2496 = vmatpush1.bf16.msra.mxu0 %v5704_v53  ;;  %2625 = vmatpush1.bf16.msra.mxu1 %v5706_v54  ;;  %v5762_v53 = vcombine.low %v284_v41, %v288_v43  ;;  %v5769_v54 = vcombine.high %v291_v47, %v295_v48  ;;  %v5817_v41 = vcombine.high %v339_v34, %v343_v35  ;;  %v351_v43 = vld [vmem:[#allocation2 + $0x720] sm:$0xff] }
  0xa8   :  { %2497 = vmatprep.subr.bf16.mxu0 %v5713_v55  ;;  %2626 = vmatprep.subr.bf16.mxu1 %v5715_v56  ;;  %v299_v55 = vld [vmem:[#allocation2 + $0x580] sm:$0xff]  ;;  %v5816_v47 = vcombine.low %v339_v34, %v343_v35 }
  0xa9   :  { %v303_v56 = vld [vmem:[#allocation2 + $0x5a0] sm:$0xff] }
  0xaa   :  { %v5776_v5 = vcombine.low %v299_v55, %v303_v56  ;;  %v113_v18 = vld [vmem:[%s7386_s0 + $0x40] sm:$0xff] }
  0xab   :  { %2498 = vmatpush1.bf16.msra.mxu0 %v5712_v62  ;;  %2627 = vmatpush1.bf16.msra.mxu1 %v5714_v63  ;;  %v5770_v62 = vcombine.low %v292_v49, %v296_v51  ;;  %v5777_v63 = vcombine.high %v299_v55, %v303_v56  ;;  %v359_v51 = vld [vmem:[#allocation2 + $0x760] sm:$0xff] }
  0xac   :  { %2499 = vmatprep.subr.bf16.mxu0 %v5721_v0  ;;  %2628 = vmatprep.subr.bf16.mxu1 %v5723_v1  ;;  %v307_v0 = vld [vmem:[#allocation2 + $0x5c0] sm:$0xff] }
  0xad   :  { %v311_v1 = vld [vmem:[#allocation2 + $0x5e0] sm:$0xff] }
  0xae   :  { %v5785_v7 = vcombine.high %v307_v0, %v311_v1  ;;  %v5784_v13 = vcombine.low %v307_v0, %v311_v1  ;;  %v395_v34 = vld [vmem:[#allocation2 + $0x880] sm:$0xff] }
  0xaf   :  { %2500 = vmatpush1.bf16.msra.mxu0 %v5720_v6  ;;  %2629 = vmatpush1.bf16.msra.mxu1 %v5722_v9  ;;  %v5778_v6 = vcombine.low %v300_v57, %v304_v60  ;;  %v319_v9 = vld [vmem:[#allocation2 + $0x620] sm:$0xff] }
  0xb0   :  { %2512 = vmatprep.subr.bf16.mxu0 %v5729_v10  ;;  %2641 = vmatprep.subr.bf16.mxu1 %v5731_v11  ;;  %v316_v10 = vld [vmem:[#allocation2 + $0x608] sm:$0xff]  ;;  %v5787_v11 = vcombine.high %v308_v2, %v312_v4  ;;  %v5793_v16 = vcombine.high %v315_v8, %v319_v9  ;;  %v367_v60 = vld [vmem:[#allocation2 + $0x7a0] sm:$0xff] }
  0xb1   :  { %v5794_v23 = vcombine.low %v316_v10, %v320_v12  ;;  %v375_v4 = vld [vmem:[#allocation2 + $0x7e0] sm:$0xff] }
  0xb2   :  { %2502 = vmatmul.mubr.bf16.vlgmr.msra.gmra.mrb[0].mxu0 %v7218_v15  ;;  %2631 = vmatmul.mubr.bf16.vlgmr.msra.gmra.mrb[0].mxu1 %v7218_v15  ;;  %v399_v35 = vld [vmem:[#allocation2 + $0x8a0] sm:$0xff] }
  0xb3   :  { %2513 = vmatpush1.bf16.msra.mxu0 %v5728_v19  ;;  %2642 = vmatpush1.bf16.msra.mxu1 %v5730_v20  ;;  %v324_v19 = vld [vmem:[#allocation2 + $0x648] sm:$0xff]  ;;  %v5795_v20 = vcombine.high %v316_v10, %v320_v12  ;;  %v383_v12 = vld [vmem:[#allocation2 + $0x820] sm:$0xff] }
  0xb4   :  { %2514 = vmatprep.subr.bf16.mxu0 %v5737_v21  ;;  %2643 = vmatprep.subr.bf16.mxu1 %v5739_v22  ;;  %v328_v21 = vld [vmem:[#allocation2 + $0x668] sm:$0xff]  ;;  %v5792_v22 = vcombine.low %v315_v8, %v319_v9  ;;  %v379_v9 = vld [vmem:[#allocation2 + $0x800] sm:$0xff] }
  0xb5   :  { %2544 = vmatprep.mubr.bf16.mxu0 %v7226_v25  ;;  %2673 = vmatprep.mubr.bf16.mxu1 %v7226_v25  ;;  %v5802_v32 = vcombine.low %v324_v19, %v328_v21 }
  0xb7   :  { %2515 = vmatpush1.bf16.msra.mxu0 %v5736_v28  ;;  %2644 = vmatpush1.bf16.msra.mxu1 %v5738_v29  ;;  %v332_v28 = vld [vmem:[#allocation2 + $0x688] sm:$0xff]  ;;  %v5803_v29 = vcombine.high %v324_v19, %v328_v21  ;;  %v391_v21 = vld [vmem:[#allocation2 + $0x860] sm:$0xff] }
  0xb8   :  { %2516 = vmatprep.subr.bf16.mxu0 %v5745_v30  ;;  %2645 = vmatprep.subr.bf16.mxu1 %v5747_v33  ;;  %v336_v30 = vld [vmem:[#allocation2 + $0x6a8] sm:$0xff]  ;;  %v5809_v33 = vcombine.high %v331_v26, %v335_v27 }
  0xb9   :  { %v5810_v40 = vcombine.low %v332_v28, %v336_v30  ;;  %v392_v26 = vld [vmem:[#allocation2 + $0x868] sm:$0xff] }
  0xba   :  { %v110_v27 = vld [vmem:[%s7386_s0 + $0x28] sm:$0xff] }
  0xbb   :  { %2517 = vmatpush1.bf16.msra.mxu0 %v5744_v36  ;;  %2646 = vmatpush1.bf16.msra.mxu1 %v5746_v37  ;;  %v340_v36 = vld [vmem:[#allocation2 + $0x6c8] sm:$0xff]  ;;  %v5811_v37 = vcombine.high %v332_v28, %v336_v30  ;;  %v7244_v30 = vpack.c.bf16 %v113_v18, %v107_v17 }
  0xbc   :  { %2518 = vmatprep.subr.bf16.mxu0 %v5753_v38  ;;  %2647 = vmatprep.subr.bf16.mxu1 %v5755_v42  ;;  %v344_v38 = vld [vmem:[#allocation2 + $0x6e8] sm:$0xff]  ;;  %v347_v42 = vld [vmem:[#allocation2 + $0x700] sm:$0xff] }
  0xbd   :  { %v5818_v48 = vcombine.low %v340_v36, %v344_v38  ;;  %v5825_v49 = vcombine.high %v347_v42, %v351_v43  ;;  %v5824_v55 = vcombine.low %v347_v42, %v351_v43  ;;  %v5873_v42 = vcombine.high %v395_v34, %v399_v35  ;;  %v403_v43 = vld [vmem:[#allocation2 + $0x8c0] sm:$0xff]  ;;  %v440_v17 = vld [vmem:[#allocation2 + $0x9e8] sm:$0xff] }
  0xbf   :  { %2519 = vmatpush1.bf16.msra.mxu0 %v5752_v44  ;;  %2648 = vmatpush1.bf16.msra.mxu1 %v5754_v45  ;;  %v348_v44 = vld [vmem:[#allocation2 + $0x708] sm:$0xff]  ;;  %v5819_v45 = vcombine.high %v340_v36, %v344_v38 }
  0xc0   :  { %2520 = vmatprep.subr.bf16.mxu0 %v5761_v46  ;;  %2649 = vmatprep.subr.bf16.mxu1 %v5763_v50  ;;  %v352_v46 = vld [vmem:[#allocation2 + $0x728] sm:$0xff]  ;;  %v355_v50 = vld [vmem:[#allocation2 + $0x740] sm:$0xff] }
  0xc1   :  { %v5826_v56 = vcombine.low %v348_v44, %v352_v46  ;;  %v5833_v57 = vcombine.high %v355_v50, %v359_v51  ;;  %v5832_v0 = vcombine.low %v355_v50, %v359_v51  ;;  %v396_v36 = vld [vmem:[#allocation2 + $0x888] sm:$0xff]  ;;  %v411_v51 = vld [vmem:[#allocation2 + $0x900] sm:$0xff] }
  0xc2   :  { %v400_v38 = vld [vmem:[#allocation2 + $0x8a8] sm:$0xff] }
  0xc3   :  { %2521 = vmatpush1.bf16.msra.mxu0 %v5760_v52  ;;  %2650 = vmatpush1.bf16.msra.mxu1 %v5762_v53  ;;  %v356_v52 = vld [vmem:[#allocation2 + $0x748] sm:$0xff]  ;;  %v5827_v53 = vcombine.high %v348_v44, %v352_v46  ;;  %v407_v44 = vld [vmem:[#allocation2 + $0x8e0] sm:$0xff]  ;;  %v5875_v46 = vcombine.high %v396_v36, %v400_v38 }
  0xc4   :  { %2522 = vmatprep.subr.bf16.mxu0 %v5769_v54  ;;  %2651 = vmatprep.subr.bf16.mxu1 %v5771_v59  ;;  %v360_v54 = vld [vmem:[#allocation2 + $0x768] sm:$0xff]  ;;  %v363_v59 = vld [vmem:[#allocation2 + $0x780] sm:$0xff]  ;;  %v5881_v50 = vcombine.high %v403_v43, %v407_v44 }
  0xc5   :  { %v5834_v1 = vcombine.low %v356_v52, %v360_v54  ;;  %v5841_v2 = vcombine.high %v363_v59, %v367_v60  ;;  %v5840_v8 = vcombine.low %v363_v59, %v367_v60  ;;  %v419_v60 = vld [vmem:[#allocation2 + $0x940] sm:$0xff] }
  0xc7   :  { %2523 = vmatpush1.bf16.msra.mxu0 %v5768_v61  ;;  %2652 = vmatpush1.bf16.msra.mxu1 %v5770_v62  ;;  %v364_v61 = vld [vmem:[#allocation2 + $0x788] sm:$0xff]  ;;  %v5835_v62 = vcombine.high %v356_v52, %v360_v54  ;;  %v415_v52 = vld [vmem:[#allocation2 + $0x920] sm:$0xff] }
  0xc8   :  { %2524 = vmatprep.subr.bf16.mxu0 %v5777_v63  ;;  %2653 = vmatprep.subr.bf16.mxu1 %v5779_v3  ;;  %v368_v63 = vld [vmem:[#allocation2 + $0x7a8] sm:$0xff]  ;;  %v371_v3 = vld [vmem:[#allocation2 + $0x7c0] sm:$0xff]  ;;  %v5889_v59 = vcombine.high %v411_v51, %v415_v52 }
  0xc9   :  { %v5842_v10 = vcombine.low %v364_v61, %v368_v63  ;;  %v5848_v19 = vcombine.low %v371_v3, %v375_v4 }
  0xcb   :  { %2525 = vmatpush1.bf16.msra.mxu0 %v5776_v5  ;;  %2654 = vmatpush1.bf16.msra.mxu1 %v5778_v6  ;;  %v372_v5 = vld [vmem:[#allocation2 + $0x7c8] sm:$0xff]  ;;  %v5843_v6 = vcombine.high %v364_v61, %v368_v63  ;;  %v423_v61 = vld [vmem:[#allocation2 + $0x960] sm:$0xff] }
  0xcc   :  { %2526 = vmatprep.subr.bf16.mxu0 %v5785_v7  ;;  %2655 = vmatprep.subr.bf16.mxu1 %v5787_v11  ;;  %v376_v7 = vld [vmem:[#allocation2 + $0x7e8] sm:$0xff]  ;;  %v5849_v11 = vcombine.high %v371_v3, %v375_v4  ;;  %v5897_v3 = vcombine.high %v419_v60, %v423_v61  ;;  %v427_v4 = vld [vmem:[#allocation2 + $0x980] sm:$0xff] }
  0xcf   :  { %2527 = vmatpush1.bf16.msra.mxu0 %v5784_v13  ;;  %2656 = vmatpush1.bf16.msra.mxu1 %v5786_v14  ;;  %v380_v13 = vld [vmem:[#allocation2 + $0x808] sm:$0xff] }
  0xd0   :  { %2528 = vmatprep.subr.bf16.mxu0 %v5793_v16  ;;  %2657 = vmatprep.subr.bf16.mxu1 %v5795_v20  ;;  %v384_v14 = vld [vmem:[#allocation2 + $0x828] sm:$0xff]  ;;  %v5851_v16 = vcombine.high %v372_v5, %v376_v7  ;;  %v387_v20 = vld [vmem:[#allocation2 + $0x840] sm:$0xff] }
  0xd1   :  { %v5859_v28 = vcombine.high %v380_v13, %v384_v14 }
  0xd3   :  { %2529 = vmatpush1.bf16.msra.mxu0 %v5792_v22  ;;  %2658 = vmatpush1.bf16.msra.mxu1 %v5794_v23  ;;  %v5850_v22 = vcombine.low %v372_v5, %v376_v7  ;;  %v5857_v23 = vcombine.high %v379_v9, %v383_v12  ;;  %v431_v5 = vld [vmem:[#allocation2 + $0x9a0] sm:$0xff] }
  0xd4   :  { %2530 = vmatprep.subr.bf16.mxu0 %v5801_v24  ;;  %2659 = vmatprep.subr.bf16.mxu1 %v5803_v29  ;;  %v388_v24 = vld [vmem:[#allocation2 + $0x848] sm:$0xff]  ;;  %v116_v29 = vld [vmem:[%s7386_s0 + $0x58] sm:$0xff]  ;;  %v5904_v18 = vcombine.low %v427_v4, %v431_v5 }
  0xd7   :  { %2531 = vmatpush1.bf16.msra.mxu0 %v5800_v31  ;;  %2660 = vmatpush1.bf16.msra.mxu1 %v5802_v32  ;;  %v5856_v31 = vcombine.low %v379_v9, %v383_v12  ;;  %v5858_v32 = vcombine.low %v380_v13, %v384_v14  ;;  %v5896_v9 = vcombine.low %v419_v60, %v423_v61  ;;  %v435_v12 = vld [vmem:[#allocation2 + $0x9c0] sm:$0xff]  ;;  %v436_v14 = vld [vmem:[#allocation2 + $0x9c8] sm:$0xff] }
  0xd8   :  { %2532 = vmatprep.subr.bf16.mxu0 %v5809_v33  ;;  %2661 = vmatprep.subr.bf16.mxu1 %v5811_v37  ;;  %v5865_v33 = vcombine.high %v387_v20, %v391_v21  ;;  %v5867_v37 = vcombine.high %v388_v24, %v392_v26  ;;  %v439_v13 = vld [vmem:[#allocation2 + $0x9e0] sm:$0xff]  ;;  %v480_v61 = vld [vmem:[#allocation2 + $0xb28] sm:$0xff] }
  0xdb   :  { %2533 = vmatpush1.bf16.msra.mxu0 %v5808_v39  ;;  %2662 = vmatpush1.bf16.msra.mxu1 %v5810_v40  ;;  %v7246_v39 = vpack.c.bf16 %v116_v29, %v110_v27  ;;  %v5864_v40 = vcombine.low %v387_v20, %v391_v21  ;;  %v5913_v20 = vcombine.high %v435_v12, %v439_v13  ;;  %v443_v21 = vld [vmem:[#allocation2 + $0xa00] sm:$0xff] }
  0xdc   :  { %2534 = vmatprep.subr.bf16.mxu0 %v5817_v41  ;;  %2663 = vmatprep.subr.bf16.mxu1 %v5819_v45  ;;  %v5866_v41 = vcombine.low %v388_v24, %v392_v26  ;;  %v404_v45 = vld [vmem:[#allocation2 + $0x8c8] sm:$0xff]  ;;  %v5915_v24 = vcombine.high %v436_v14, %v440_v17  ;;  %v5912_v27 = vcombine.low %v435_v12, %v439_v13 }
  0xdd   :  { %v448_v26 = vld [vmem:[#allocation2 + $0xa28] sm:$0xff] }
  0xde   :  { %v496_v13 = vld [vmem:[#allocation2 + $0xba8] sm:$0xff] }
  0xdf   :  { %2535 = vmatpush1.bf16.msra.mxu0 %v5816_v47  ;;  %2664 = vmatpush1.bf16.msra.mxu1 %v5818_v48  ;;  %v408_v47 = vld [vmem:[#allocation2 + $0x8e8] sm:$0xff]  ;;  %v5872_v48 = vcombine.low %v395_v34, %v399_v35 }
  0xe0   :  { %2536 = vmatprep.subr.bf16.mxu0 %v5825_v49  ;;  %2665 = vmatprep.subr.bf16.mxu1 %v5827_v53  ;;  %v5874_v49 = vcombine.low %v396_v36, %v400_v38  ;;  %v412_v53 = vld [vmem:[#allocation2 + $0x908] sm:$0xff]  ;;  %v5883_v54 = vcombine.high %v404_v45, %v408_v47 }
  0xe1   :  { %v456_v35 = vld [vmem:[#allocation2 + $0xa68] sm:$0xff] }
  0xe3   :  { %2537 = vmatpush1.bf16.msra.mxu0 %v5824_v55  ;;  %2666 = vmatpush1.bf16.msra.mxu1 %v5826_v56  ;;  %v416_v55 = vld [vmem:[#allocation2 + $0x928] sm:$0xff]  ;;  %v5880_v56 = vcombine.low %v403_v43, %v407_v44 }
  0xe4   :  { %2538 = vmatprep.subr.bf16.mxu0 %v5833_v57  ;;  %2667 = vmatprep.subr.bf16.mxu1 %v5835_v62  ;;  %v5882_v57 = vcombine.low %v404_v45, %v408_v47  ;;  %v420_v62 = vld [vmem:[#allocation2 + $0x948] sm:$0xff]  ;;  %v5891_v63 = vcombine.high %v412_v53, %v416_v55 }
  0xe5   :  { %v464_v44 = vld [vmem:[#allocation2 + $0xaa8] sm:$0xff] }
  0xe7   :  { %2539 = vmatpush1.bf16.msra.mxu0 %v5832_v0  ;;  %2668 = vmatpush1.bf16.msra.mxu1 %v5834_v1  ;;  %v424_v0 = vld [vmem:[#allocation2 + $0x968] sm:$0xff]  ;;  %v5888_v1 = vcombine.low %v411_v51, %v415_v52 }
  0xe8   :  { %2540 = vmatprep.subr.bf16.mxu0 %v5841_v2  ;;  %2669 = vmatprep.subr.bf16.mxu1 %v5843_v6  ;;  %v5890_v2 = vcombine.low %v412_v53, %v416_v55  ;;  %v428_v6 = vld [vmem:[#allocation2 + $0x988] sm:$0xff]  ;;  %v5899_v7 = vcombine.high %v420_v62, %v424_v0 }
  0xe9   :  { %v472_v52 = vld [vmem:[#allocation2 + $0xae8] sm:$0xff] }
  0xeb   :  { %2541 = vmatpush1.bf16.msra.mxu0 %v5840_v8  ;;  %2670 = vmatpush1.bf16.msra.mxu1 %v5842_v10  ;;  %v432_v8 = vld [vmem:[#allocation2 + $0x9a8] sm:$0xff]  ;;  %v5898_v10 = vcombine.low %v420_v62, %v424_v0 }
  0xec   :  { %2542 = vmatprep.subr.bf16.mxu0 %v5849_v11  ;;  %2671 = vmatprep.subr.bf16.mxu1 %v5851_v16  ;;  %v5905_v11 = vcombine.high %v427_v4, %v431_v5  ;;  %v5907_v16 = vcombine.high %v428_v6, %v432_v8  ;;  %v488_v5 = vld [vmem:[#allocation2 + $0xb68] sm:$0xff] }
  0xef   :  { %2543 = vmatpush1.bf16.msra.mxu0 %v5848_v19  ;;  %2672 = vmatpush1.bf16.msra.mxu1 %v5850_v22  ;;  %v5906_v19 = vcombine.low %v428_v6, %v432_v8  ;;  %v447_v22 = vld [vmem:[#allocation2 + $0xa20] sm:$0xff] }
  0xf0   :  { %2555 = vmatprep.subr.bf16.mxu0 %v5857_v23  ;;  %2684 = vmatprep.subr.bf16.mxu1 %v5859_v28  ;;  %v444_v23 = vld [vmem:[#allocation2 + $0xa08] sm:$0xff]  ;;  %v5914_v28 = vcombine.low %v436_v14, %v440_v17  ;;  %v5921_v29 = vcombine.high %v443_v21, %v447_v22  ;;  %v5920_v36 = vcombine.low %v443_v21, %v447_v22 }
  0xf1   :  { %v5923_v34 = vcombine.high %v444_v23, %v448_v26  ;;  %v504_v22 = vld [vmem:[#allocation2 + $0xbe8] sm:$0xff] }
  0xf2   :  { %2545 = vmatmul.mubr.bf16.vlgmr.msra.gmra.mrb[0].mxu0 %v7244_v30  ;;  %2674 = vmatmul.mubr.bf16.vlgmr.msra.gmra.mrb[0].mxu1 %v7244_v30 }
  0xf3   :  { %2556 = vmatpush1.bf16.msra.mxu0 %v5856_v31  ;;  %2685 = vmatpush1.bf16.msra.mxu1 %v5858_v32  ;;  %v451_v31 = vld [vmem:[#allocation2 + $0xa40] sm:$0xff] }
  0xf4   :  { %2557 = vmatprep.subr.bf16.mxu0 %v5865_v33  ;;  %2686 = vmatprep.subr.bf16.mxu1 %v5867_v37  ;;  %v455_v32 = vld [vmem:[#allocation2 + $0xa60] sm:$0xff]  ;;  %v452_v33 = vld [vmem:[#allocation2 + $0xa48] sm:$0xff]  ;;  %v5922_v37 = vcombine.low %v444_v23, %v448_v26 }
  0xf5   :  { %2587 = vmatprep.mubr.bf16.mxu0 %v7246_v39  ;;  %2716 = vmatprep.mubr.bf16.mxu1 %v7246_v39  ;;  %v5929_v38 = vcombine.high %v451_v31, %v455_v32  ;;  %v5931_v43 = vcombine.high %v452_v33, %v456_v35  ;;  %v5928_v45 = vcombine.low %v451_v31, %v455_v32  ;;  %v109_v32 = vld [vmem:[%s7386_s0 + $0x20] sm:$0xff] }
  0xf7   :  { %2558 = vmatpush1.bf16.msra.mxu0 %v5864_v40  ;;  %2687 = vmatpush1.bf16.msra.mxu1 %v5866_v41  ;;  %v459_v40 = vld [vmem:[#allocation2 + $0xa80] sm:$0xff] }
  0xf8   :  { %2559 = vmatprep.subr.bf16.mxu0 %v5873_v42  ;;  %2688 = vmatprep.subr.bf16.mxu1 %v5875_v46  ;;  %v463_v41 = vld [vmem:[#allocation2 + $0xaa0] sm:$0xff]  ;;  %v460_v42 = vld [vmem:[#allocation2 + $0xa88] sm:$0xff]  ;;  %v5930_v46 = vcombine.low %v452_v33, %v456_v35  ;;  %v115_v33 = vld [vmem:[%s7386_s0 + $0x50] sm:$0xff] }
  0xf9   :  { %v5937_v47 = vcombine.high %v459_v40, %v463_v41  ;;  %v5939_v51 = vcombine.high %v460_v42, %v464_v44  ;;  %v5936_v53 = vcombine.low %v459_v40, %v463_v41  ;;  %v137_v40 = vld [vmem:[#allocation2 + $0x70] sm:$0xff]  ;;  %v134_v41 = vld [vmem:[#allocation2 + $0x58] sm:$0xff] }
  0xfb   :  { %2560 = vmatpush1.bf16.msra.mxu0 %v5872_v48  ;;  %2689 = vmatpush1.bf16.msra.mxu1 %v5874_v49  ;;  %v467_v48 = vld [vmem:[#allocation2 + $0xac0] sm:$0xff] }
  0xfc   :  { %2561 = vmatprep.subr.bf16.mxu0 %v5881_v50  ;;  %2690 = vmatprep.subr.bf16.mxu1 %v5883_v54  ;;  %v471_v49 = vld [vmem:[#allocation2 + $0xae0] sm:$0xff]  ;;  %v468_v50 = vld [vmem:[#allocation2 + $0xac8] sm:$0xff]  ;;  %v5938_v54 = vcombine.low %v460_v42, %v464_v44  ;;  %v7258_v44 = vpack.c.bf16 %v115_v33, %v109_v32 }
  0xfd   :  { %v5945_v55 = vcombine.high %v467_v48, %v471_v49  ;;  %v5947_v60 = vcombine.high %v468_v50, %v472_v52  ;;  %v5944_v62 = vcombine.low %v467_v48, %v471_v49  ;;  %v141_v48 = vld [vmem:[#allocation2 + $0x90] sm:$0xff] }
  0xfe   :  { %v145_v49 = vld [vmem:[#allocation2 + $0xb0] sm:$0xff] }
  0xff   :  { %2562 = vmatpush1.bf16.msra.mxu0 %v5880_v56  ;;  %2691 = vmatpush1.bf16.msra.mxu1 %v5882_v57  ;;  %v475_v56 = vld [vmem:[#allocation2 + $0xb00] sm:$0xff] }
 0x100   :  { %2563 = vmatprep.subr.bf16.mxu0 %v5889_v59  ;;  %2692 = vmatprep.subr.bf16.mxu1 %v5891_v63  ;;  %v479_v57 = vld [vmem:[#allocation2 + $0xb20] sm:$0xff]  ;;  %v476_v59 = vld [vmem:[#allocation2 + $0xb08] sm:$0xff]  ;;  %v5946_v63 = vcombine.low %v468_v50, %v472_v52  ;;  %v142_v50 = vld [vmem:[#allocation2 + $0x98] sm:$0xff] }
 0x101   :  { %v5953_v0 = vcombine.high %v475_v56, %v479_v57  ;;  %v5955_v4 = vcombine.high %v476_v59, %v480_v61  ;;  %v5952_v6 = vcombine.low %v475_v56, %v479_v57  ;;  %v146_v52 = vld [vmem:[#allocation2 + $0xb8] sm:$0xff]  ;;  %v149_v56 = vld [vmem:[#allocation2 + $0xd0] sm:$0xff] }
 0x102   :  { %v153_v57 = vld [vmem:[#allocation2 + $0xf0] sm:$0xff] }
 0x103   :  { %2564 = vmatpush1.bf16.msra.mxu0 %v5888_v1  ;;  %2693 = vmatpush1.bf16.msra.mxu1 %v5890_v2  ;;  %v483_v1 = vld [vmem:[#allocation2 + $0xb40] sm:$0xff] }
 0x104   :  { %2565 = vmatprep.subr.bf16.mxu0 %v5897_v3  ;;  %2694 = vmatprep.subr.bf16.mxu1 %v5899_v7  ;;  %v487_v2 = vld [vmem:[#allocation2 + $0xb60] sm:$0xff]  ;;  %v484_v3 = vld [vmem:[#allocation2 + $0xb48] sm:$0xff]  ;;  %v5954_v7 = vcombine.low %v476_v59, %v480_v61  ;;  %v150_v59 = vld [vmem:[#allocation2 + $0xd8] sm:$0xff] }
 0x105   :  { %v5961_v8 = vcombine.high %v483_v1, %v487_v2  ;;  %v5963_v12 = vcombine.high %v484_v3, %v488_v5  ;;  %v5960_v14 = vcombine.low %v483_v1, %v487_v2  ;;  %v154_v61 = vld [vmem:[#allocation2 + $0xf8] sm:$0xff]  ;;  %v157_v1 = vld [vmem:[#allocation2 + $0x110] sm:$0xff] }
 0x106   :  { %v161_v2 = vld [vmem:[#allocation2 + $0x130] sm:$0xff] }
 0x107   :  { %2566 = vmatpush1.bf16.msra.mxu0 %v5896_v9  ;;  %2695 = vmatpush1.bf16.msra.mxu1 %v5898_v10  ;;  %v491_v9 = vld [vmem:[#allocation2 + $0xb80] sm:$0xff] }
 0x108   :  { %2567 = vmatprep.subr.bf16.mxu0 %v5905_v11  ;;  %2696 = vmatprep.subr.bf16.mxu1 %v5907_v16  ;;  %v495_v10 = vld [vmem:[#allocation2 + $0xba0] sm:$0xff]  ;;  %v492_v11 = vld [vmem:[#allocation2 + $0xb88] sm:$0xff]  ;;  %v5962_v16 = vcombine.low %v484_v3, %v488_v5  ;;  %v158_v3 = vld [vmem:[#allocation2 + $0x118] sm:$0xff] }
 0x109   :  { %v5969_v17 = vcombine.high %v491_v9, %v495_v10  ;;  %v5971_v21 = vcombine.high %v492_v11, %v496_v13  ;;  %v5968_v23 = vcombine.low %v491_v9, %v495_v10  ;;  %v162_v5 = vld [vmem:[#allocation2 + $0x138] sm:$0xff]  ;;  %v165_v9 = vld [vmem:[#allocation2 + $0x150] sm:$0xff] }
 0x10a   :  { %v166_v10 = vld [vmem:[#allocation2 + $0x158] sm:$0xff] }
 0x10b   :  { %2568 = vmatpush1.bf16.msra.mxu0 %v5904_v18  ;;  %2697 = vmatpush1.bf16.msra.mxu1 %v5906_v19  ;;  %v499_v18 = vld [vmem:[#allocation2 + $0xbc0] sm:$0xff] }
 0x10c   :  { %2569 = vmatprep.subr.bf16.mxu0 %v5913_v20  ;;  %2698 = vmatprep.subr.bf16.mxu1 %v5915_v24  ;;  %v503_v19 = vld [vmem:[#allocation2 + $0xbe0] sm:$0xff]  ;;  %v500_v20 = vld [vmem:[#allocation2 + $0xbc8] sm:$0xff]  ;;  %v5970_v24 = vcombine.low %v492_v11, %v496_v13  ;;  %v5639_v11 = vcombine.high %v158_v3, %v162_v5  ;;  %v5636_v13 = vcombine.low %v157_v1, %v161_v2 }
 0x10d   :  { %v5977_v26 = vcombine.high %v499_v18, %v503_v19  ;;  %v5979_v31 = vcombine.high %v500_v20, %v504_v22  ;;  %v5976_v35 = vcombine.low %v499_v18, %v503_v19  ;;  %v177_v18 = vld [vmem:[#allocation2 + $0x1b0] sm:$0xff]  ;;  %v174_v19 = vld [vmem:[#allocation2 + $0x198] sm:$0xff] }
 0x10f   :  { %2570 = vmatpush1.bf16.msra.mxu0 %v5912_v27  ;;  %2699 = vmatpush1.bf16.msra.mxu1 %v5914_v28  ;;  %v125_v27 = vld [vmem:[#allocation2 + $0x10] sm:$0xff] }
 0x110   :  { %2571 = vmatprep.subr.bf16.mxu0 %v5921_v29  ;;  %2700 = vmatprep.subr.bf16.mxu1 %v5923_v34  ;;  %v129_v28 = vld [vmem:[#allocation2 + $0x30] sm:$0xff]  ;;  %v126_v29 = vld [vmem:[#allocation2 + $0x18] sm:$0xff] }
 0x111   :  { %v130_v34 = vld [vmem:[#allocation2 + $0x38] sm:$0xff] }
 0x112   :  { %v5607_v42 = vcombine.high %v126_v29, %v130_v34 }
 0x113   :  { %2572 = vmatpush1.bf16.msra.mxu0 %v5920_v36  ;;  %2701 = vmatpush1.bf16.msra.mxu1 %v5922_v37  ;;  %v5978_v36 = vcombine.low %v500_v20, %v504_v22  ;;  %v5605_v37 = vcombine.high %v125_v27, %v129_v28 }
 0x114   :  { %2573 = vmatprep.subr.bf16.mxu0 %v5929_v38  ;;  %2702 = vmatprep.subr.bf16.mxu1 %v5931_v43  ;;  %v133_v38 = vld [vmem:[#allocation2 + $0x50] sm:$0xff]  ;;  %v138_v43 = vld [vmem:[#allocation2 + $0x78] sm:$0xff] }
 0x117   :  { %2574 = vmatpush1.bf16.msra.mxu0 %v5928_v45  ;;  %2703 = vmatpush1.bf16.msra.mxu1 %v5930_v46  ;;  %v5604_v45 = vcombine.low %v125_v27, %v129_v28  ;;  %v5606_v46 = vcombine.low %v126_v29, %v130_v34  ;;  %v185_v27 = vld [vmem:[#allocation2 + $0x1f0] sm:$0xff]  ;;  %v182_v28 = vld [vmem:[#allocation2 + $0x1d8] sm:$0xff] }
 0x118   :  { %2575 = vmatprep.subr.bf16.mxu0 %v5937_v47  ;;  %2704 = vmatprep.subr.bf16.mxu1 %v5939_v51  ;;  %v5613_v47 = vcombine.high %v133_v38, %v137_v40  ;;  %v5615_v51 = vcombine.high %v134_v41, %v138_v43 }
 0x11b   :  { %2576 = vmatpush1.bf16.msra.mxu0 %v5936_v53  ;;  %2705 = vmatpush1.bf16.msra.mxu1 %v5938_v54  ;;  %v5612_v53 = vcombine.low %v133_v38, %v137_v40  ;;  %v5614_v54 = vcombine.low %v134_v41, %v138_v43  ;;  %v194_v40 = vld [vmem:[#allocation2 + $0x238] sm:$0xff] }
 0x11c   :  { %2577 = vmatprep.subr.bf16.mxu0 %v5945_v55  ;;  %2706 = vmatprep.subr.bf16.mxu1 %v5947_v60  ;;  %v5621_v55 = vcombine.high %v141_v48, %v145_v49  ;;  %v5623_v60 = vcombine.high %v142_v50, %v146_v52 }
 0x11f   :  { %2578 = vmatpush1.bf16.msra.mxu0 %v5944_v62  ;;  %2707 = vmatpush1.bf16.msra.mxu1 %v5946_v63  ;;  %v5620_v62 = vcombine.low %v141_v48, %v145_v49  ;;  %v5622_v63 = vcombine.low %v142_v50, %v146_v52  ;;  %v202_v49 = vld [vmem:[#allocation2 + $0x278] sm:$0xff] }
 0x120   :  { %2579 = vmatprep.subr.bf16.mxu0 %v5953_v0  ;;  %2708 = vmatprep.subr.bf16.mxu1 %v5955_v4  ;;  %v5629_v0 = vcombine.high %v149_v56, %v153_v57  ;;  %v5631_v4 = vcombine.high %v150_v59, %v154_v61 }
 0x123   :  { %2580 = vmatpush1.bf16.msra.mxu0 %v5952_v6  ;;  %2709 = vmatpush1.bf16.msra.mxu1 %v5954_v7  ;;  %v5628_v6 = vcombine.low %v149_v56, %v153_v57  ;;  %v5630_v7 = vcombine.low %v150_v59, %v154_v61  ;;  %v210_v57 = vld [vmem:[#allocation2 + $0x2b8] sm:$0xff] }
 0x124   :  { %2581 = vmatprep.subr.bf16.mxu0 %v5961_v8  ;;  %2710 = vmatprep.subr.bf16.mxu1 %v5963_v12  ;;  %v5637_v8 = vcombine.high %v157_v1, %v161_v2  ;;  %v170_v12 = vld [vmem:[#allocation2 + $0x178] sm:$0xff] }
 0x125   :  { %v5647_v20 = vcombine.high %v166_v10, %v170_v12  ;;  %v218_v2 = vld [vmem:[#allocation2 + $0x2f8] sm:$0xff] }
 0x127   :  { %2582 = vmatpush1.bf16.msra.mxu0 %v5960_v14  ;;  %2711 = vmatpush1.bf16.msra.mxu1 %v5962_v16  ;;  %v5638_v14 = vcombine.low %v158_v3, %v162_v5 }
 0x128   :  { %2583 = vmatprep.subr.bf16.mxu0 %v5969_v17  ;;  %2712 = vmatprep.subr.bf16.mxu1 %v5971_v21  ;;  %v173_v17 = vld [vmem:[#allocation2 + $0x190] sm:$0xff]  ;;  %v178_v21 = vld [vmem:[#allocation2 + $0x1b8] sm:$0xff] }
 0x129   :  { %v5655_v29 = vcombine.high %v174_v19, %v178_v21  ;;  %v5652_v32 = vcombine.low %v173_v17, %v177_v18  ;;  %v5654_v33 = vcombine.low %v174_v19, %v178_v21 }
 0x12b   :  { %2584 = vmatpush1.bf16.msra.mxu0 %v5968_v23  ;;  %2713 = vmatpush1.bf16.msra.mxu1 %v5970_v24  ;;  %v5646_v23 = vcombine.low %v166_v10, %v170_v12  ;;  %v5653_v24 = vcombine.high %v173_v17, %v177_v18  ;;  %v234_v18 = vld [vmem:[#allocation2 + $0x378] sm:$0xff] }
 0x12c   :  { %2585 = vmatprep.subr.bf16.mxu0 %v5977_v26  ;;  %2714 = vmatprep.subr.bf16.mxu1 %v5979_v31  ;;  %v181_v26 = vld [vmem:[#allocation2 + $0x1d0] sm:$0xff]  ;;  %v186_v31 = vld [vmem:[#allocation2 + $0x1f8] sm:$0xff] }
 0x12d   :  { %v5661_v34 = vcombine.high %v181_v26, %v185_v27  ;;  %v5663_v38 = vcombine.high %v182_v28, %v186_v31  ;;  %v5660_v41 = vcombine.low %v181_v26, %v185_v27  ;;  %v242_v27 = vld [vmem:[#allocation2 + $0x3b8] sm:$0xff] }
 0x12f   :  { %2586 = vmatpush1.bf16.msra.mxu0 %v5976_v35  ;;  %2715 = vmatpush1.bf16.msra.mxu1 %v5978_v36  ;;  %v189_v35 = vld [vmem:[#allocation2 + $0x210] sm:$0xff] }
 0x130   :  { %2727 = vmatprep.subr.bf16.mxu0 %v5605_v37  ;;  %2856 = vmatprep.subr.bf16.mxu1 %v5607_v42  ;;  %v193_v36 = vld [vmem:[#allocation2 + $0x230] sm:$0xff]  ;;  %v190_v37 = vld [vmem:[#allocation2 + $0x218] sm:$0xff]  ;;  %v5662_v42 = vcombine.low %v182_v28, %v186_v31 }
 0x131   :  { %v5669_v43 = vcombine.high %v189_v35, %v193_v36  ;;  %v5671_v48 = vcombine.high %v190_v37, %v194_v40  ;;  %v5668_v50 = vcombine.low %v189_v35, %v193_v36  ;;  %v250_v36 = vld [vmem:[#allocation2 + $0x3f8] sm:$0xff] }
 0x132   :  { %2588 = vmatmul.mubr.bf16.vlgmr.msra.gmra.mrb[0].mxu0 %v7258_v44  ;;  %2717 = vmatmul.mubr.bf16.vlgmr.msra.gmra.mrb[0].mxu1 %v7258_v44 }
 0x133   :  { %2728 = vmatpush1.bf16.msra.mxu0 %v5604_v45  ;;  %2857 = vmatpush1.bf16.msra.mxu1 %v5606_v46  ;;  %v197_v45 = vld [vmem:[#allocation2 + $0x250] sm:$0xff] }
 0x134   :  { %2729 = vmatprep.subr.bf16.mxu0 %v5613_v47  ;;  %2858 = vmatprep.subr.bf16.mxu1 %v5615_v51  ;;  %v201_v46 = vld [vmem:[#allocation2 + $0x270] sm:$0xff]  ;;  %v198_v47 = vld [vmem:[#allocation2 + $0x258] sm:$0xff]  ;;  %v5670_v51 = vcombine.low %v190_v37, %v194_v40 }
 0x135   :  { %2759 = vmatprep.mubr.bf16.mxu0 %v7208_v58  ;;  %2888 = vmatprep.mubr.bf16.mxu1 %v7208_v58  ;;  %v169_v58 = vld [vmem:[#allocation2 + $0x170] sm:$0xff]  ;;  %v5677_v52 = vcombine.high %v197_v45, %v201_v46  ;;  %v5679_v56 = vcombine.high %v198_v47, %v202_v49  ;;  %v5676_v59 = vcombine.low %v197_v45, %v201_v46  ;;  %v258_v46 = vld [vmem:[#allocation2 + $0x438] sm:$0xff] }
 0x136   :  { %v5645_v16 = vcombine.high %v165_v9, %v169_v58  ;;  %v5644_v22 = vcombine.low %v165_v9, %v169_v58  ;;  %v226_v58 = vld [vmem:[#allocation2 + $0x338] sm:$0xff] }
 0x137   :  { %2730 = vmatpush1.bf16.msra.mxu0 %v5612_v53  ;;  %2859 = vmatpush1.bf16.msra.mxu1 %v5614_v54  ;;  %v205_v53 = vld [vmem:[#allocation2 + $0x290] sm:$0xff] }
 0x138   :  { %2731 = vmatprep.subr.bf16.mxu0 %v5621_v55  ;;  %2860 = vmatprep.subr.bf16.mxu1 %v5623_v60  ;;  %v209_v54 = vld [vmem:[#allocation2 + $0x2b0] sm:$0xff]  ;;  %v206_v55 = vld [vmem:[#allocation2 + $0x298] sm:$0xff]  ;;  %v5678_v60 = vcombine.low %v198_v47, %v202_v49 }
 0x139   :  { %v5685_v61 = vcombine.high %v205_v53, %v209_v54  ;;  %v5687_v1 = vcombine.high %v206_v55, %v210_v57  ;;  %v5684_v3 = vcombine.low %v205_v53, %v209_v54  ;;  %v266_v54 = vld [vmem:[#allocation2 + $0x478] sm:$0xff] }
 0x13b   :  { %2732 = vmatpush1.bf16.msra.mxu0 %v5620_v62  ;;  %2861 = vmatpush1.bf16.msra.mxu1 %v5622_v63  ;;  %v213_v62 = vld [vmem:[#allocation2 + $0x2d0] sm:$0xff] }
 0x13c   :  { %2733 = vmatprep.subr.bf16.mxu0 %v5629_v0  ;;  %2862 = vmatprep.subr.bf16.mxu1 %v5631_v4  ;;  %v217_v63 = vld [vmem:[#allocation2 + $0x2f0] sm:$0xff]  ;;  %v214_v0 = vld [vmem:[#allocation2 + $0x2d8] sm:$0xff]  ;;  %v5686_v4 = vcombine.low %v206_v55, %v210_v57 }
 0x13d   :  { %v5693_v5 = vcombine.high %v213_v62, %v217_v63  ;;  %v5695_v9 = vcombine.high %v214_v0, %v218_v2  ;;  %v5692_v10 = vcombine.low %v213_v62, %v217_v63  ;;  %v270_v62 = vld [vmem:[#allocation2 + $0x498] sm:$0xff] }
 0x13e   :  { %v274_v63 = vld [vmem:[#allocation2 + $0x4b8] sm:$0xff] }
 0x13f   :  { %2734 = vmatpush1.bf16.msra.mxu0 %v5628_v6  ;;  %2863 = vmatpush1.bf16.msra.mxu1 %v5630_v7  ;;  %v221_v6 = vld [vmem:[#allocation2 + $0x310] sm:$0xff] }
 0x140   :  { %2735 = vmatprep.subr.bf16.mxu0 %v5637_v8  ;;  %2864 = vmatprep.subr.bf16.mxu1 %v5639_v11  ;;  %v225_v7 = vld [vmem:[#allocation2 + $0x330] sm:$0xff]  ;;  %v222_v8 = vld [vmem:[#allocation2 + $0x318] sm:$0xff]  ;;  %v5694_v11 = vcombine.low %v214_v0, %v218_v2 }
 0x141   :  { %v5701_v12 = vcombine.high %v221_v6, %v225_v7  ;;  %v5703_v17 = vcombine.high %v222_v8, %v226_v58  ;;  %v5700_v19 = vcombine.low %v221_v6, %v225_v7  ;;  %v278_v6 = vld [vmem:[#allocation2 + $0x4d8] sm:$0xff] }
 0x142   :  { %v282_v7 = vld [vmem:[#allocation2 + $0x4f8] sm:$0xff] }
 0x143   :  { %2736 = vmatpush1.bf16.msra.mxu0 %v5636_v13  ;;  %2865 = vmatpush1.bf16.msra.mxu1 %v5638_v14  ;;  %v229_v13 = vld [vmem:[#allocation2 + $0x350] sm:$0xff] }
 0x144   :  { %2737 = vmatprep.subr.bf16.mxu0 %v5645_v16  ;;  %2866 = vmatprep.subr.bf16.mxu1 %v5647_v20  ;;  %v233_v14 = vld [vmem:[#allocation2 + $0x370] sm:$0xff]  ;;  %v230_v16 = vld [vmem:[#allocation2 + $0x358] sm:$0xff]  ;;  %v5702_v20 = vcombine.low %v222_v8, %v226_v58  ;;  %v5759_v58 = vcombine.high %v278_v6, %v282_v7 }
 0x145   :  { %v5709_v21 = vcombine.high %v229_v13, %v233_v14  ;;  %v5711_v26 = vcombine.high %v230_v16, %v234_v18  ;;  %v5708_v28 = vcombine.low %v229_v13, %v233_v14  ;;  %v290_v13 = vld [vmem:[#allocation2 + $0x538] sm:$0xff] }
 0x147   :  { %2738 = vmatpush1.bf16.msra.mxu0 %v5644_v22  ;;  %2867 = vmatpush1.bf16.msra.mxu1 %v5646_v23  ;;  %v237_v22 = vld [vmem:[#allocation2 + $0x390] sm:$0xff] }
 0x148   :  { %2739 = vmatprep.subr.bf16.mxu0 %v5653_v24  ;;  %2868 = vmatprep.subr.bf16.mxu1 %v5655_v29  ;;  %v241_v23 = vld [vmem:[#allocation2 + $0x3b0] sm:$0xff]  ;;  %v238_v24 = vld [vmem:[#allocation2 + $0x398] sm:$0xff]  ;;  %v5710_v29 = vcombine.low %v230_v16, %v234_v18  ;;  %v5758_v16 = vcombine.low %v278_v6, %v282_v7 }
 0x149   :  { %v5717_v31 = vcombine.high %v237_v22, %v241_v23  ;;  %v5719_v35 = vcombine.high %v238_v24, %v242_v27  ;;  %v5716_v37 = vcombine.low %v237_v22, %v241_v23  ;;  %v293_v18 = vld [vmem:[#allocation2 + $0x550] sm:$0xff] }
 0x14a   :  { %v341_v7 = vld [vmem:[#allocation2 + $0x6d0] sm:$0xff] }
 0x14b   :  { %2740 = vmatpush1.bf16.msra.mxu0 %v5652_v32  ;;  %2869 = vmatpush1.bf16.msra.mxu1 %v5654_v33  ;;  %v245_v32 = vld [vmem:[#allocation2 + $0x3d0] sm:$0xff] }
 0x14c   :  { %2741 = vmatprep.subr.bf16.mxu0 %v5661_v34  ;;  %2870 = vmatprep.subr.bf16.mxu1 %v5663_v38  ;;  %v249_v33 = vld [vmem:[#allocation2 + $0x3f0] sm:$0xff]  ;;  %v246_v34 = vld [vmem:[#allocation2 + $0x3d8] sm:$0xff]  ;;  %v5718_v38 = vcombine.low %v238_v24, %v242_v27 }
 0x14d   :  { %v5725_v40 = vcombine.high %v245_v32, %v249_v33  ;;  %v5727_v45 = vcombine.high %v246_v34, %v250_v36  ;;  %v5724_v47 = vcombine.low %v245_v32, %v249_v33  ;;  %v301_v27 = vld [vmem:[#allocation2 + $0x590] sm:$0xff] }
 0x14f   :  { %2742 = vmatpush1.bf16.msra.mxu0 %v5660_v41  ;;  %2871 = vmatpush1.bf16.msra.mxu1 %v5662_v42  ;;  %v253_v41 = vld [vmem:[#allocation2 + $0x410] sm:$0xff] }
 0x150   :  { %2743 = vmatprep.subr.bf16.mxu0 %v5669_v43  ;;  %2872 = vmatprep.subr.bf16.mxu1 %v5671_v48  ;;  %v257_v42 = vld [vmem:[#allocation2 + $0x430] sm:$0xff]  ;;  %v254_v43 = vld [vmem:[#allocation2 + $0x418] sm:$0xff]  ;;  %v5726_v48 = vcombine.low %v246_v34, %v250_v36 }
 0x151   :  { %v5733_v49 = vcombine.high %v253_v41, %v257_v42  ;;  %v5735_v53 = vcombine.high %v254_v43, %v258_v46  ;;  %v5732_v55 = vcombine.low %v253_v41, %v257_v42  ;;  %v309_v36 = vld [vmem:[#allocation2 + $0x5d0] sm:$0xff] }
 0x153   :  { %2744 = vmatpush1.bf16.msra.mxu0 %v5668_v50  ;;  %2873 = vmatpush1.bf16.msra.mxu1 %v5670_v51  ;;  %v261_v50 = vld [vmem:[#allocation2 + $0x450] sm:$0xff] }
 0x154   :  { %2745 = vmatprep.subr.bf16.mxu0 %v5677_v52  ;;  %2874 = vmatprep.subr.bf16.mxu1 %v5679_v56  ;;  %v265_v51 = vld [vmem:[#allocation2 + $0x470] sm:$0xff]  ;;  %v262_v52 = vld [vmem:[#allocation2 + $0x458] sm:$0xff]  ;;  %v5734_v56 = vcombine.low %v254_v43, %v258_v46 }
 0x155   :  { %v5741_v57 = vcombine.high %v261_v50, %v265_v51  ;;  %v5740_v0 = vcombine.low %v261_v50, %v265_v51  ;;  %v317_v46 = vld [vmem:[#allocation2 + $0x610] sm:$0xff] }
 0x157   :  { %2746 = vmatpush1.bf16.msra.mxu0 %v5676_v59  ;;  %2875 = vmatpush1.bf16.msra.mxu1 %v5678_v60  ;;  %v5743_v59 = vcombine.high %v262_v52, %v266_v54  ;;  %v269_v60 = vld [vmem:[#allocation2 + $0x490] sm:$0xff] }
 0x158   :  { %2747 = vmatprep.subr.bf16.mxu0 %v5685_v61  ;;  %2876 = vmatprep.subr.bf16.mxu1 %v5687_v1  ;;  %v273_v61 = vld [vmem:[#allocation2 + $0x4b0] sm:$0xff]  ;;  %v5742_v1 = vcombine.low %v262_v52, %v266_v54 }
 0x159   :  { %v5749_v2 = vcombine.high %v269_v60, %v273_v61  ;;  %v5748_v8 = vcombine.low %v269_v60, %v273_v61  ;;  %v325_v54 = vld [vmem:[#allocation2 + $0x650] sm:$0xff] }
 0x15b   :  { %2748 = vmatpush1.bf16.msra.mxu0 %v5684_v3  ;;  %2877 = vmatpush1.bf16.msra.mxu1 %v5686_v4  ;;  %v5751_v3 = vcombine.high %v270_v62, %v274_v63  ;;  %v277_v4 = vld [vmem:[#allocation2 + $0x4d0] sm:$0xff] }
 0x15c   :  { %2749 = vmatprep.subr.bf16.mxu0 %v5693_v5  ;;  %2878 = vmatprep.subr.bf16.mxu1 %v5695_v9  ;;  %v281_v5 = vld [vmem:[#allocation2 + $0x4f0] sm:$0xff] }
 0x15d   :  { %v5757_v9 = vcombine.high %v277_v4, %v281_v5  ;;  %v5756_v14 = vcombine.low %v277_v4, %v281_v5 }
 0x15f   :  { %2750 = vmatpush1.bf16.msra.mxu0 %v5692_v10  ;;  %2879 = vmatpush1.bf16.msra.mxu1 %v5694_v11  ;;  %v285_v10 = vld [vmem:[#allocation2 + $0x510] sm:$0xff] }
 0x160   :  { %2751 = vmatprep.subr.bf16.mxu0 %v5701_v12  ;;  %2880 = vmatprep.subr.bf16.mxu1 %v5703_v17  ;;  %v289_v11 = vld [vmem:[#allocation2 + $0x530] sm:$0xff]  ;;  %v286_v12 = vld [vmem:[#allocation2 + $0x518] sm:$0xff] }
 0x161   :  { %v5765_v17 = vcombine.high %v285_v10, %v289_v11  ;;  %v5764_v22 = vcombine.low %v285_v10, %v289_v11  ;;  %v5766_v23 = vcombine.low %v286_v12, %v290_v13 }
 0x163   :  { %2752 = vmatpush1.bf16.msra.mxu0 %v5700_v19  ;;  %2881 = vmatpush1.bf16.msra.mxu1 %v5702_v20  ;;  %v297_v19 = vld [vmem:[#allocation2 + $0x570] sm:$0xff]  ;;  %v294_v20 = vld [vmem:[#allocation2 + $0x558] sm:$0xff] }
 0x164   :  { %2753 = vmatprep.subr.bf16.mxu0 %v5709_v21  ;;  %2882 = vmatprep.subr.bf16.mxu1 %v5711_v26  ;;  %v298_v21 = vld [vmem:[#allocation2 + $0x578] sm:$0xff]  ;;  %v5773_v24 = vcombine.high %v293_v18, %v297_v19  ;;  %v5772_v32 = vcombine.low %v293_v18, %v297_v19 }
 0x165   :  { %v5775_v26 = vcombine.high %v294_v20, %v298_v21  ;;  %v5774_v33 = vcombine.low %v294_v20, %v298_v21  ;;  %v357_v21 = vld [vmem:[#allocation2 + $0x750] sm:$0xff] }
 0x167   :  { %2754 = vmatpush1.bf16.msra.mxu0 %v5708_v28  ;;  %2883 = vmatpush1.bf16.msra.mxu1 %v5710_v29  ;;  %v305_v28 = vld [vmem:[#allocation2 + $0x5b0] sm:$0xff]  ;;  %v302_v29 = vld [vmem:[#allocation2 + $0x598] sm:$0xff] }
 0x168   :  { %2755 = vmatprep.subr.bf16.mxu0 %v5717_v31  ;;  %2884 = vmatprep.subr.bf16.mxu1 %v5719_v35  ;;  %v306_v31 = vld [vmem:[#allocation2 + $0x5b8] sm:$0xff]  ;;  %v5781_v34 = vcombine.high %v301_v27, %v305_v28  ;;  %v5780_v41 = vcombine.low %v301_v27, %v305_v28 }
 0x169   :  { %v5783_v35 = vcombine.high %v302_v29, %v306_v31  ;;  %v5782_v42 = vcombine.low %v302_v29, %v306_v31  ;;  %v365_v31 = vld [vmem:[#allocation2 + $0x790] sm:$0xff] }
 0x16b   :  { %2756 = vmatpush1.bf16.msra.mxu0 %v5716_v37  ;;  %2885 = vmatpush1.bf16.msra.mxu1 %v5718_v38  ;;  %v313_v37 = vld [vmem:[#allocation2 + $0x5f0] sm:$0xff]  ;;  %v310_v38 = vld [vmem:[#allocation2 + $0x5d8] sm:$0xff] }
 0x16c   :  { %2757 = vmatprep.subr.bf16.mxu0 %v5725_v40  ;;  %2886 = vmatprep.subr.bf16.mxu1 %v5727_v45  ;;  %v314_v40 = vld [vmem:[#allocation2 + $0x5f8] sm:$0xff]  ;;  %v5789_v43 = vcombine.high %v309_v36, %v313_v37  ;;  %v5788_v50 = vcombine.low %v309_v36, %v313_v37 }
 0x16d   :  { %v5791_v45 = vcombine.high %v310_v38, %v314_v40  ;;  %v5790_v51 = vcombine.low %v310_v38, %v314_v40  ;;  %v373_v40 = vld [vmem:[#allocation2 + $0x7d0] sm:$0xff] }
 0x16f   :  { %2758 = vmatpush1.bf16.msra.mxu0 %v5724_v47  ;;  %2887 = vmatpush1.bf16.msra.mxu1 %v5726_v48  ;;  %v321_v47 = vld [vmem:[#allocation2 + $0x630] sm:$0xff]  ;;  %v318_v48 = vld [vmem:[#allocation2 + $0x618] sm:$0xff] }
 0x170   :  { %2770 = vmatprep.subr.bf16.mxu0 %v5733_v49  ;;  %2899 = vmatprep.subr.bf16.mxu1 %v5735_v53  ;;  %v322_v49 = vld [vmem:[#allocation2 + $0x638] sm:$0xff]  ;;  %v5797_v52 = vcombine.high %v317_v46, %v321_v47 }
 0x171   :  { %v5799_v53 = vcombine.high %v318_v48, %v322_v49  ;;  %v5798_v60 = vcombine.low %v318_v48, %v322_v49  ;;  %v381_v49 = vld [vmem:[#allocation2 + $0x810] sm:$0xff] }
 0x172   :  { %2760 = vmatmul.mubr.bf16.vlgmr.msra.gmra.mrb[4].mxu0 %v7218_v15  ;;  %2889 = vmatmul.mubr.bf16.vlgmr.msra.gmra.mrb[4].mxu1 %v7218_v15  ;;  %v5750_v15 = vcombine.low %v270_v62, %v274_v63  ;;  %v333_v63 = vld [vmem:[#allocation2 + $0x690] sm:$0xff] }
 0x173   :  { %2771 = vmatpush1.bf16.msra.mxu0 %v5732_v55  ;;  %2900 = vmatpush1.bf16.msra.mxu1 %v5734_v56  ;;  %v329_v55 = vld [vmem:[#allocation2 + $0x670] sm:$0xff]  ;;  %v326_v56 = vld [vmem:[#allocation2 + $0x658] sm:$0xff] }
 0x174   :  { %2772 = vmatprep.subr.bf16.mxu0 %v5741_v57  ;;  %2901 = vmatprep.subr.bf16.mxu1 %v5743_v59  ;;  %v330_v57 = vld [vmem:[#allocation2 + $0x678] sm:$0xff]  ;;  %v5796_v59 = vcombine.low %v317_v46, %v321_v47  ;;  %v5805_v61 = vcombine.high %v325_v54, %v329_v55 }
 0x175   :  { %2802 = vmatprep.mubr.bf16.mxu0 %v7226_v25  ;;  %2931 = vmatprep.mubr.bf16.mxu1 %v7226_v25  ;;  %v5767_v25 = vcombine.high %v286_v12, %v290_v13  ;;  %v5807_v62 = vcombine.high %v326_v56, %v330_v57  ;;  %v5806_v4 = vcombine.low %v326_v56, %v330_v57  ;;  %v349_v13 = vld [vmem:[#allocation2 + $0x710] sm:$0xff] }
 0x176   :  { %v389_v57 = vld [vmem:[#allocation2 + $0x850] sm:$0xff] }
 0x177   :  { %2773 = vmatpush1.bf16.msra.mxu0 %v5740_v0  ;;  %2902 = vmatpush1.bf16.msra.mxu1 %v5742_v1  ;;  %v337_v0 = vld [vmem:[#allocation2 + $0x6b0] sm:$0xff]  ;;  %v334_v1 = vld [vmem:[#allocation2 + $0x698] sm:$0xff] }
 0x178   :  { %2774 = vmatprep.subr.bf16.mxu0 %v5749_v2  ;;  %2903 = vmatprep.subr.bf16.mxu1 %v5751_v3  ;;  %v338_v2 = vld [vmem:[#allocation2 + $0x6b8] sm:$0xff]  ;;  %v5804_v3 = vcombine.low %v325_v54, %v329_v55  ;;  %v5813_v5 = vcombine.high %v333_v63, %v337_v0 }
 0x179   :  { %v5815_v6 = vcombine.high %v334_v1, %v338_v2  ;;  %v5814_v10 = vcombine.low %v334_v1, %v338_v2  ;;  %v397_v2 = vld [vmem:[#allocation2 + $0x890] sm:$0xff] }
 0x17b   :  { %2775 = vmatpush1.bf16.msra.mxu0 %v5748_v8  ;;  %2904 = vmatpush1.bf16.msra.mxu1 %v5750_v15  ;;  %v345_v8 = vld [vmem:[#allocation2 + $0x6f0] sm:$0xff]  ;;  %v342_v15 = vld [vmem:[#allocation2 + $0x6d8] sm:$0xff] }
 0x17c   :  { %2776 = vmatprep.subr.bf16.mxu0 %v5757_v9  ;;  %2905 = vmatprep.subr.bf16.mxu1 %v5759_v58  ;;  %v346_v9 = vld [vmem:[#allocation2 + $0x6f8] sm:$0xff]  ;;  %v5812_v58 = vcombine.low %v333_v63, %v337_v0  ;;  %v5821_v11 = vcombine.high %v341_v7, %v345_v8 }
 0x17d   :  { %v5823_v12 = vcombine.high %v342_v15, %v346_v9  ;;  %v5822_v18 = vcombine.low %v342_v15, %v346_v9  ;;  %v405_v9 = vld [vmem:[#allocation2 + $0x8d0] sm:$0xff] }
 0x17f   :  { %2777 = vmatpush1.bf16.msra.mxu0 %v5756_v14  ;;  %2906 = vmatpush1.bf16.msra.mxu1 %v5758_v16  ;;  %v353_v14 = vld [vmem:[#allocation2 + $0x730] sm:$0xff]  ;;  %v350_v16 = vld [vmem:[#allocation2 + $0x718] sm:$0xff] }
 0x180   :  { %2778 = vmatprep.subr.bf16.mxu0 %v5765_v17  ;;  %2907 = vmatprep.subr.bf16.mxu1 %v5767_v25  ;;  %v354_v17 = vld [vmem:[#allocation2 + $0x738] sm:$0xff]  ;;  %v5820_v25 = vcombine.low %v341_v7, %v345_v8  ;;  %v5829_v19 = vcombine.high %v349_v13, %v353_v14 }
 0x181   :  { %v5831_v20 = vcombine.high %v350_v16, %v354_v17  ;;  %v5830_v27 = vcombine.low %v350_v16, %v354_v17  ;;  %v413_v16 = vld [vmem:[#allocation2 + $0x910] sm:$0xff] }
 0x182   :  { %v417_v17 = vld [vmem:[#allocation2 + $0x930] sm:$0xff] }
 0x183   :  { %2779 = vmatpush1.bf16.msra.mxu0 %v5764_v22  ;;  %2908 = vmatpush1.bf16.msra.mxu1 %v5766_v23  ;;  %v361_v22 = vld [vmem:[#allocation2 + $0x770] sm:$0xff]  ;;  %v358_v23 = vld [vmem:[#allocation2 + $0x758] sm:$0xff] }
 0x184   :  { %2780 = vmatprep.subr.bf16.mxu0 %v5773_v24  ;;  %2909 = vmatprep.subr.bf16.mxu1 %v5775_v26  ;;  %v362_v24 = vld [vmem:[#allocation2 + $0x778] sm:$0xff]  ;;  %v5828_v26 = vcombine.low %v349_v13, %v353_v14  ;;  %v5837_v28 = vcombine.high %v357_v21, %v361_v22 }
 0x185   :  { %v5839_v29 = vcombine.high %v358_v23, %v362_v24  ;;  %v5838_v36 = vcombine.low %v358_v23, %v362_v24  ;;  %v425_v23 = vld [vmem:[#allocation2 + $0x970] sm:$0xff]  ;;  %v422_v24 = vld [vmem:[#allocation2 + $0x958] sm:$0xff] }
 0x187   :  { %2781 = vmatpush1.bf16.msra.mxu0 %v5772_v32  ;;  %2910 = vmatpush1.bf16.msra.mxu1 %v5774_v33  ;;  %v369_v32 = vld [vmem:[#allocation2 + $0x7b0] sm:$0xff]  ;;  %v366_v33 = vld [vmem:[#allocation2 + $0x798] sm:$0xff] }
 0x188   :  { %2782 = vmatprep.subr.bf16.mxu0 %v5781_v34  ;;  %2911 = vmatprep.subr.bf16.mxu1 %v5783_v35  ;;  %v370_v34 = vld [vmem:[#allocation2 + $0x7b8] sm:$0xff]  ;;  %v5836_v35 = vcombine.low %v357_v21, %v361_v22  ;;  %v5845_v37 = vcombine.high %v365_v31, %v369_v32  ;;  %v5893_v21 = vcombine.high %v413_v16, %v417_v17  ;;  %v421_v22 = vld [vmem:[#allocation2 + $0x950] sm:$0xff] }
 0x189   :  { %v5847_v38 = vcombine.high %v366_v33, %v370_v34  ;;  %v5846_v46 = vcombine.low %v366_v33, %v370_v34  ;;  %v433_v33 = vld [vmem:[#allocation2 + $0x9b0] sm:$0xff]  ;;  %v430_v34 = vld [vmem:[#allocation2 + $0x998] sm:$0xff] }
 0x18b   :  { %2783 = vmatpush1.bf16.msra.mxu0 %v5780_v41  ;;  %2912 = vmatpush1.bf16.msra.mxu1 %v5782_v42  ;;  %v377_v41 = vld [vmem:[#allocation2 + $0x7f0] sm:$0xff]  ;;  %v374_v42 = vld [vmem:[#allocation2 + $0x7d8] sm:$0xff] }
 0x18c   :  { %2784 = vmatprep.subr.bf16.mxu0 %v5789_v43  ;;  %2913 = vmatprep.subr.bf16.mxu1 %v5791_v45  ;;  %v378_v43 = vld [vmem:[#allocation2 + $0x7f8] sm:$0xff]  ;;  %v5844_v45 = vcombine.low %v365_v31, %v369_v32  ;;  %v5853_v47 = vcombine.high %v373_v40, %v377_v41  ;;  %v429_v32 = vld [vmem:[#allocation2 + $0x990] sm:$0xff] }
 0x18d   :  { %v5855_v48 = vcombine.high %v374_v42, %v378_v43  ;;  %v5854_v54 = vcombine.low %v374_v42, %v378_v43  ;;  %v441_v42 = vld [vmem:[#allocation2 + $0x9f0] sm:$0xff]  ;;  %v438_v43 = vld [vmem:[#allocation2 + $0x9d8] sm:$0xff] }
 0x18f   :  { %2785 = vmatpush1.bf16.msra.mxu0 %v5788_v50  ;;  %2914 = vmatpush1.bf16.msra.mxu1 %v5790_v51  ;;  %v385_v50 = vld [vmem:[#allocation2 + $0x830] sm:$0xff]  ;;  %v382_v51 = vld [vmem:[#allocation2 + $0x818] sm:$0xff] }
 0x190   :  { %2786 = vmatprep.subr.bf16.mxu0 %v5797_v52  ;;  %2915 = vmatprep.subr.bf16.mxu1 %v5799_v53  ;;  %v386_v52 = vld [vmem:[#allocation2 + $0x838] sm:$0xff]  ;;  %v5852_v53 = vcombine.low %v373_v40, %v377_v41  ;;  %v5861_v55 = vcombine.high %v381_v49, %v385_v50  ;;  %v437_v41 = vld [vmem:[#allocation2 + $0x9d0] sm:$0xff] }
 0x191   :  { %v5863_v56 = vcombine.high %v382_v51, %v386_v52  ;;  %v5862_v63 = vcombine.low %v382_v51, %v386_v52  ;;  %v449_v51 = vld [vmem:[#allocation2 + $0xa30] sm:$0xff]  ;;  %v446_v52 = vld [vmem:[#allocation2 + $0xa18] sm:$0xff] }
 0x193   :  { %2787 = vmatpush1.bf16.msra.mxu0 %v5796_v59  ;;  %2916 = vmatpush1.bf16.msra.mxu1 %v5798_v60  ;;  %v393_v59 = vld [vmem:[#allocation2 + $0x870] sm:$0xff]  ;;  %v390_v60 = vld [vmem:[#allocation2 + $0x858] sm:$0xff] }
 0x194   :  { %2788 = vmatprep.subr.bf16.mxu0 %v5805_v61  ;;  %2917 = vmatprep.subr.bf16.mxu1 %v5807_v62  ;;  %v394_v61 = vld [vmem:[#allocation2 + $0x878] sm:$0xff]  ;;  %v5860_v62 = vcombine.low %v381_v49, %v385_v50  ;;  %v5869_v0 = vcombine.high %v389_v57, %v393_v59  ;;  %v445_v50 = vld [vmem:[#allocation2 + $0xa10] sm:$0xff] }
 0x195   :  { %v5871_v1 = vcombine.high %v390_v60, %v394_v61  ;;  %v5870_v7 = vcombine.low %v390_v60, %v394_v61  ;;  %v457_v60 = vld [vmem:[#allocation2 + $0xa70] sm:$0xff]  ;;  %v454_v61 = vld [vmem:[#allocation2 + $0xa58] sm:$0xff] }
 0x197   :  { %2789 = vmatpush1.bf16.msra.mxu0 %v5804_v3  ;;  %2918 = vmatpush1.bf16.msra.mxu1 %v5806_v4  ;;  %v401_v3 = vld [vmem:[#allocation2 + $0x8b0] sm:$0xff]  ;;  %v398_v4 = vld [vmem:[#allocation2 + $0x898] sm:$0xff] }
 0x198   :  { %2790 = vmatprep.subr.bf16.mxu0 %v5813_v5  ;;  %2919 = vmatprep.subr.bf16.mxu1 %v5815_v6  ;;  %v402_v5 = vld [vmem:[#allocation2 + $0x8b8] sm:$0xff]  ;;  %v5868_v6 = vcombine.low %v389_v57, %v393_v59  ;;  %v5877_v8 = vcombine.high %v397_v2, %v401_v3  ;;  %v453_v59 = vld [vmem:[#allocation2 + $0xa50] sm:$0xff] }
 0x199   :  { %v5879_v15 = vcombine.high %v398_v4, %v402_v5 }
 0x19b   :  { %2791 = vmatpush1.bf16.msra.mxu0 %v5812_v58  ;;  %2920 = vmatpush1.bf16.msra.mxu1 %v5814_v10  ;;  %v409_v58 = vld [vmem:[#allocation2 + $0x8f0] sm:$0xff]  ;;  %v406_v10 = vld [vmem:[#allocation2 + $0x8d8] sm:$0xff] }
 0x19c   :  { %2792 = vmatprep.subr.bf16.mxu0 %v5821_v11  ;;  %2921 = vmatprep.subr.bf16.mxu1 %v5823_v12  ;;  %v410_v11 = vld [vmem:[#allocation2 + $0x8f8] sm:$0xff]  ;;  %v5876_v12 = vcombine.low %v397_v2, %v401_v3  ;;  %v5885_v13 = vcombine.high %v405_v9, %v409_v58  ;;  %v461_v3 = vld [vmem:[#allocation2 + $0xa90] sm:$0xff] }
 0x19d   :  { %v5887_v14 = vcombine.high %v406_v10, %v410_v11 }
 0x19f   :  { %2793 = vmatpush1.bf16.msra.mxu0 %v5820_v25  ;;  %2922 = vmatpush1.bf16.msra.mxu1 %v5822_v18  ;;  %v414_v25 = vld [vmem:[#allocation2 + $0x918] sm:$0xff] }
 0x1a0   :  { %2794 = vmatprep.subr.bf16.mxu0 %v5829_v19  ;;  %2923 = vmatprep.subr.bf16.mxu1 %v5831_v20  ;;  %v418_v18 = vld [vmem:[#allocation2 + $0x938] sm:$0xff]  ;;  %v5884_v19 = vcombine.low %v405_v9, %v409_v58  ;;  %v5886_v20 = vcombine.low %v406_v10, %v410_v11  ;;  %v469_v58 = vld [vmem:[#allocation2 + $0xad0] sm:$0xff] }
 0x1a1   :  { %v473_v10 = vld [vmem:[#allocation2 + $0xaf0] sm:$0xff]  ;;  %v470_v11 = vld [vmem:[#allocation2 + $0xad8] sm:$0xff] }
 0x1a3   :  { %2795 = vmatpush1.bf16.msra.mxu0 %v5828_v26  ;;  %2924 = vmatpush1.bf16.msra.mxu1 %v5830_v27  ;;  %v426_v26 = vld [vmem:[#allocation2 + $0x978] sm:$0xff]  ;;  %v5892_v27 = vcombine.low %v413_v16, %v417_v17  ;;  %v477_v17 = vld [vmem:[#allocation2 + $0xb10] sm:$0xff] }
 0x1a4   :  { %2796 = vmatprep.subr.bf16.mxu0 %v5837_v28  ;;  %2925 = vmatprep.subr.bf16.mxu1 %v5839_v29  ;;  %v5894_v28 = vcombine.low %v414_v25, %v418_v18  ;;  %v5901_v29 = vcombine.high %v421_v22, %v425_v23  ;;  %v5903_v31 = vcombine.high %v422_v24, %v426_v26 }
 0x1a7   :  { %2797 = vmatpush1.bf16.msra.mxu0 %v5836_v35  ;;  %2926 = vmatpush1.bf16.msra.mxu1 %v5838_v36  ;;  %v434_v35 = vld [vmem:[#allocation2 + $0x9b8] sm:$0xff]  ;;  %v5900_v36 = vcombine.low %v421_v22, %v425_v23  ;;  %v485_v23 = vld [vmem:[#allocation2 + $0xb50] sm:$0xff] }
 0x1a8   :  { %2798 = vmatprep.subr.bf16.mxu0 %v5845_v37  ;;  %2927 = vmatprep.subr.bf16.mxu1 %v5847_v38  ;;  %v5902_v37 = vcombine.low %v422_v24, %v426_v26  ;;  %v5909_v38 = vcombine.high %v429_v32, %v433_v33  ;;  %v5911_v40 = vcombine.high %v430_v34, %v434_v35  ;;  %v489_v24 = vld [vmem:[#allocation2 + $0xb70] sm:$0xff]  ;;  %v486_v26 = vld [vmem:[#allocation2 + $0xb58] sm:$0xff] }
 0x1ab   :  { %2799 = vmatpush1.bf16.msra.mxu0 %v5844_v45  ;;  %2928 = vmatpush1.bf16.msra.mxu1 %v5846_v46  ;;  %v442_v45 = vld [vmem:[#allocation2 + $0x9f8] sm:$0xff]  ;;  %v5908_v46 = vcombine.low %v429_v32, %v433_v33  ;;  %v493_v33 = vld [vmem:[#allocation2 + $0xb90] sm:$0xff] }
 0x1ac   :  { %2800 = vmatprep.subr.bf16.mxu0 %v5853_v47  ;;  %2929 = vmatprep.subr.bf16.mxu1 %v5855_v48  ;;  %v5910_v47 = vcombine.low %v430_v34, %v434_v35  ;;  %v5917_v48 = vcombine.high %v437_v41, %v441_v42  ;;  %v5919_v49 = vcombine.high %v438_v43, %v442_v45  ;;  %v497_v34 = vld [vmem:[#allocation2 + $0xbb0] sm:$0xff]  ;;  %v494_v35 = vld [vmem:[#allocation2 + $0xb98] sm:$0xff] }
 0x1af   :  { %2801 = vmatpush1.bf16.msra.mxu0 %v5852_v53  ;;  %2930 = vmatpush1.bf16.msra.mxu1 %v5854_v54  ;;  %v450_v53 = vld [vmem:[#allocation2 + $0xa38] sm:$0xff]  ;;  %v5916_v54 = vcombine.low %v437_v41, %v441_v42  ;;  %v501_v42 = vld [vmem:[#allocation2 + $0xbd0] sm:$0xff] }
 0x1b0   :  { %2813 = vmatprep.subr.bf16.mxu0 %v5861_v55  ;;  %2942 = vmatprep.subr.bf16.mxu1 %v5863_v56  ;;  %v5918_v55 = vcombine.low %v438_v43, %v442_v45  ;;  %v5925_v56 = vcombine.high %v445_v50, %v449_v51  ;;  %v5927_v57 = vcombine.high %v446_v52, %v450_v53  ;;  %v505_v43 = vld [vmem:[#allocation2 + $0xbf0] sm:$0xff]  ;;  %v502_v45 = vld [vmem:[#allocation2 + $0xbd8] sm:$0xff] }
 0x1b2   :  { %2803 = vmatmul.mubr.bf16.vlgmr.msra.gmra.mrb[4].mxu0 %v7244_v30  ;;  %2932 = vmatmul.mubr.bf16.vlgmr.msra.gmra.mrb[4].mxu1 %v7244_v30  ;;  %v5878_v30 = vcombine.low %v398_v4, %v402_v5  ;;  %v465_v4 = vld [vmem:[#allocation2 + $0xab0] sm:$0xff]  ;;  %v462_v5 = vld [vmem:[#allocation2 + $0xa98] sm:$0xff] }
 0x1b3   :  { %2814 = vmatpush1.bf16.msra.mxu0 %v5860_v62  ;;  %2943 = vmatpush1.bf16.msra.mxu1 %v5862_v63  ;;  %v458_v62 = vld [vmem:[#allocation2 + $0xa78] sm:$0xff]  ;;  %v5924_v63 = vcombine.low %v445_v50, %v449_v51  ;;  %v5980_v51 = vcombine.low %v501_v42, %v505_v43 }
 0x1b4   :  { %2815 = vmatprep.subr.bf16.mxu0 %v5869_v0  ;;  %2944 = vmatprep.subr.bf16.mxu1 %v5871_v1  ;;  %v5926_v0 = vcombine.low %v446_v52, %v450_v53  ;;  %v5933_v1 = vcombine.high %v453_v59, %v457_v60  ;;  %v5935_v2 = vcombine.high %v454_v61, %v458_v62  ;;  %v6485_v53 = vld [vmem:[#allocation6 + $0x40] sm:$0xff]  }
 0x1b5   :  { %2845 = vmatprep.mubr.bf16.mxu0 %v7246_v39  ;;  %2974 = vmatprep.mubr.bf16.mxu1 %v7246_v39  ;;  %v5895_v39 = vcombine.high %v414_v25, %v418_v18  ;;  %v481_v25 = vld [vmem:[#allocation2 + $0xb30] sm:$0xff]  ;;  %v478_v18 = vld [vmem:[#allocation2 + $0xb18] sm:$0xff] }
 0x1b7   :  { %2816 = vmatpush1.bf16.msra.mxu0 %v5868_v6  ;;  %2945 = vmatpush1.bf16.msra.mxu1 %v5870_v7  ;;  %v466_v6 = vld [vmem:[#allocation2 + $0xab8] sm:$0xff]  ;;  %v5932_v7 = vcombine.low %v453_v59, %v457_v60  ;;  %v6490_v59 = vld [vmem:[#allocation6 + $0xc8] sm:$0xff]  }
 0x1b8   :  { %2817 = vmatprep.subr.bf16.mxu0 %v5877_v8  ;;  %2946 = vmatprep.subr.bf16.mxu1 %v5879_v15  ;;  %v5934_v8 = vcombine.low %v454_v61, %v458_v62  ;;  %v5941_v15 = vcombine.high %v461_v3, %v465_v4  ;;  %v5943_v9 = vcombine.high %v462_v5, %v466_v6  ;;  %v6491_v60 = vld [vmem:[#allocation6 + $0x8] sm:$0xff]   ;;  %v6493_v62 = vld [vmem:[#allocation6 + $0x50] sm:$0xff]  }
 0x1b9   :  { %v6492_v61 = vld [vmem:[#allocation6 + $0x88] sm:$0xff]  }
 0x1bb   :  { %2818 = vmatpush1.bf16.msra.mxu0 %v5876_v12  ;;  %2947 = vmatpush1.bf16.msra.mxu1 %v5878_v30  ;;  %v474_v12 = vld [vmem:[#allocation2 + $0xaf8] sm:$0xff]  ;;  %v5940_v30 = vcombine.low %v461_v3, %v465_v4  ;;  %v509_v3 = vlaneseq  ;;  %v6498_v4 = vld [vmem:[#allocation6 + $0xd8] sm:$0xff]  }
 0x1bc   :  { %2819 = vmatprep.subr.bf16.mxu0 %v5885_v13  ;;  %2948 = vmatprep.subr.bf16.mxu1 %v5887_v14  ;;  %v5942_v13 = vcombine.low %v462_v5, %v466_v6  ;;  %v5949_v14 = vcombine.high %v469_v58, %v473_v10  ;;  %v5951_v16 = vcombine.high %v470_v11, %v474_v12  ;;  %v6499_v5 = vld [vmem:[#allocation6 + $0x18] sm:$0xff]   ;;  %v6501_v6 = vld [vmem:[#allocation6 + $0x60] sm:$0xff]  }
 0x1bf   :  { %2820 = vmatpush1.bf16.msra.mxu0 %v5884_v19  ;;  %2949 = vmatpush1.bf16.msra.mxu1 %v5886_v20  ;;  %v482_v19 = vld [vmem:[#allocation2 + $0xb38] sm:$0xff]  ;;  %v5948_v20 = vcombine.low %v469_v58, %v473_v10  ;;  %v6505_v10 = vld [vmem:[#allocation6 + $0x68] sm:$0xff]  }
 0x1c0   :  { %2821 = vmatprep.subr.bf16.mxu0 %v5893_v21  ;;  %2950 = vmatprep.subr.bf16.mxu1 %v5895_v39  ;;  %v5950_v21 = vcombine.low %v470_v11, %v474_v12  ;;  %v5957_v39 = vcombine.high %v477_v17, %v481_v25  ;;  %v5959_v22 = vcombine.high %v478_v18, %v482_v19  ;;  %v7277_v11 = vld [vmem:[#allocation4] sm:$0xff] }
 0x1c3   :  { %2822 = vmatpush1.bf16.msra.mxu0 %v5892_v27  ;;  %2951 = vmatpush1.bf16.msra.mxu1 %v5894_v28  ;;  %v490_v27 = vld [vmem:[#allocation2 + $0xb78] sm:$0xff]  ;;  %v5956_v28 = vcombine.low %v477_v17, %v481_v25  ;;  %v6508_v25 = vld [vmem:[#allocation6 + $0xa8] sm:$0xff]  }
 0x1c4   :  { %2823 = vmatprep.subr.bf16.mxu0 %v5901_v29  ;;  %2952 = vmatprep.subr.bf16.mxu1 %v5903_v31  ;;  %v5958_v29 = vcombine.low %v478_v18, %v482_v19  ;;  %v5965_v31 = vcombine.high %v485_v23, %v489_v24  ;;  %v5967_v32 = vcombine.high %v486_v26, %v490_v27  ;;  %v6509_v18 = vld [vmem:[#allocation6 + $0x70] sm:$0xff]  }
 0x1c7   :  { %2824 = vmatpush1.bf16.msra.mxu0 %v5900_v36  ;;  %2953 = vmatpush1.bf16.msra.mxu1 %v5902_v37  ;;  %v498_v36 = vld [vmem:[#allocation2 + $0xbb8] sm:$0xff]  ;;  %v5964_v37 = vcombine.low %v485_v23, %v489_v24 }
 0x1c8   :  { %2825 = vmatprep.subr.bf16.mxu0 %v5909_v38  ;;  %2954 = vmatprep.subr.bf16.mxu1 %v5911_v40  ;;  %v5966_v38 = vcombine.low %v486_v26, %v490_v27  ;;  %v5973_v40 = vcombine.high %v493_v33, %v497_v34  ;;  %v5975_v41 = vcombine.high %v494_v35, %v498_v36 }
 0x1cb   :  { %2826 = vmatpush1.bf16.msra.mxu0 %v5908_v46  ;;  %2955 = vmatpush1.bf16.msra.mxu1 %v5910_v47  ;;  %v506_v46 = vld [vmem:[#allocation2 + $0xbf8] sm:$0xff]  ;;  %v5972_v47 = vcombine.low %v493_v33, %v497_v34 }
 0x1cc   :  { %2827 = vmatprep.subr.bf16.mxu0 %v5917_v48  ;;  %2956 = vmatprep.subr.bf16.mxu1 %v5919_v49  ;;  %v5974_v48 = vcombine.low %v494_v35, %v498_v36  ;;  %v5981_v49 = vcombine.high %v501_v42, %v505_v43  ;;  %v5983_v50 = vcombine.high %v502_v45, %v506_v46  ;;  %v6512_v34 = vld [vmem:[#allocation6 + $0xb0] sm:$0xff]   ;;  %v6513_v35 = vld [vmem:[#allocation6 + $0x78] sm:$0xff]  }
 0x1cd   :  { %v5982_v52 = vcombine.low %v502_v45, %v506_v46  ;;  %v6514_v42 = vld [vmem:[#allocation6 + $0xf8] sm:$0xff]  }
 0x1cf   :  { %2828 = vmatpush1.bf16.msra.mxu0 %v5916_v54  ;;  %2957 = vmatpush1.bf16.msra.mxu1 %v5918_v55  ;;  %v6486_v54 = vld [vmem:[#allocation6 + $0xc0] sm:$0xff]  }
 0x1d0   :  { %2829 = vmatprep.subr.bf16.mxu0 %v5925_v56  ;;  %2958 = vmatprep.subr.bf16.mxu1 %v5927_v57  ;;  %v6487_v55 = vld [vmem:[#allocation6] sm:$0xff]   ;;  %v6489_v57 = vld [vmem:[#allocation6 + $0x48] sm:$0xff]  }
 0x1d1   :  { %v6488_v56 = vld [vmem:[#allocation6 + $0x80] sm:$0xff]  }
 0x1d3   :  { %2830 = vmatpush1.bf16.msra.mxu0 %v5924_v63  ;;  %2959 = vmatpush1.bf16.msra.mxu1 %v5926_v0  ;;  %v6494_v63 = vld [vmem:[#allocation6 + $0xd0] sm:$0xff]  }
 0x1d4   :  { %2831 = vmatprep.subr.bf16.mxu0 %v5933_v1  ;;  %2960 = vmatprep.subr.bf16.mxu1 %v5935_v2  ;;  %v6495_v0 = vld [vmem:[#allocation6 + $0x10] sm:$0xff]   ;;  %v6497_v2 = vld [vmem:[#allocation6 + $0x58] sm:$0xff]  }
 0x1d5   :  { %v6496_v1 = vld [vmem:[#allocation6 + $0x90] sm:$0xff]  }
 0x1d7   :  { %2832 = vmatpush1.bf16.msra.mxu0 %v5932_v7  ;;  %2961 = vmatpush1.bf16.msra.mxu1 %v5934_v8  ;;  %v7274_v7 = vshrl.u32 %v509_v3, 7  ;;  %v6502_v8 = vld [vmem:[#allocation6 + $0xe0] sm:$0xff]   ;;  %v6531_v3 = vld [vmem:[#allocation6 + $0x118] sm:$0xff]  }
 0x1d8   :  { %2833 = vmatprep.subr.bf16.mxu0 %v5941_v15  ;;  %2962 = vmatprep.subr.bf16.mxu1 %v5943_v9  ;;  %v6503_v15 = vld [vmem:[#allocation6 + $0x20] sm:$0xff]  }
 0x1d9   :  { %v6504_v9 = vld [vmem:[#allocation6 + $0xa0] sm:$0xff]   ;;  %v511_v58 = vsub.s32 0, %v7274_v7  ;;  %v519_v12 = vsub.s32 2, %v7274_v7 }
 0x1db   :  { %2834 = vmatpush1.bf16.msra.mxu0 %v5940_v30  ;;  %2963 = vmatpush1.bf16.msra.mxu1 %v5942_v13  ;;  %v515_v30 = vsub.s32 1, %v7274_v7  ;;  %v6506_v13 = vld [vmem:[#allocation6 + $0xe8] sm:$0xff]   ;;  %v512_v17 = vrot.slane %v7277_v11, %v511_v58 }
 0x1dc   :  { %2835 = vmatprep.subr.bf16.mxu0 %v5949_v14  ;;  %2964 = vmatprep.subr.bf16.mxu1 %v5951_v16  ;;  %v523_v14 = vsub.s32 3, %v7274_v7  ;;  %v6507_v16 = vld [vmem:[#allocation6 + $0x28] sm:$0xff]  }
 0x1de   :  { %v524_v24 = vrot.slane %v7277_v11, %v523_v14 }
 0x1df   :  { %2836 = vmatpush1.bf16.msra.mxu0 %v5948_v20  ;;  %2965 = vmatpush1.bf16.msra.mxu1 %v5950_v21  ;;  %v520_v20 = vrot.slane %v7277_v11, %v519_v12  ;;  %v516_v21 = vrot.slane %v7277_v11, %v515_v30 }
 0x1e0   :  { %2837 = vmatprep.subr.bf16.mxu0 %v5957_v39  ;;  %2966 = vmatprep.subr.bf16.mxu1 %v5959_v22  ;;  %v6510_v39 = vld [vmem:[#allocation6 + $0xf0] sm:$0xff]  }
 0x1e3   :  { %2838 = vmatpush1.bf16.msra.mxu0 %v5956_v28  ;;  %2967 = vmatpush1.bf16.msra.mxu1 %v5958_v29  ;;  %v6511_v28 = vld [vmem:[#allocation6 + $0x30] sm:$0xff]  }
 0x1e4   :  { %2839 = vmatprep.subr.bf16.mxu0 %v5965_v31  ;;  %2968 = vmatprep.subr.bf16.mxu1 %v5967_v32 }
 0x1e7   :  { %2840 = vmatpush1.bf16.msra.mxu0 %v5964_v37  ;;  %2969 = vmatpush1.bf16.msra.mxu1 %v5966_v38 }
 0x1e8   :  { %2841 = vmatprep.subr.bf16.mxu0 %v5973_v40  ;;  %2970 = vmatprep.subr.bf16.mxu1 %v5975_v41 }
 0x1eb   :  { %2842 = vmatpush1.bf16.msra.mxu0 %v5972_v47  ;;  %2971 = vmatpush1.bf16.msra.mxu1 %v5974_v48 }
 0x1ec   :  { %2843 = vmatprep.subr.bf16.mxu0 %v5981_v49  ;;  %2972 = vmatprep.subr.bf16.mxu1 %v5983_v50  ;;  %v6515_v49 = vld [vmem:[#allocation6 + $0x38] sm:$0xff]  }
 0x1ef   :  { %2844 = vmatpush1.bf16.msra.mxu0 %v5980_v51  ;;  %2973 = vmatpush1.bf16.msra.mxu1 %v5982_v52  ;;  %v6516_v51 = vld [vmem:[#allocation6 + $0xb8] sm:$0xff]   ;;  %v6517_v52 = vld [vmem:[#allocation6 + $0x140] sm:$0xff]  }
 0x1f0   :  { %6305 = vmatprep.subr.bf16.mxu0 %v6485_v53  ;;  %6327 = vmatprep.subr.bf16.mxu1 %v6486_v54  ;;  %v6518_v53 = vld [vmem:[#allocation6 + $0x1c0] sm:$0xff]  }
 0x1f1   :  { %v6519_v54 = vld [vmem:[#allocation6 + $0x100] sm:$0xff]  }
 0x1f2   :  { %2846 = vmatmul.mubr.bf16.vlgmr.msra.gmra.mrb[4].mxu0 %v7258_v44  ;;  %2975 = vmatmul.mubr.bf16.vlgmr.msra.gmra.mrb[4].mxu1 %v7258_v44  ;;  %v6500_v44 = vld [vmem:[#allocation6 + $0x98] sm:$0xff]  }
 0x1f3   :  { %6306 = vmatpush3.bf16.msra.mxu0 %v6487_v55  ;;  %6328 = vmatpush3.bf16.msra.mxu1 %v6488_v56  ;;  %v6520_v55 = vld [vmem:[#allocation6 + $0x180] sm:$0xff]   ;;  %v6521_v56 = vld [vmem:[#allocation6 + $0x148] sm:$0xff]  }
 0x1f4   :  { %6307 = vmatprep.subr.bf16.mxu0 %v6489_v57  ;;  %6329 = vmatprep.subr.bf16.mxu1 %v6490_v59  ;;  %v6522_v57 = vld [vmem:[#allocation6 + $0x1c8] sm:$0xff]  }
 0x1f5   :  { %v6523_v59 = vld [vmem:[#allocation6 + $0x108] sm:$0xff]  }
 0x1f7   :  { %6308 = vmatpush3.bf16.msra.mxu0 %v6491_v60  ;;  %6330 = vmatpush3.bf16.msra.mxu1 %v6492_v61  ;;  %v6524_v60 = vld [vmem:[#allocation6 + $0x188] sm:$0xff]   ;;  %v6525_v61 = vld [vmem:[#allocation6 + $0x150] sm:$0xff]  }
 0x1f8   :  { %6309 = vmatprep.subr.bf16.mxu0 %v6493_v62  ;;  %6331 = vmatprep.subr.bf16.mxu1 %v6494_v63  ;;  %v6526_v62 = vld [vmem:[#allocation6 + $0x1d0] sm:$0xff]  }
 0x1f9   :  { %v6527_v63 = vld [vmem:[#allocation6 + $0x110] sm:$0xff]  }
 0x1fb   :  { %6310 = vmatpush3.bf16.msra.mxu0 %v6495_v0  ;;  %6332 = vmatpush3.bf16.msra.mxu1 %v6496_v1  ;;  %v6528_v0 = vld [vmem:[#allocation6 + $0x190] sm:$0xff]   ;;  %v6529_v1 = vld [vmem:[#allocation6 + $0x158] sm:$0xff]  }
 0x1fc   :  { %6311 = vmatprep.subr.bf16.mxu0 %v6497_v2  ;;  %6333 = vmatprep.subr.bf16.mxu1 %v6498_v4  ;;  %v6530_v2 = vld [vmem:[#allocation6 + $0x1d8] sm:$0xff]  }
 0x1fd   :  { %v6532_v4 = vld [vmem:[#allocation6 + $0x198] sm:$0xff]  }
 0x1ff   :  { %6312 = vmatpush3.bf16.msra.mxu0 %v6499_v5  ;;  %6334 = vmatpush3.bf16.msra.mxu1 %v6500_v44  ;;  %v6533_v5 = vld [vmem:[#allocation6 + $0x160] sm:$0xff]  }
 0x200   :  { %6313 = vmatprep.subr.bf16.mxu0 %v6501_v6  ;;  %6335 = vmatprep.subr.bf16.mxu1 %v6502_v8  ;;  %v6534_v44 = vld [vmem:[#allocation6 + $0x1e0] sm:$0xff]  }
 0x201   :  { %v6535_v6 = vld [vmem:[#allocation6 + $0x120] sm:$0xff]  }
 0x202   :  { %v6536_v8 = vld [vmem:[#allocation6 + $0x1a0] sm:$0xff]  }
 0x203   :  { %6314 = vmatpush3.bf16.msra.mxu0 %v6503_v15  ;;  %6336 = vmatpush3.bf16.msra.mxu1 %v6504_v9  ;;  %v6537_v15 = vld [vmem:[#allocation6 + $0x168] sm:$0xff]  }
 0x204   :  { %6315 = vmatprep.subr.bf16.mxu0 %v6505_v10  ;;  %6337 = vmatprep.subr.bf16.mxu1 %v6506_v13  ;;  %v6538_v9 = vld [vmem:[#allocation6 + $0x1e8] sm:$0xff]  }
 0x205   :  { %v2589_v19 = vpop.f32.mrb[0].mxu0  ;;  %v2718_v22 = vpop.f32.mrb[0].mxu1  ;;  %v6539_v10 = vld [vmem:[#allocation6 + $0x128] sm:$0xff]  }
 0x206   :  { %v2591_v23 = vpop.f32.mrb[1].mxu0  ;;  %v2720_v26 = vpop.f32.mrb[1].mxu1  ;;  %v6393_v29 = vadd.f32 %v2589_v19, %v512_v17  ;;  %v6397_v36 = vadd.f32 %v2718_v22, %v520_v20  ;;  %v6540_v13 = vld [vmem:[#allocation6 + $0x1a8] sm:$0xff]   ;;  %v6545_v19 = vld [vmem:[#allocation6 + $0x178] sm:$0xff]  }
 0x207   :  { %v2593_v27 = vpop.f32.mrb[2].mxu0  ;;  %6316 = vmatpush3.bf16.msra.mxu0 %v6507_v16  ;;  %v2722_v32 = vpop.f32.mrb[2].mxu1  ;;  %6338 = vmatpush3.bf16.msra.mxu1 %v6508_v25  ;;  %v6394_v37 = vadd.f32 %v2591_v23, %v516_v21  ;;  %v6398_v43 = vadd.f32 %v2720_v26, %v524_v24  ;;  %v6541_v16 = vld [vmem:[#allocation6 + $0x170] sm:$0xff]   ;;  %v535_v26 = vsub.s32 6, %v7274_v7 }
 0x208   :  { %v6395_v31 = vadd.f32 %v2593_v27, %v512_v17  ;;  %v2595_v33 = vpop.f32.mrb[3].mxu0  ;;  %6317 = vmatprep.subr.bf16.mxu0 %v6509_v18  ;;  %v6399_v38 = vadd.f32 %v2722_v32, %v520_v20  ;;  %v2724_v41 = vpop.f32.mrb[3].mxu1  ;;  %6339 = vmatprep.subr.bf16.mxu1 %v6510_v39  ;;  %v6542_v17 = vld [vmem:[#allocation6 + $0x1f0] sm:$0xff]   ;;  %v6546_v20 = vld [vmem:[#allocation6 + $0x1f8] sm:$0xff]   ;;  %v531_v27 = vsub.s32 5, %v7274_v7 }
 0x209   :  { %v6396_v40 = vadd.f32 %v2595_v33, %v516_v21  ;;  %v6400_v46 = vadd.f32 %v2724_v41, %v524_v24  ;;  %v6543_v25 = vld [vmem:[#allocation6 + $0x130] sm:$0xff]   ;;  %v6547_v21 = vld [vmem:[#allocation6 + $0x138] sm:$0xff]   ;;  %v527_v24 = vsub.s32 4, %v7274_v7  ;;  %v536_v32 = vrot.slane %v7277_v11, %v535_v26 }
 0x20a   :  { %v7294_v45 = vpack.c.bf16 %v6395_v31, %v6393_v29  ;;  %v7296_v47 = vpack.c.bf16 %v6399_v38, %v6397_v36  ;;  %v6544_v18 = vld [vmem:[#allocation6 + $0x1b0] sm:$0xff]   ;;  %v6548_v39 = vld [vmem:[#allocation6 + $0x1b8] sm:$0xff]   ;;  %v532_v33 = vrot.slane %v7277_v11, %v531_v27  ;;  %v5984_v27 = vld [vmem:[#allocation7] ss:$0 sm:$0xff] }
 0x20b   :  { %v7298_v48 = vpack.c.bf16 %v6396_v40, %v6394_v37  ;;  %6318 = vmatpush3.bf16.msra.mxu0 %v6511_v28  ;;  %v7300_v50 = vpack.c.bf16 %v6400_v46, %v6398_v43  ;;  %6340 = vmatpush3.bf16.msra.mxu1 %v6512_v34  ;;  %v6551_v22 = vld [vmem:[#allocation9 + $0x4] ss:$16 sps:$4 sm:$0xff]   ;;  %v6554_v23 = vld [vmem:[#allocation9 + $0xc] ss:$16 sps:$4 sm:$0xff]   ;;  %v539_v28 = vsub.s32 7, %v7274_v7  ;;  %v528_v29 = vrot.slane %v7277_v11, %v527_v24 }
 0x20c   :  { %6319 = vmatprep.subr.bf16.mxu0 %v6513_v35  ;;  %6341 = vmatprep.subr.bf16.mxu1 %v6514_v42  ;;  %v6596_v24 = vld [vmem:[#allocation9 + $0xec] ss:$16 sps:$4 sm:$0xff]  }
 0x20d   :  { %3544 = vmatprep.mubr.bf16.mxu0 %v7298_v48  ;;  %3585 = vmatprep.mubr.bf16.mxu1 %v7300_v50  ;;  %v540_v36 = vrot.slane %v7277_v11, %v539_v28  ;;  %v6549_v11 = vld [vmem:[#allocation9] ss:$16 sps:$4 sm:$0xff]  }
 0x20f   :  { %6320 = vmatpush3.bf16.msra.mxu0 %v6515_v49  ;;  %6342 = vmatpush3.bf16.msra.mxu1 %v6516_v51 }
 0x210   :  { %6349 = vmatprep.subr.bf16.mxu0 %v6517_v52  ;;  %6371 = vmatprep.subr.bf16.mxu1 %v6518_v53 }
 0x212   :  { %3545 = vmatmul.mubr.bf16.vlgmr.msra.gmra.mrb[8].mxu0 %v7294_v45  ;;  %3586 = vmatmul.mubr.bf16.vlgmr.msra.gmra.mrb[8].mxu1 %v7296_v47 }
 0x213   :  { %6350 = vmatpush3.bf16.msra.mxu0 %v6519_v54  ;;  %6372 = vmatpush3.bf16.msra.mxu1 %v6520_v55 }
 0x214   :  { %6351 = vmatprep.subr.bf16.mxu0 %v6521_v56  ;;  %6373 = vmatprep.subr.bf16.mxu1 %v6522_v57 }
 0x217   :  { %6352 = vmatpush3.bf16.msra.mxu0 %v6523_v59  ;;  %6374 = vmatpush3.bf16.msra.mxu1 %v6524_v60 }
 0x218   :  { %6353 = vmatprep.subr.bf16.mxu0 %v6525_v61  ;;  %6375 = vmatprep.subr.bf16.mxu1 %v6526_v62  ;;  %v6552_v61 = vld [vmem:[#allocation9 + $0x8] ss:$16 sps:$4 sm:$0xff]   ;;  %v6557_v62 = vld [vmem:[#allocation9 + $0x24] ss:$16 sps:$4 sm:$0xff]  }
 0x21b   :  { %6354 = vmatpush3.bf16.msra.mxu0 %v6527_v63  ;;  %6376 = vmatpush3.bf16.msra.mxu1 %v6528_v0  ;;  %v6560_v63 = vld [vmem:[#allocation9 + $0x2c] ss:$16 sps:$4 sm:$0xff]   ;;  %v6555_v0 = vld [vmem:[#allocation9 + $0x20] ss:$16 sps:$4 sm:$0xff]  }
 0x21c   :  { %6355 = vmatprep.subr.bf16.mxu0 %v6529_v1  ;;  %6377 = vmatprep.subr.bf16.mxu1 %v6530_v2  ;;  %v6558_v1 = vld [vmem:[#allocation9 + $0x28] ss:$16 sps:$4 sm:$0xff]   ;;  %v6563_v2 = vld [vmem:[#allocation9 + $0x44] ss:$16 sps:$4 sm:$0xff]  }
 0x21f   :  { %6356 = vmatpush3.bf16.msra.mxu0 %v6531_v3  ;;  %6378 = vmatpush3.bf16.msra.mxu1 %v6532_v4  ;;  %v6566_v3 = vld [vmem:[#allocation9 + $0x4c] ss:$16 sps:$4 sm:$0xff]   ;;  %v6561_v4 = vld [vmem:[#allocation9 + $0x40] ss:$16 sps:$4 sm:$0xff]  }
 0x220   :  { %6357 = vmatprep.subr.bf16.mxu0 %v6533_v5  ;;  %6379 = vmatprep.subr.bf16.mxu1 %v6534_v44  ;;  %v6564_v5 = vld [vmem:[#allocation9 + $0x48] ss:$16 sps:$4 sm:$0xff]   ;;  %v6569_v44 = vld [vmem:[#allocation9 + $0x64] ss:$16 sps:$4 sm:$0xff]  }
 0x223   :  { %6358 = vmatpush3.bf16.msra.mxu0 %v6535_v6  ;;  %6380 = vmatpush3.bf16.msra.mxu1 %v6536_v8  ;;  %v6572_v6 = vld [vmem:[#allocation9 + $0x6c] ss:$16 sps:$4 sm:$0xff]   ;;  %v6567_v8 = vld [vmem:[#allocation9 + $0x60] ss:$16 sps:$4 sm:$0xff]  }
 0x224   :  { %6359 = vmatprep.subr.bf16.mxu0 %v6537_v15  ;;  %6381 = vmatprep.subr.bf16.mxu1 %v6538_v9  ;;  %v6570_v15 = vld [vmem:[#allocation9 + $0x68] ss:$16 sps:$4 sm:$0xff]   ;;  %v6575_v9 = vld [vmem:[#allocation9 + $0x84] ss:$16 sps:$4 sm:$0xff]  }
 0x227   :  { %6360 = vmatpush3.bf16.msra.mxu0 %v6539_v10  ;;  %6382 = vmatpush3.bf16.msra.mxu1 %v6540_v13  ;;  %v6578_v10 = vld [vmem:[#allocation9 + $0x8c] ss:$16 sps:$4 sm:$0xff]   ;;  %v6576_v13 = vld [vmem:[#allocation9 + $0x88] ss:$16 sps:$4 sm:$0xff]  }
 0x228   :  { %6361 = vmatprep.subr.bf16.mxu0 %v6541_v16  ;;  %6383 = vmatprep.subr.bf16.mxu1 %v6542_v17  ;;  %v6581_v16 = vld [vmem:[#allocation9 + $0xa4] ss:$16 sps:$4 sm:$0xff]   ;;  %v6584_v17 = vld [vmem:[#allocation9 + $0xac] ss:$16 sps:$4 sm:$0xff]  }
 0x22b   :  { %6362 = vmatpush3.bf16.msra.mxu0 %v6543_v25  ;;  %6384 = vmatpush3.bf16.msra.mxu1 %v6544_v18  ;;  %v6579_v25 = vld [vmem:[#allocation9 + $0xa0] ss:$16 sps:$4 sm:$0xff]   ;;  %v6582_v18 = vld [vmem:[#allocation9 + $0xa8] ss:$16 sps:$4 sm:$0xff]  }
 0x22c   :  { %6363 = vmatprep.subr.bf16.mxu0 %v6545_v19  ;;  %6385 = vmatprep.subr.bf16.mxu1 %v6546_v20  ;;  %v6587_v19 = vld [vmem:[#allocation9 + $0xc4] ss:$16 sps:$4 sm:$0xff]   ;;  %v6590_v20 = vld [vmem:[#allocation9 + $0xcc] ss:$16 sps:$4 sm:$0xff]  }
 0x22f   :  { %6364 = vmatpush3.bf16.msra.mxu0 %v6547_v21  ;;  %6386 = vmatpush3.bf16.msra.mxu1 %v6548_v39  ;;  %v6585_v21 = vld [vmem:[#allocation9 + $0xc0] ss:$16 sps:$4 sm:$0xff]   ;;  %v6588_v39 = vld [vmem:[#allocation9 + $0xc8] ss:$16 sps:$4 sm:$0xff]  }
 0x230   :  { %5236 = vmatprep.subr.bf16.mxu0 %v6551_v22  ;;  %5408 = vmatprep.subr.bf16.mxu1 %v6554_v23  ;;  %v6593_v22 = vld [vmem:[#allocation9 + $0xe4] ss:$16 sps:$4 sm:$0xff]  }
 0x2c5   :  { %v2847_v31 = vpop.f32.mrb[4].mxu0  ;;  %v2976_v34 = vpop.f32.mrb[4].mxu1 }
 0x2c6   :  { %v2849_v35 = vpop.f32.mrb[5].mxu0  ;;  %v2978_v37 = vpop.f32.mrb[5].mxu1  ;;  %v6401_v40 = vadd.f32 %v2847_v31, %v528_v29  ;;  %v6405_v46 = vadd.f32 %v2976_v34, %v536_v32 }
 0x2c7   :  { %v2851_v38 = vpop.f32.mrb[6].mxu0  ;;  %v2980_v42 = vpop.f32.mrb[6].mxu1  ;;  %v6402_v49 = vadd.f32 %v2849_v35, %v532_v33  ;;  %v6406_v54 = vadd.f32 %v2978_v37, %v540_v36  ;;  %v6594_v37 = vld [vmem:[#allocation9 + $0xe8] ss:$16 sps:$4 sm:$0xff]  }
 0x2c8   :  { %v6403_v41 = vadd.f32 %v2851_v38, %v528_v29  ;;  %v2853_v43 = vpop.f32.mrb[7].mxu0  ;;  %v6407_v51 = vadd.f32 %v2980_v42, %v536_v32  ;;  %v2982_v53 = vpop.f32.mrb[7].mxu1  ;;  %v6599_v38 = vld [vmem:[#allocation9 + $0x104] ss:$16 sps:$4 sm:$0xff]  }
 0x2c9   :  { %v6404_v52 = vadd.f32 %v2853_v43, %v532_v33  ;;  %v6408_v56 = vadd.f32 %v2982_v53, %v540_v36  ;;  %v6591_v33 = vld [vmem:[#allocation9 + $0xe0] ss:$16 sps:$4 sm:$0xff]   ;;  %v6602_v43 = vld [vmem:[#allocation9 + $0x10c] ss:$16 sps:$4 sm:$0xff]   ;;  %v6600_v53 = vld [vmem:[#allocation9 + $0x108] ss:$16 sps:$4 sm:$0xff]  }
 0x2ca   :  { %v7314_v55 = vpack.c.bf16 %v6403_v41, %v6401_v40  ;;  %v7316_v57 = vpack.c.bf16 %v6407_v51, %v6405_v46 }
 0x2cb   :  { %v7318_v59 = vpack.c.bf16 %v6404_v52, %v6402_v49  ;;  %v7320_v60 = vpack.c.bf16 %v6408_v56, %v6406_v54  ;;  %v6597_v52 = vld [vmem:[#allocation9 + $0x100] ss:$16 sps:$4 sm:$0xff]   ;;  %v6605_v54 = vld [vmem:[#allocation9 + $0x124] ss:$16 sps:$4 sm:$0xff]  }
 0x2cd   :  { %3626 = vmatprep.mubr.bf16.mxu0 %v7318_v59  ;;  %3667 = vmatprep.mubr.bf16.mxu1 %v7320_v60 }
 0x2ce   :  { %3627 = vmatmul.mubr.bf16.vlgmr.msra.gmra.mrb[12].mxu0 %v7314_v55  ;;  %3668 = vmatmul.mubr.bf16.vlgmr.msra.gmra.mrb[12].mxu1 %v7316_v57 }
 0x2cf   :  { %5237 = vmatpush1.bf16.msra.mxu0 %v6549_v11  ;;  %5409 = vmatpush1.bf16.msra.mxu1 %v6552_v61  ;;  %v6608_v11 = vld [vmem:[#allocation9 + $0x12c] ss:$16 sps:$4 sm:$0xff]   ;;  %v6603_v61 = vld [vmem:[#allocation9 + $0x120] ss:$16 sps:$4 sm:$0xff]  }
 0x2d0   :  { %5268 = vmatprep.mubr.bf16.mxu0 %v7298_v48  ;;  %5440 = vmatprep.mubr.bf16.mxu1 %v7298_v48  ;;  %v6573_v48 = vld [vmem:[#allocation9 + $0x80] ss:$16 sps:$4 sm:$0xff]  }
 0x2d1   :  { %5238 = vmatprep.subr.bf16.mxu0 %v6557_v62  ;;  %5410 = vmatprep.subr.bf16.mxu1 %v6560_v63  ;;  %v6606_v62 = vld [vmem:[#allocation9 + $0x128] ss:$16 sps:$4 sm:$0xff]   ;;  %v6611_v63 = vld [vmem:[#allocation9 + $0x144] ss:$16 sps:$4 sm:$0xff]  }
 0x2d3   :  { %5239 = vmatpush1.bf16.msra.mxu0 %v6555_v0  ;;  %5411 = vmatpush1.bf16.msra.mxu1 %v6558_v1  ;;  %v6614_v0 = vld [vmem:[#allocation9 + $0x14c] ss:$16 sps:$4 sm:$0xff]   ;;  %v6609_v1 = vld [vmem:[#allocation9 + $0x140] ss:$16 sps:$4 sm:$0xff]  }
 0x2d4   :  { %5240 = vmatprep.subr.bf16.mxu0 %v6563_v2  ;;  %5412 = vmatprep.subr.bf16.mxu1 %v6566_v3  ;;  %v6612_v2 = vld [vmem:[#allocation9 + $0x148] ss:$16 sps:$4 sm:$0xff]   ;;  %v6617_v3 = vld [vmem:[#allocation9 + $0x164] ss:$16 sps:$4 sm:$0xff]  }
 0x2d7   :  { %5241 = vmatpush1.bf16.msra.mxu0 %v6561_v4  ;;  %5413 = vmatpush1.bf16.msra.mxu1 %v6564_v5  ;;  %v6620_v4 = vld [vmem:[#allocation9 + $0x16c] ss:$16 sps:$4 sm:$0xff]   ;;  %v6615_v5 = vld [vmem:[#allocation9 + $0x160] ss:$16 sps:$4 sm:$0xff]  }
 0x2d8   :  { %5242 = vmatprep.subr.bf16.mxu0 %v6569_v44  ;;  %5414 = vmatprep.subr.bf16.mxu1 %v6572_v6  ;;  %v6618_v44 = vld [vmem:[#allocation9 + $0x168] ss:$16 sps:$4 sm:$0xff]   ;;  %v6623_v6 = vld [vmem:[#allocation9 + $0x184] ss:$16 sps:$4 sm:$0xff]  }
 0x2db   :  { %5243 = vmatpush1.bf16.msra.mxu0 %v6567_v8  ;;  %5415 = vmatpush1.bf16.msra.mxu1 %v6570_v15  ;;  %v6626_v8 = vld [vmem:[#allocation9 + $0x18c] ss:$16 sps:$4 sm:$0xff]   ;;  %v6621_v15 = vld [vmem:[#allocation9 + $0x180] ss:$16 sps:$4 sm:$0xff]  }
 0x2dc   :  { %5244 = vmatprep.subr.bf16.mxu0 %v6575_v9  ;;  %5416 = vmatprep.subr.bf16.mxu1 %v6578_v10  ;;  %v6624_v9 = vld [vmem:[#allocation9 + $0x188] ss:$16 sps:$4 sm:$0xff]   ;;  %v6629_v10 = vld [vmem:[#allocation9 + $0x1a4] ss:$16 sps:$4 sm:$0xff]  }
 0x2df   :  { %5245 = vmatpush1.bf16.msra.mxu0 %v6573_v48  ;;  %5417 = vmatpush1.bf16.msra.mxu1 %v6576_v13  ;;  %v6632_v48 = vld [vmem:[#allocation9 + $0x1ac] ss:$16 sps:$4 sm:$0xff]   ;;  %v6627_v13 = vld [vmem:[#allocation9 + $0x1a0] ss:$16 sps:$4 sm:$0xff]  }
 0x2e0   :  { %5246 = vmatprep.subr.bf16.mxu0 %v6581_v16  ;;  %5418 = vmatprep.subr.bf16.mxu1 %v6584_v17  ;;  %v6630_v16 = vld [vmem:[#allocation9 + $0x1a8] ss:$16 sps:$4 sm:$0xff]   ;;  %v6635_v17 = vld [vmem:[#allocation9 + $0x1c4] ss:$16 sps:$4 sm:$0xff]  }
 0x2e3   :  { %5247 = vmatpush1.bf16.msra.mxu0 %v6579_v25  ;;  %5419 = vmatpush1.bf16.msra.mxu1 %v6582_v18  ;;  %v6638_v25 = vld [vmem:[#allocation9 + $0x1cc] ss:$16 sps:$4 sm:$0xff]   ;;  %v6633_v18 = vld [vmem:[#allocation9 + $0x1c0] ss:$16 sps:$4 sm:$0xff]  }
 0x2e4   :  { %5248 = vmatprep.subr.bf16.mxu0 %v6587_v19  ;;  %5420 = vmatprep.subr.bf16.mxu1 %v6590_v20  ;;  %v6636_v19 = vld [vmem:[#allocation9 + $0x1c8] ss:$16 sps:$4 sm:$0xff]   ;;  %v6641_v20 = vld [vmem:[#allocation9 + $0x1e4] ss:$16 sps:$4 sm:$0xff]  }
 0x2e5   :  { %v6321_v23 = vpop.f32.mrb[8].mxu0  ;;  %v6343_v26 = vpop.f32.mrb[8].mxu1 }
 0x2e6   :  { %v6322_v28 = vpop.f32.mrb[9].mxu0  ;;  %v6344_v31 = vpop.f32.mrb[9].mxu1 }
 0x2e7   :  { %v6323_v29 = vadd.f32 %v6322_v28, %v6321_v23  ;;  %5249 = vmatpush1.bf16.msra.mxu0 %v6585_v21  ;;  %v6324_v32 = vpop.f32.mrb[10].mxu0  ;;  %v6345_v34 = vadd.f32 %v6344_v31, %v6343_v26  ;;  %5421 = vmatpush1.bf16.msra.mxu1 %v6588_v39  ;;  %v6346_v35 = vpop.f32.mrb[10].mxu1  ;;  %v6644_v21 = vld [vmem:[#allocation9 + $0x1ec] ss:$16 sps:$4 sm:$0xff]   ;;  %v6639_v39 = vld [vmem:[#allocation9 + $0x1e0] ss:$16 sps:$4 sm:$0xff]  }
 0x2e8   :  { %v6325_v36 = vpop.f32.mrb[11].mxu0  ;;  %5250 = vmatprep.subr.bf16.mxu0 %v6593_v22  ;;  %v6347_v42 = vpop.f32.mrb[11].mxu1  ;;  %5422 = vmatprep.subr.bf16.mxu1 %v6596_v24  ;;  %v6642_v22 = vld [vmem:[#allocation9 + $0x1e8] ss:$16 sps:$4 sm:$0xff]   ;;  %v6647_v23 = vld [vmem:[#allocation9 + $0x204] ss:$16 sps:$4 sm:$0xff]  }
 0x2e9   :  { %v3547_v40 = vadd.f32 %v6323_v29, %v5984_v27  ;;  %v6326_v41 = vadd.f32 %v6325_v36, %v6324_v32  ;;  %v6348_v46 = vadd.f32 %v6347_v42, %v6346_v35  ;;  %v6650_v24 = vld [vmem:[#allocation9 + $0x20c] ss:$16 sps:$4 sm:$0xff]   ;;  %v6645_v26 = vld [vmem:[#allocation9 + $0x200] ss:$16 sps:$4 sm:$0xff]   ;;  %v6653_v28 = vld [vmem:[#allocation9 + $0x224] ss:$16 sps:$4 sm:$0xff]  }
 0x2ea   :  { %v6656_v29 = vld [vmem:[#allocation9 + $0x22c] ss:$16 sps:$4 sm:$0xff]   ;;  %v6651_v31 = vld [vmem:[#allocation9 + $0x220] ss:$16 sps:$4 sm:$0xff]   ;;  %v6654_v32 = vld [vmem:[#allocation9 + $0x228] ss:$16 sps:$4 sm:$0xff]  }
 0x2eb   :  { %v7328_v49 = vadd.f32 %v6345_v34, %v3547_v40  ;;  %v3550_v51 = vadd.f32 %v6326_v41, %v5984_v27  ;;  %5251 = vmatpush1.bf16.msra.mxu0 %v6591_v33  ;;  %5423 = vmatpush1.bf16.msra.mxu1 %v6594_v37  ;;  %v6648_v27 = vld [vmem:[#allocation9 + $0x208] ss:$16 sps:$4 sm:$0xff]   ;;  %v6659_v33 = vld [vmem:[#allocation9 + $0x244] ss:$16 sps:$4 sm:$0xff]   ;;  %v6662_v34 = vld [vmem:[#allocation9 + $0x24c] ss:$16 sps:$4 sm:$0xff]  }
 0x2ec   :  { %5252 = vmatprep.subr.bf16.mxu0 %v6599_v38  ;;  %5424 = vmatprep.subr.bf16.mxu1 %v6602_v43  ;;  %v6657_v35 = vld [vmem:[#allocation9 + $0x240] ss:$16 sps:$4 sm:$0xff]   ;;  %v6660_v36 = vld [vmem:[#allocation9 + $0x248] ss:$16 sps:$4 sm:$0xff]   ;;  %v6665_v37 = vld [vmem:[#allocation9 + $0x264] ss:$16 sps:$4 sm:$0xff]  }
 0x2ed   :  { %v7330_v56 = vadd.f32 %v6348_v46, %v3550_v51  ;;  %v6663_v38 = vld [vmem:[#allocation9 + $0x260] ss:$16 sps:$4 sm:$0xff]   ;;  %v6666_v40 = vld [vmem:[#allocation9 + $0x268] ss:$16 sps:$4 sm:$0xff]   ;;  %v6671_v41 = vld [vmem:[#allocation9 + $0x284] ss:$16 sps:$4 sm:$0xff]  }
 0x2ee   :  { %v6674_v42 = vld [vmem:[#allocation9 + $0x28c] ss:$16 sps:$4 sm:$0xff]   ;;  %v6672_v43 = vld [vmem:[#allocation9 + $0x288] ss:$16 sps:$4 sm:$0xff]   ;;  %v6677_v46 = vld [vmem:[#allocation9 + $0x2a4] ss:$16 sps:$4 sm:$0xff]  }
 0x2ef   :  { %5253 = vmatpush1.bf16.msra.mxu0 %v6597_v52  ;;  %5425 = vmatpush1.bf16.msra.mxu1 %v6600_v53  ;;  %v6680_v51 = vld [vmem:[#allocation9 + $0x2ac] ss:$16 sps:$4 sm:$0xff]   ;;  %v6675_v52 = vld [vmem:[#allocation9 + $0x2a0] ss:$16 sps:$4 sm:$0xff]   ;;  %v6678_v53 = vld [vmem:[#allocation9 + $0x2a8] ss:$16 sps:$4 sm:$0xff]  }
 0x2f0   :  { %5254 = vmatprep.subr.bf16.mxu0 %v6605_v54  ;;  %5426 = vmatprep.subr.bf16.mxu1 %v6608_v11  ;;  %v6683_v54 = vld [vmem:[#allocation9 + $0x2c4] ss:$16 sps:$4 sm:$0xff]   ;;  %v6686_v11 = vld [vmem:[#allocation9 + $0x2cc] ss:$16 sps:$4 sm:$0xff]  }
 0x2f3   :  { %5255 = vmatpush1.bf16.msra.mxu0 %v6603_v61  ;;  %5427 = vmatpush1.bf16.msra.mxu1 %v6606_v62  ;;  %v6681_v61 = vld [vmem:[#allocation9 + $0x2c0] ss:$16 sps:$4 sm:$0xff]   ;;  %v6684_v62 = vld [vmem:[#allocation9 + $0x2c8] ss:$16 sps:$4 sm:$0xff]  }
 0x2f4   :  { %5256 = vmatprep.subr.bf16.mxu0 %v6611_v63  ;;  %5428 = vmatprep.subr.bf16.mxu1 %v6614_v0  ;;  %v6689_v63 = vld [vmem:[#allocation9 + $0x2e4] ss:$16 sps:$4 sm:$0xff]   ;;  %v6692_v0 = vld [vmem:[#allocation9 + $0x2ec] ss:$16 sps:$4 sm:$0xff]  }
 0x2f7   :  { %5257 = vmatpush1.bf16.msra.mxu0 %v6609_v1  ;;  %5429 = vmatpush1.bf16.msra.mxu1 %v6612_v2  ;;  %v6687_v1 = vld [vmem:[#allocation9 + $0x2e0] ss:$16 sps:$4 sm:$0xff]   ;;  %v6690_v2 = vld [vmem:[#allocation9 + $0x2e8] ss:$16 sps:$4 sm:$0xff]  }
 0x2f8   :  { %5258 = vmatprep.subr.bf16.mxu0 %v6617_v3  ;;  %5430 = vmatprep.subr.bf16.mxu1 %v6620_v4  ;;  %v6695_v3 = vld [vmem:[#allocation9 + $0x304] ss:$16 sps:$4 sm:$0xff]   ;;  %v6698_v4 = vld [vmem:[#allocation9 + $0x30c] ss:$16 sps:$4 sm:$0xff]  }
 0x2fb   :  { %5259 = vmatpush1.bf16.msra.mxu0 %v6615_v5  ;;  %5431 = vmatpush1.bf16.msra.mxu1 %v6618_v44  ;;  %v6693_v5 = vld [vmem:[#allocation9 + $0x300] ss:$16 sps:$4 sm:$0xff]   ;;  %v6696_v44 = vld [vmem:[#allocation9 + $0x308] ss:$16 sps:$4 sm:$0xff]  }
 0x2fc   :  { %5260 = vmatprep.subr.bf16.mxu0 %v6623_v6  ;;  %5432 = vmatprep.subr.bf16.mxu1 %v6626_v8  ;;  %v6701_v6 = vld [vmem:[#allocation9 + $0x324] ss:$16 sps:$4 sm:$0xff]   ;;  %v6704_v8 = vld [vmem:[#allocation9 + $0x32c] ss:$16 sps:$4 sm:$0xff]  }
 0x2ff   :  { %5261 = vmatpush1.bf16.msra.mxu0 %v6621_v15  ;;  %5433 = vmatpush1.bf16.msra.mxu1 %v6624_v9  ;;  %v6699_v15 = vld [vmem:[#allocation9 + $0x320] ss:$16 sps:$4 sm:$0xff]   ;;  %v6702_v9 = vld [vmem:[#allocation9 + $0x328] ss:$16 sps:$4 sm:$0xff]  }
 0x300   :  { %5262 = vmatprep.subr.bf16.mxu0 %v6629_v10  ;;  %5434 = vmatprep.subr.bf16.mxu1 %v6632_v48  ;;  %v6707_v10 = vld [vmem:[#allocation9 + $0x344] ss:$16 sps:$4 sm:$0xff]   ;;  %v6710_v48 = vld [vmem:[#allocation9 + $0x34c] ss:$16 sps:$4 sm:$0xff]  }
 0x303   :  { %5263 = vmatpush1.bf16.msra.mxu0 %v6627_v13  ;;  %5435 = vmatpush1.bf16.msra.mxu1 %v6630_v16  ;;  %v6705_v13 = vld [vmem:[#allocation9 + $0x340] ss:$16 sps:$4 sm:$0xff]   ;;  %v6708_v16 = vld [vmem:[#allocation9 + $0x348] ss:$16 sps:$4 sm:$0xff]  }
 0x304   :  { %5264 = vmatprep.subr.bf16.mxu0 %v6635_v17  ;;  %5436 = vmatprep.subr.bf16.mxu1 %v6638_v25  ;;  %v6713_v17 = vld [vmem:[#allocation9 + $0x364] ss:$16 sps:$4 sm:$0xff]   ;;  %v6716_v25 = vld [vmem:[#allocation9 + $0x36c] ss:$16 sps:$4 sm:$0xff]  }
 0x307   :  { %5265 = vmatpush1.bf16.msra.mxu0 %v6633_v18  ;;  %5437 = vmatpush1.bf16.msra.mxu1 %v6636_v19  ;;  %v6711_v18 = vld [vmem:[#allocation9 + $0x360] ss:$16 sps:$4 sm:$0xff]   ;;  %v6714_v19 = vld [vmem:[#allocation9 + $0x368] ss:$16 sps:$4 sm:$0xff]  }
 0x308   :  { %5266 = vmatprep.subr.bf16.mxu0 %v6641_v20  ;;  %5438 = vmatprep.subr.bf16.mxu1 %v6644_v21  ;;  %v6719_v20 = vld [vmem:[#allocation9 + $0x384] ss:$16 sps:$4 sm:$0xff]   ;;  %v6722_v21 = vld [vmem:[#allocation9 + $0x38c] ss:$16 sps:$4 sm:$0xff]  }
 0x30b   :  { %5267 = vmatpush1.bf16.msra.mxu0 %v6639_v39  ;;  %5439 = vmatpush1.bf16.msra.mxu1 %v6642_v22  ;;  %v6717_v39 = vld [vmem:[#allocation9 + $0x380] ss:$16 sps:$4 sm:$0xff]   ;;  %v6720_v22 = vld [vmem:[#allocation9 + $0x388] ss:$16 sps:$4 sm:$0xff]  }
 0x30c   :  { %5279 = vmatprep.subr.bf16.mxu0 %v6647_v23  ;;  %5451 = vmatprep.subr.bf16.mxu1 %v6650_v24  ;;  %v6725_v23 = vld [vmem:[#allocation9 + $0x3a4] ss:$16 sps:$4 sm:$0xff]   ;;  %v6728_v24 = vld [vmem:[#allocation9 + $0x3ac] ss:$16 sps:$4 sm:$0xff]  }
 0x30e   :  { %5269 = vmatmul.mubr.bf16.vlgmr.msra.gmra.mrb[16].mxu0 %v7294_v45  ;;  %5441 = vmatmul.mubr.bf16.vlgmr.msra.gmra.mrb[16].mxu1 %v7294_v45  ;;  %v6668_v45 = vld [vmem:[#allocation9 + $0x26c] ss:$16 sps:$4 sm:$0xff]  }
 0x30f   :  { %5280 = vmatpush1.bf16.msra.mxu0 %v6645_v26  ;;  %5311 = vmatprep.mubr.bf16.mxu0 %v7300_v50  ;;  %v6723_v26 = vld [vmem:[#allocation9 + $0x3a0] ss:$16 sps:$4 sm:$0xff]  }
 0x310   :  { %5452 = vmatpush1.bf16.msra.mxu1 %v6648_v27  ;;  %5483 = vmatprep.mubr.bf16.mxu1 %v7300_v50  ;;  %v6669_v50 = vld [vmem:[#allocation9 + $0x280] ss:$16 sps:$4 sm:$0xff]   ;;  %v6726_v27 = vld [vmem:[#allocation9 + $0x3a8] ss:$16 sps:$4 sm:$0xff]  }
 0x311   :  { %5281 = vmatprep.subr.bf16.mxu0 %v6653_v28  ;;  %5453 = vmatprep.subr.bf16.mxu1 %v6656_v29  ;;  %v6731_v28 = vld [vmem:[#allocation9 + $0x3c4] ss:$16 sps:$4 sm:$0xff]   ;;  %v6734_v29 = vld [vmem:[#allocation9 + $0x3cc] ss:$16 sps:$4 sm:$0xff]  }
 0x313   :  { %5282 = vmatpush1.bf16.msra.mxu0 %v6651_v31  ;;  %v6729_v31 = vld [vmem:[#allocation9 + $0x3c0] ss:$16 sps:$4 sm:$0xff]  }
 0x314   :  { %5454 = vmatpush1.bf16.msra.mxu1 %v6654_v32  ;;  %5283 = vmatprep.subr.bf16.mxu0 %v6659_v33  ;;  %v6732_v32 = vld [vmem:[#allocation9 + $0x3c8] ss:$16 sps:$4 sm:$0xff]   ;;  %v6737_v33 = vld [vmem:[#allocation9 + $0x3e4] ss:$16 sps:$4 sm:$0xff]  }
 0x315   :  { %5455 = vmatprep.subr.bf16.mxu1 %v6662_v34  ;;  %v6740_v34 = vld [vmem:[#allocation9 + $0x3ec] ss:$16 sps:$4 sm:$0xff]  }
 0x317   :  { %5284 = vmatpush1.bf16.msra.mxu0 %v6657_v35  ;;  %v6735_v35 = vld [vmem:[#allocation9 + $0x3e0] ss:$16 sps:$4 sm:$0xff]  }
 0x318   :  { %5456 = vmatpush1.bf16.msra.mxu1 %v6660_v36  ;;  %5285 = vmatprep.subr.bf16.mxu0 %v6665_v37  ;;  %v6738_v36 = vld [vmem:[#allocation9 + $0x3e8] ss:$16 sps:$4 sm:$0xff]   ;;  %v6743_v37 = vld [vmem:[#allocation9 + $0x404] ss:$16 sps:$4 sm:$0xff]  }
 0x319   :  { %5457 = vmatprep.subr.bf16.mxu1 %v6668_v45  ;;  %v6746_v45 = vld [vmem:[#allocation9 + $0x40c] ss:$16 sps:$4 sm:$0xff]  }
 0x31b   :  { %5286 = vmatpush1.bf16.msra.mxu0 %v6663_v38  ;;  %v6741_v38 = vld [vmem:[#allocation9 + $0x400] ss:$16 sps:$4 sm:$0xff]  }
 0x31c   :  { %5458 = vmatpush1.bf16.msra.mxu1 %v6666_v40  ;;  %5287 = vmatprep.subr.bf16.mxu0 %v6671_v41  ;;  %v6744_v40 = vld [vmem:[#allocation9 + $0x408] ss:$16 sps:$4 sm:$0xff]   ;;  %v6749_v41 = vld [vmem:[#allocation9 + $0x424] ss:$16 sps:$4 sm:$0xff]  }
 0x31d   :  { %5459 = vmatprep.subr.bf16.mxu1 %v6674_v42  ;;  %v6752_v42 = vld [vmem:[#allocation9 + $0x42c] ss:$16 sps:$4 sm:$0xff]  }
 0x31f   :  { %5288 = vmatpush1.bf16.msra.mxu0 %v6669_v50  ;;  %v6747_v50 = vld [vmem:[#allocation9 + $0x420] ss:$16 sps:$4 sm:$0xff]  }
 0x320   :  { %5460 = vmatpush1.bf16.msra.mxu1 %v6672_v43  ;;  %5289 = vmatprep.subr.bf16.mxu0 %v6677_v46  ;;  %v6750_v43 = vld [vmem:[#allocation9 + $0x428] ss:$16 sps:$4 sm:$0xff]   ;;  %v6755_v46 = vld [vmem:[#allocation9 + $0x444] ss:$16 sps:$4 sm:$0xff]  }
 0x321   :  { %5461 = vmatprep.subr.bf16.mxu1 %v6680_v51  ;;  %v6758_v51 = vld [vmem:[#allocation9 + $0x44c] ss:$16 sps:$4 sm:$0xff]  }
 0x323   :  { %5290 = vmatpush1.bf16.msra.mxu0 %v6675_v52  ;;  %v6753_v52 = vld [vmem:[#allocation9 + $0x440] ss:$16 sps:$4 sm:$0xff]  }
 0x324   :  { %5462 = vmatpush1.bf16.msra.mxu1 %v6678_v53  ;;  %5291 = vmatprep.subr.bf16.mxu0 %v6683_v54  ;;  %v6756_v53 = vld [vmem:[#allocation9 + $0x448] ss:$16 sps:$4 sm:$0xff]   ;;  %v6761_v54 = vld [vmem:[#allocation9 + $0x464] ss:$16 sps:$4 sm:$0xff]  }
 0x325   :  { %5463 = vmatprep.subr.bf16.mxu1 %v6686_v11  ;;  %v6759_v11 = vld [vmem:[#allocation9 + $0x460] ss:$16 sps:$4 sm:$0xff]  }
 0x327   :  { %5292 = vmatpush1.bf16.msra.mxu0 %v6681_v61  ;;  %v6762_v61 = vld [vmem:[#allocation9 + $0x468] ss:$16 sps:$4 sm:$0xff]  }
 0x328   :  { %5464 = vmatpush1.bf16.msra.mxu1 %v6684_v62  ;;  %5293 = vmatprep.subr.bf16.mxu0 %v6689_v63  ;;  %v6767_v62 = vld [vmem:[#allocation9 + $0x484] ss:$16 sps:$4 sm:$0xff]   ;;  %v6770_v63 = vld [vmem:[#allocation9 + $0x48c] ss:$16 sps:$4 sm:$0xff]  }
 0x329   :  { %5465 = vmatprep.subr.bf16.mxu1 %v6692_v0  ;;  %v6768_v0 = vld [vmem:[#allocation9 + $0x488] ss:$16 sps:$4 sm:$0xff]  }
 0x32b   :  { %5294 = vmatpush1.bf16.msra.mxu0 %v6687_v1  ;;  %v6773_v1 = vld [vmem:[#allocation9 + $0x4a4] ss:$16 sps:$4 sm:$0xff]  }
 0x32c   :  { %5466 = vmatpush1.bf16.msra.mxu1 %v6690_v2  ;;  %5295 = vmatprep.subr.bf16.mxu0 %v6695_v3  ;;  %v6776_v2 = vld [vmem:[#allocation9 + $0x4ac] ss:$16 sps:$4 sm:$0xff]   ;;  %v6771_v3 = vld [vmem:[#allocation9 + $0x4a0] ss:$16 sps:$4 sm:$0xff]  }
 0x32d   :  { %5467 = vmatprep.subr.bf16.mxu1 %v6698_v4  ;;  %v6774_v4 = vld [vmem:[#allocation9 + $0x4a8] ss:$16 sps:$4 sm:$0xff]  }
 0x32f   :  { %5296 = vmatpush1.bf16.msra.mxu0 %v6693_v5  ;;  %v6779_v5 = vld [vmem:[#allocation9 + $0x4c4] ss:$16 sps:$4 sm:$0xff]  }
 0x330   :  { %5468 = vmatpush1.bf16.msra.mxu1 %v6696_v44  ;;  %5297 = vmatprep.subr.bf16.mxu0 %v6701_v6  ;;  %v6782_v44 = vld [vmem:[#allocation9 + $0x4cc] ss:$16 sps:$4 sm:$0xff]   ;;  %v6777_v6 = vld [vmem:[#allocation9 + $0x4c0] ss:$16 sps:$4 sm:$0xff]  }
 0x331   :  { %5469 = vmatprep.subr.bf16.mxu1 %v6704_v8  ;;  %v6780_v8 = vld [vmem:[#allocation9 + $0x4c8] ss:$16 sps:$4 sm:$0xff]  }
 0x333   :  { %5298 = vmatpush1.bf16.msra.mxu0 %v6699_v15  ;;  %v6785_v15 = vld [vmem:[#allocation9 + $0x4e4] ss:$16 sps:$4 sm:$0xff]  }
 0x334   :  { %5470 = vmatpush1.bf16.msra.mxu1 %v6702_v9  ;;  %5299 = vmatprep.subr.bf16.mxu0 %v6707_v10  ;;  %v6788_v9 = vld [vmem:[#allocation9 + $0x4ec] ss:$16 sps:$4 sm:$0xff]   ;;  %v6783_v10 = vld [vmem:[#allocation9 + $0x4e0] ss:$16 sps:$4 sm:$0xff]  }
 0x335   :  { %5471 = vmatprep.subr.bf16.mxu1 %v6710_v48  ;;  %v6786_v48 = vld [vmem:[#allocation9 + $0x4e8] ss:$16 sps:$4 sm:$0xff]  }
 0x337   :  { %5300 = vmatpush1.bf16.msra.mxu0 %v6705_v13  ;;  %v6791_v13 = vld [vmem:[#allocation9 + $0x504] ss:$16 sps:$4 sm:$0xff]  }
 0x338   :  { %5472 = vmatpush1.bf16.msra.mxu1 %v6708_v16  ;;  %5301 = vmatprep.subr.bf16.mxu0 %v6713_v17  ;;  %v6794_v16 = vld [vmem:[#allocation9 + $0x50c] ss:$16 sps:$4 sm:$0xff]   ;;  %v6789_v17 = vld [vmem:[#allocation9 + $0x500] ss:$16 sps:$4 sm:$0xff]  }
 0x339   :  { %5473 = vmatprep.subr.bf16.mxu1 %v6716_v25  ;;  %v6792_v25 = vld [vmem:[#allocation9 + $0x508] ss:$16 sps:$4 sm:$0xff]  }
 0x33b   :  { %5302 = vmatpush1.bf16.msra.mxu0 %v6711_v18  ;;  %v6797_v18 = vld [vmem:[#allocation9 + $0x524] ss:$16 sps:$4 sm:$0xff]  }
 0x33c   :  { %5474 = vmatpush1.bf16.msra.mxu1 %v6714_v19  ;;  %5303 = vmatprep.subr.bf16.mxu0 %v6719_v20  ;;  %v6800_v19 = vld [vmem:[#allocation9 + $0x52c] ss:$16 sps:$4 sm:$0xff]   ;;  %v6795_v20 = vld [vmem:[#allocation9 + $0x520] ss:$16 sps:$4 sm:$0xff]  }
 0x33d   :  { %5475 = vmatprep.subr.bf16.mxu1 %v6722_v21  ;;  %v6798_v21 = vld [vmem:[#allocation9 + $0x528] ss:$16 sps:$4 sm:$0xff]  }
 0x33f   :  { %5304 = vmatpush1.bf16.msra.mxu0 %v6717_v39  ;;  %v6803_v39 = vld [vmem:[#allocation9 + $0x544] ss:$16 sps:$4 sm:$0xff]  }
 0x340   :  { %5476 = vmatpush1.bf16.msra.mxu1 %v6720_v22  ;;  %5305 = vmatprep.subr.bf16.mxu0 %v6725_v23  ;;  %v6806_v22 = vld [vmem:[#allocation9 + $0x54c] ss:$16 sps:$4 sm:$0xff]   ;;  %v6801_v23 = vld [vmem:[#allocation9 + $0x540] ss:$16 sps:$4 sm:$0xff]  }
 0x341   :  { %5477 = vmatprep.subr.bf16.mxu1 %v6728_v24  ;;  %v6804_v24 = vld [vmem:[#allocation9 + $0x548] ss:$16 sps:$4 sm:$0xff]  }
 0x343   :  { %5306 = vmatpush1.bf16.msra.mxu0 %v6723_v26  ;;  %v6809_v26 = vld [vmem:[#allocation9 + $0x564] ss:$16 sps:$4 sm:$0xff]  }
 0x344   :  { %5478 = vmatpush1.bf16.msra.mxu1 %v6726_v27  ;;  %5307 = vmatprep.subr.bf16.mxu0 %v6731_v28  ;;  %v6812_v27 = vld [vmem:[#allocation9 + $0x56c] ss:$16 sps:$4 sm:$0xff]   ;;  %v6807_v28 = vld [vmem:[#allocation9 + $0x560] ss:$16 sps:$4 sm:$0xff]  }
 0x345   :  { %5479 = vmatprep.subr.bf16.mxu1 %v6734_v29  ;;  %v6810_v29 = vld [vmem:[#allocation9 + $0x568] ss:$16 sps:$4 sm:$0xff]  }
 0x347   :  { %5308 = vmatpush1.bf16.msra.mxu0 %v6729_v31  ;;  %v6815_v31 = vld [vmem:[#allocation9 + $0x584] ss:$16 sps:$4 sm:$0xff]  }
 0x348   :  { %5480 = vmatpush1.bf16.msra.mxu1 %v6732_v32  ;;  %5309 = vmatprep.subr.bf16.mxu0 %v6737_v33  ;;  %v6818_v32 = vld [vmem:[#allocation9 + $0x58c] ss:$16 sps:$4 sm:$0xff]   ;;  %v6813_v33 = vld [vmem:[#allocation9 + $0x580] ss:$16 sps:$4 sm:$0xff]  }
 0x349   :  { %5481 = vmatprep.subr.bf16.mxu1 %v6740_v34  ;;  %v6816_v34 = vld [vmem:[#allocation9 + $0x588] ss:$16 sps:$4 sm:$0xff]  }
 0x34b   :  { %5310 = vmatpush1.bf16.msra.mxu0 %v6735_v35  ;;  %v6821_v35 = vld [vmem:[#allocation9 + $0x5a4] ss:$16 sps:$4 sm:$0xff]  }
 0x34c   :  { %5482 = vmatpush1.bf16.msra.mxu1 %v6738_v36  ;;  %5322 = vmatprep.subr.bf16.mxu0 %v6743_v37  ;;  %v6824_v36 = vld [vmem:[#allocation9 + $0x5ac] ss:$16 sps:$4 sm:$0xff]   ;;  %v6819_v37 = vld [vmem:[#allocation9 + $0x5a0] ss:$16 sps:$4 sm:$0xff]  }
 0x34d   :  { %5494 = vmatprep.subr.bf16.mxu1 %v6746_v45  ;;  %v6822_v45 = vld [vmem:[#allocation9 + $0x5a8] ss:$16 sps:$4 sm:$0xff]  }
 0x34e   :  { %5312 = vmatmul.mubr.bf16.vlgmr.msra.gmra.mrb[16].mxu0 %v7296_v47 }
 0x34f   :  { %5484 = vmatmul.mubr.bf16.vlgmr.msra.gmra.mrb[16].mxu1 %v7296_v47  ;;  %5323 = vmatpush1.bf16.msra.mxu0 %v6741_v38  ;;  %v6764_v47 = vld [vmem:[#allocation9 + $0x46c] ss:$16 sps:$4 sm:$0xff]   ;;  %v6827_v38 = vld [vmem:[#allocation9 + $0x5c4] ss:$16 sps:$4 sm:$0xff]  }
 0x350   :  { %5354 = vmatprep.mubr.bf16.mxu0 %v7318_v59  ;;  %5495 = vmatpush1.bf16.msra.mxu1 %v6744_v40  ;;  %v6830_v40 = vld [vmem:[#allocation9 + $0x5cc] ss:$16 sps:$4 sm:$0xff]  }
 0x351   :  { %5526 = vmatprep.mubr.bf16.mxu1 %v7318_v59  ;;  %5324 = vmatprep.subr.bf16.mxu0 %v6749_v41  ;;  %v6765_v59 = vld [vmem:[#allocation9 + $0x480] ss:$16 sps:$4 sm:$0xff]  }
 0x352   :  { %5496 = vmatprep.subr.bf16.mxu1 %v6752_v42  ;;  %v6825_v41 = vld [vmem:[#allocation9 + $0x5c0] ss:$16 sps:$4 sm:$0xff]   ;;  %v6828_v42 = vld [vmem:[#allocation9 + $0x5c8] ss:$16 sps:$4 sm:$0xff]  }
 0x353   :  { %5325 = vmatpush1.bf16.msra.mxu0 %v6747_v50  ;;  %v6833_v50 = vld [vmem:[#allocation9 + $0x5e4] ss:$16 sps:$4 sm:$0xff]  }
 0x354   :  { %5497 = vmatpush1.bf16.msra.mxu1 %v6750_v43  ;;  %5326 = vmatprep.subr.bf16.mxu0 %v6755_v46  ;;  %v6836_v43 = vld [vmem:[#allocation9 + $0x5ec] ss:$16 sps:$4 sm:$0xff]   ;;  %v6831_v46 = vld [vmem:[#allocation9 + $0x5e0] ss:$16 sps:$4 sm:$0xff]  }
 0x355   :  { %5498 = vmatprep.subr.bf16.mxu1 %v6758_v51  ;;  %v6834_v51 = vld [vmem:[#allocation9 + $0x5e8] ss:$16 sps:$4 sm:$0xff]  }
 0x357   :  { %5327 = vmatpush1.bf16.msra.mxu0 %v6753_v52  ;;  %v6839_v52 = vld [vmem:[#allocation9 + $0x604] ss:$16 sps:$4 sm:$0xff]  }
 0x358   :  { %5499 = vmatpush1.bf16.msra.mxu1 %v6756_v53  ;;  %5328 = vmatprep.subr.bf16.mxu0 %v6761_v54  ;;  %v6842_v53 = vld [vmem:[#allocation9 + $0x60c] ss:$16 sps:$4 sm:$0xff]   ;;  %v6837_v54 = vld [vmem:[#allocation9 + $0x600] ss:$16 sps:$4 sm:$0xff]  }
 0x359   :  { %5500 = vmatprep.subr.bf16.mxu1 %v6764_v47  ;;  %v6840_v47 = vld [vmem:[#allocation9 + $0x608] ss:$16 sps:$4 sm:$0xff]  }
 0x35b   :  { %5329 = vmatpush1.bf16.msra.mxu0 %v6759_v11  ;;  %v6845_v11 = vld [vmem:[#allocation9 + $0x624] ss:$16 sps:$4 sm:$0xff]  }
 0x35c   :  { %5501 = vmatpush1.bf16.msra.mxu1 %v6762_v61  ;;  %5330 = vmatprep.subr.bf16.mxu0 %v6767_v62  ;;  %v6848_v61 = vld [vmem:[#allocation9 + $0x62c] ss:$16 sps:$4 sm:$0xff]   ;;  %v6843_v62 = vld [vmem:[#allocation9 + $0x620] ss:$16 sps:$4 sm:$0xff]  }
 0x35d   :  { %5502 = vmatprep.subr.bf16.mxu1 %v6770_v63  ;;  %v6846_v63 = vld [vmem:[#allocation9 + $0x628] ss:$16 sps:$4 sm:$0xff]  }
 0x35f   :  { %5331 = vmatpush1.bf16.msra.mxu0 %v6765_v59  ;;  %v6851_v59 = vld [vmem:[#allocation9 + $0x644] ss:$16 sps:$4 sm:$0xff]  }
 0x360   :  { %5503 = vmatpush1.bf16.msra.mxu1 %v6768_v0  ;;  %5332 = vmatprep.subr.bf16.mxu0 %v6773_v1  ;;  %v6854_v0 = vld [vmem:[#allocation9 + $0x64c] ss:$16 sps:$4 sm:$0xff]   ;;  %v6849_v1 = vld [vmem:[#allocation9 + $0x640] ss:$16 sps:$4 sm:$0xff]  }
 0x361   :  { %5504 = vmatprep.subr.bf16.mxu1 %v6776_v2  ;;  %v6852_v2 = vld [vmem:[#allocation9 + $0x648] ss:$16 sps:$4 sm:$0xff]  }
 0x363   :  { %5333 = vmatpush1.bf16.msra.mxu0 %v6771_v3  ;;  %v6857_v3 = vld [vmem:[#allocation9 + $0x664] ss:$16 sps:$4 sm:$0xff]  }
 0x364   :  { %5505 = vmatpush1.bf16.msra.mxu1 %v6774_v4  ;;  %5334 = vmatprep.subr.bf16.mxu0 %v6779_v5  ;;  %v6855_v4 = vld [vmem:[#allocation9 + $0x660] ss:$16 sps:$4 sm:$0xff]   ;;  %v6858_v5 = vld [vmem:[#allocation9 + $0x668] ss:$16 sps:$4 sm:$0xff]  }
 0x365   :  { %5506 = vmatprep.subr.bf16.mxu1 %v6782_v44  ;;  %v6863_v44 = vld [vmem:[#allocation9 + $0x684] ss:$16 sps:$4 sm:$0xff]  }
 0x367   :  { %5335 = vmatpush1.bf16.msra.mxu0 %v6777_v6  ;;  %v6866_v6 = vld [vmem:[#allocation9 + $0x68c] ss:$16 sps:$4 sm:$0xff]  }
 0x368   :  { %5507 = vmatpush1.bf16.msra.mxu1 %v6780_v8  ;;  %5336 = vmatprep.subr.bf16.mxu0 %v6785_v15  ;;  %v6864_v8 = vld [vmem:[#allocation9 + $0x688] ss:$16 sps:$4 sm:$0xff]   ;;  %v6869_v15 = vld [vmem:[#allocation9 + $0x6a4] ss:$16 sps:$4 sm:$0xff]  }
 0x369   :  { %5508 = vmatprep.subr.bf16.mxu1 %v6788_v9  ;;  %v6872_v9 = vld [vmem:[#allocation9 + $0x6ac] ss:$16 sps:$4 sm:$0xff]  }
 0x36b   :  { %5337 = vmatpush1.bf16.msra.mxu0 %v6783_v10  ;;  %v6867_v10 = vld [vmem:[#allocation9 + $0x6a0] ss:$16 sps:$4 sm:$0xff]  }
 0x36c   :  { %5509 = vmatpush1.bf16.msra.mxu1 %v6786_v48  ;;  %5338 = vmatprep.subr.bf16.mxu0 %v6791_v13  ;;  %v6870_v48 = vld [vmem:[#allocation9 + $0x6a8] ss:$16 sps:$4 sm:$0xff]   ;;  %v6875_v13 = vld [vmem:[#allocation9 + $0x6c4] ss:$16 sps:$4 sm:$0xff]  }
 0x36d   :  { %5510 = vmatprep.subr.bf16.mxu1 %v6794_v16 }
 0x36f   :  { %5339 = vmatpush1.bf16.msra.mxu0 %v6789_v17  ;;  %v6878_v17 = vld [vmem:[#allocation9 + $0x6cc] ss:$16 sps:$4 sm:$0xff]  }
 0x370   :  { %5511 = vmatpush1.bf16.msra.mxu1 %v6792_v25  ;;  %5340 = vmatprep.subr.bf16.mxu0 %v6797_v18 }
 0x371   :  { %5512 = vmatprep.subr.bf16.mxu1 %v6800_v19 }
 0x373   :  { %5341 = vmatpush1.bf16.msra.mxu0 %v6795_v20 }
 0x374   :  { %5513 = vmatpush1.bf16.msra.mxu1 %v6798_v21  ;;  %5342 = vmatprep.subr.bf16.mxu0 %v6803_v39  ;;  %v6873_v39 = vld [vmem:[#allocation9 + $0x6c0] ss:$16 sps:$4 sm:$0xff]  }
 0x375   :  { %5514 = vmatprep.subr.bf16.mxu1 %v6806_v22 }
 0x377   :  { %5343 = vmatpush1.bf16.msra.mxu0 %v6801_v23 }
 0x378   :  { %5515 = vmatpush1.bf16.msra.mxu1 %v6804_v24  ;;  %5344 = vmatprep.subr.bf16.mxu0 %v6809_v26  ;;  %v6876_v26 = vld [vmem:[#allocation9 + $0x6c8] ss:$16 sps:$4 sm:$0xff]  }
 0x379   :  { %5516 = vmatprep.subr.bf16.mxu1 %v6812_v27  ;;  %v6881_v27 = vld [vmem:[#allocation9 + $0x6e4] ss:$16 sps:$4 sm:$0xff]  }
 0x37b   :  { %5345 = vmatpush1.bf16.msra.mxu0 %v6807_v28 }
 0x37c   :  { %5517 = vmatpush1.bf16.msra.mxu1 %v6810_v29  ;;  %5346 = vmatprep.subr.bf16.mxu0 %v6815_v31 }
 0x37d   :  { %5518 = vmatprep.subr.bf16.mxu1 %v6818_v32  ;;  %v6884_v32 = vld [vmem:[#allocation9 + $0x6ec] ss:$16 sps:$4 sm:$0xff]  }
 0x37f   :  { %5347 = vmatpush1.bf16.msra.mxu0 %v6813_v33 }
 0x380   :  { %5519 = vmatpush1.bf16.msra.mxu1 %v6816_v34  ;;  %5348 = vmatprep.subr.bf16.mxu0 %v6821_v35 }
 0x381   :  { %5520 = vmatprep.subr.bf16.mxu1 %v6824_v36  ;;  %v6879_v36 = vld [vmem:[#allocation9 + $0x6e0] ss:$16 sps:$4 sm:$0xff]  }
 0x383   :  { %5349 = vmatpush1.bf16.msra.mxu0 %v6819_v37  ;;  %v6882_v37 = vld [vmem:[#allocation9 + $0x6e8] ss:$16 sps:$4 sm:$0xff]  }
 0x384   :  { %5521 = vmatpush1.bf16.msra.mxu1 %v6822_v45  ;;  %5350 = vmatprep.subr.bf16.mxu0 %v6827_v38  ;;  %v6887_v45 = vld [vmem:[#allocation9 + $0x704] ss:$16 sps:$4 sm:$0xff]  }
 0x385   :  { %5522 = vmatprep.subr.bf16.mxu1 %v6830_v40  ;;  %v6885_v40 = vld [vmem:[#allocation9 + $0x700] ss:$16 sps:$4 sm:$0xff]  }
 0x387   :  { %5351 = vmatpush1.bf16.msra.mxu0 %v6825_v41  ;;  %v6893_v41 = vld [vmem:[#allocation9 + $0x724] ss:$16 sps:$4 sm:$0xff]  }
 0x388   :  { %5523 = vmatpush1.bf16.msra.mxu1 %v6828_v42  ;;  %5352 = vmatprep.subr.bf16.mxu0 %v6833_v50  ;;  %v6896_v42 = vld [vmem:[#allocation9 + $0x72c] ss:$16 sps:$4 sm:$0xff]   ;;  %v6891_v50 = vld [vmem:[#allocation9 + $0x720] ss:$16 sps:$4 sm:$0xff]  }
 0x389   :  { %5524 = vmatprep.subr.bf16.mxu1 %v6836_v43  ;;  %v6894_v43 = vld [vmem:[#allocation9 + $0x728] ss:$16 sps:$4 sm:$0xff]  }
 0x38b   :  { %5353 = vmatpush1.bf16.msra.mxu0 %v6831_v46  ;;  %v6899_v46 = vld [vmem:[#allocation9 + $0x744] ss:$16 sps:$4 sm:$0xff]  }
 0x38c   :  { %5525 = vmatpush1.bf16.msra.mxu1 %v6834_v51  ;;  %5365 = vmatprep.subr.bf16.mxu0 %v6839_v52  ;;  %v6902_v51 = vld [vmem:[#allocation9 + $0x74c] ss:$16 sps:$4 sm:$0xff]   ;;  %v6897_v52 = vld [vmem:[#allocation9 + $0x740] ss:$16 sps:$4 sm:$0xff]  }
 0x38d   :  { %5537 = vmatprep.subr.bf16.mxu1 %v6842_v53  ;;  %v6900_v53 = vld [vmem:[#allocation9 + $0x748] ss:$16 sps:$4 sm:$0xff]  }
 0x38e   :  { %5355 = vmatmul.mubr.bf16.vlgmr.msra.gmra.mrb[16].mxu0 %v7314_v55 }
 0x38f   :  { %5527 = vmatmul.mubr.bf16.vlgmr.msra.gmra.mrb[16].mxu1 %v7314_v55  ;;  %5366 = vmatpush1.bf16.msra.mxu0 %v6837_v54  ;;  %v6860_v55 = vld [vmem:[#allocation9 + $0x66c] ss:$16 sps:$4 sm:$0xff]   ;;  %v6905_v54 = vld [vmem:[#allocation9 + $0x764] ss:$16 sps:$4 sm:$0xff]  }
 0x390   :  { %5397 = vmatprep.mubr.bf16.mxu0 %v7320_v60  ;;  %5538 = vmatpush1.bf16.msra.mxu1 %v6840_v47  ;;  %v6908_v47 = vld [vmem:[#allocation9 + $0x76c] ss:$16 sps:$4 sm:$0xff]  }
 0x391   :  { %5569 = vmatprep.mubr.bf16.mxu1 %v7320_v60  ;;  %5367 = vmatprep.subr.bf16.mxu0 %v6845_v11  ;;  %v6861_v60 = vld [vmem:[#allocation9 + $0x680] ss:$16 sps:$4 sm:$0xff]  }
 0x392   :  { %5539 = vmatprep.subr.bf16.mxu1 %v6848_v61  ;;  %v6903_v11 = vld [vmem:[#allocation9 + $0x760] ss:$16 sps:$4 sm:$0xff]   ;;  %v6906_v61 = vld [vmem:[#allocation9 + $0x768] ss:$16 sps:$4 sm:$0xff]  }
 0x393   :  { %5368 = vmatpush1.bf16.msra.mxu0 %v6843_v62  ;;  %v6911_v62 = vld [vmem:[#allocation9 + $0x784] ss:$16 sps:$4 sm:$0xff]  }
 0x394   :  { %5540 = vmatpush1.bf16.msra.mxu1 %v6846_v63  ;;  %5369 = vmatprep.subr.bf16.mxu0 %v6851_v59  ;;  %v6914_v63 = vld [vmem:[#allocation9 + $0x78c] ss:$16 sps:$4 sm:$0xff]   ;;  %v6909_v59 = vld [vmem:[#allocation9 + $0x780] ss:$16 sps:$4 sm:$0xff]  }
 0x395   :  { %5541 = vmatprep.subr.bf16.mxu1 %v6854_v0  ;;  %v6912_v0 = vld [vmem:[#allocation9 + $0x788] ss:$16 sps:$4 sm:$0xff]  }
 0x397   :  { %5370 = vmatpush1.bf16.msra.mxu0 %v6849_v1  ;;  %v6917_v1 = vld [vmem:[#allocation9 + $0x7a4] ss:$16 sps:$4 sm:$0xff]  }
 0x398   :  { %5542 = vmatpush1.bf16.msra.mxu1 %v6852_v2  ;;  %5371 = vmatprep.subr.bf16.mxu0 %v6857_v3  ;;  %v6920_v2 = vld [vmem:[#allocation9 + $0x7ac] ss:$16 sps:$4 sm:$0xff]   ;;  %v6915_v3 = vld [vmem:[#allocation9 + $0x7a0] ss:$16 sps:$4 sm:$0xff]  }
 0x399   :  { %5543 = vmatprep.subr.bf16.mxu1 %v6860_v55  ;;  %v6918_v55 = vld [vmem:[#allocation9 + $0x7a8] ss:$16 sps:$4 sm:$0xff]  }
 0x39b   :  { %5372 = vmatpush1.bf16.msra.mxu0 %v6855_v4  ;;  %v6923_v4 = vld [vmem:[#allocation9 + $0x7c4] ss:$16 sps:$4 sm:$0xff]  }
 0x39c   :  { %5544 = vmatpush1.bf16.msra.mxu1 %v6858_v5  ;;  %5373 = vmatprep.subr.bf16.mxu0 %v6863_v44  ;;  %v6926_v5 = vld [vmem:[#allocation9 + $0x7cc] ss:$16 sps:$4 sm:$0xff]   ;;  %v6921_v44 = vld [vmem:[#allocation9 + $0x7c0] ss:$16 sps:$4 sm:$0xff]  }
 0x39d   :  { %5545 = vmatprep.subr.bf16.mxu1 %v6866_v6  ;;  %v6924_v6 = vld [vmem:[#allocation9 + $0x7c8] ss:$16 sps:$4 sm:$0xff]  }
 0x39f   :  { %5374 = vmatpush1.bf16.msra.mxu0 %v6861_v60  ;;  %v6929_v60 = vld [vmem:[#allocation9 + $0x7e4] ss:$16 sps:$4 sm:$0xff]  }
 0x3a0   :  { %5546 = vmatpush1.bf16.msra.mxu1 %v6864_v8  ;;  %5375 = vmatprep.subr.bf16.mxu0 %v6869_v15  ;;  %v6932_v8 = vld [vmem:[#allocation9 + $0x7ec] ss:$16 sps:$4 sm:$0xff]   ;;  %v6927_v15 = vld [vmem:[#allocation9 + $0x7e0] ss:$16 sps:$4 sm:$0xff]  }
 0x3a1   :  { %v6365_v16 = vpop.f32.mrb[12].mxu0  ;;  %5547 = vmatprep.subr.bf16.mxu1 %v6872_v9  ;;  %v6387_v25 = vpop.f32.mrb[12].mxu1  ;;  %v6930_v9 = vld [vmem:[#allocation9 + $0x7e8] ss:$16 sps:$4 sm:$0xff]  }
 0x3a2   :  { %v6366_v18 = vpop.f32.mrb[13].mxu0  ;;  %v6388_v20 = vpop.f32.mrb[13].mxu1 }
 0x3a3   :  { %v6367_v19 = vadd.f32 %v6366_v18, %v6365_v16  ;;  %5376 = vmatpush1.bf16.msra.mxu0 %v6867_v10  ;;  %v6368_v21 = vpop.f32.mrb[14].mxu0  ;;  %v6389_v22 = vadd.f32 %v6388_v20, %v6387_v25  ;;  %v6390_v23 = vpop.f32.mrb[14].mxu1  ;;  %v3934_v10 = vld [vmem:[#allocation10] sm:$0xf] }
 0x3a4   :  { %5548 = vmatpush1.bf16.msra.mxu1 %v6870_v48  ;;  %v6369_v24 = vpop.f32.mrb[15].mxu0  ;;  %5377 = vmatprep.subr.bf16.mxu0 %v6875_v13  ;;  %v6391_v31 = vpop.f32.mrb[15].mxu1  ;;  %v3939_v48 = vrot.slane %v3934_v10, %v511_v58  ;;  %v3947_v13 = vrot.slane %v3934_v10, %v519_v12  ;;  %v3943_v16 = vrot.slane %v3934_v10, %v515_v30 }
 0x3a5   :  { %v3629_v28 = vadd.f32 %v6367_v19, %v7328_v49  ;;  %v6370_v29 = vadd.f32 %v6369_v24, %v6368_v21  ;;  %5549 = vmatprep.subr.bf16.mxu1 %v6878_v17  ;;  %v6392_v33 = vadd.f32 %v6391_v31, %v6390_v23  ;;  %v6890_v49 = vld [vmem:[#allocation9 + $0x70c] ss:$16 sps:$4 sm:$0xff]   ;;  %v3951_v17 = vrot.slane %v3934_v10, %v523_v14 }
 0x3a7   :  { %v3670_v34 = vadd.f32 %v6389_v22, %v3629_v28  ;;  %v3632_v35 = vadd.f32 %v6370_v29, %v7330_v56  ;;  %5378 = vmatpush1.bf16.msra.mxu0 %v6873_v39  ;;  %v6888_v56 = vld [vmem:[#allocation9 + $0x708] ss:$16 sps:$4 sm:$0xff]  }
 0x3a8   :  { %5550 = vmatpush1.bf16.msra.mxu1 %v6876_v26  ;;  %5379 = vmatprep.subr.bf16.mxu0 %v6881_v27 }
 0x3a9   :  { %3676 = vst [vmem:[%s7393_s7] sm:$0xff] %v3670_v34  ;;  %v3673_v38 = vadd.f32 %v6392_v33, %v3632_v35  ;;  %5551 = vmatprep.subr.bf16.mxu1 %v6884_v32 }
 0x3ab   :  { %3677 = vst [vmem:[%s7393_s7 + $0x8] sm:$0xff] %v3673_v38  ;;  %5380 = vmatpush1.bf16.msra.mxu0 %v6879_v36 }
 0x3ac   :  { %5552 = vmatpush1.bf16.msra.mxu1 %v6882_v37  ;;  %5381 = vmatprep.subr.bf16.mxu0 %v6887_v45 }
 0x3ad   :  { %5553 = vmatprep.subr.bf16.mxu1 %v6890_v49 }
 0x3af   :  { %5382 = vmatpush1.bf16.msra.mxu0 %v6885_v40 }
 0x3b0   :  { %5554 = vmatpush1.bf16.msra.mxu1 %v6888_v56  ;;  %5383 = vmatprep.subr.bf16.mxu0 %v6893_v41 }
 0x3b1   :  { %5555 = vmatprep.subr.bf16.mxu1 %v6896_v42 }
 0x3b3   :  { %5384 = vmatpush1.bf16.msra.mxu0 %v6891_v50 }
 0x3b4   :  { %5556 = vmatpush1.bf16.msra.mxu1 %v6894_v43  ;;  %5385 = vmatprep.subr.bf16.mxu0 %v6899_v46 }
 0x3b5   :  { %5557 = vmatprep.subr.bf16.mxu1 %v6902_v51 }
 0x3b7   :  { %5386 = vmatpush1.bf16.msra.mxu0 %v6897_v52 }
 0x3b8   :  { %5558 = vmatpush1.bf16.msra.mxu1 %v6900_v53  ;;  %5387 = vmatprep.subr.bf16.mxu0 %v6905_v54 }
 0x3b9   :  { %5559 = vmatprep.subr.bf16.mxu1 %v6908_v47 }
 0x3bb   :  { %5388 = vmatpush1.bf16.msra.mxu0 %v6903_v11 }
 0x3bc   :  { %5560 = vmatpush1.bf16.msra.mxu1 %v6906_v61  ;;  %5389 = vmatprep.subr.bf16.mxu0 %v6911_v62 }
 0x3bd   :  { %5561 = vmatprep.subr.bf16.mxu1 %v6914_v63 }
 0x3bf   :  { %5390 = vmatpush1.bf16.msra.mxu0 %v6909_v59 }
 0x3c0   :  { %5562 = vmatpush1.bf16.msra.mxu1 %v6912_v0  ;;  %5391 = vmatprep.subr.bf16.mxu0 %v6917_v1 }
 0x3c1   :  { %5563 = vmatprep.subr.bf16.mxu1 %v6920_v2 }
 0x3c3   :  { %5392 = vmatpush1.bf16.msra.mxu0 %v6915_v3 }
 0x3c4   :  { %5564 = vmatpush1.bf16.msra.mxu1 %v6918_v55  ;;  %5393 = vmatprep.subr.bf16.mxu0 %v6923_v4 }
 0x3c5   :  { %5565 = vmatprep.subr.bf16.mxu1 %v6926_v5 }
 0x3c7   :  { %5394 = vmatpush1.bf16.msra.mxu0 %v6921_v44 }
 0x3c8   :  { %5566 = vmatpush1.bf16.msra.mxu1 %v6924_v6  ;;  %5395 = vmatprep.subr.bf16.mxu0 %v6929_v60 }
 0x3c9   :  { %5567 = vmatprep.subr.bf16.mxu1 %v6932_v8 }
 0x3cb   :  { %5396 = vmatpush1.bf16.msra.mxu0 %v6927_v15 }
 0x3cc   :  { %5568 = vmatpush1.bf16.msra.mxu1 %v6930_v9 }
 0x3ce   :  { %5398 = vmatmul.mubr.bf16.vlgmr.msra.gmra.mrb[16].mxu0 %v7316_v57 }
 0x3cf   :  { %5570 = vmatmul.mubr.bf16.vlgmr.msra.gmra.mrb[16].mxu1 %v7316_v57 }
 0x4a1   :  { %v5399_v25 = vpop.f32.mrb[16].mxu0 }
 0x4a2   :  { %v6409_v18 = vadd.f32 %v5399_v25, %v3939_v48  ;;  %v5571_v19 = vpop.f32.mrb[16].mxu1  ;;  %v5401_v20 = vpop.f32.mrb[17].mxu0 }
 0x4a3   :  { %v6413_v21 = vadd.f32 %v5571_v19, %v3947_v13  ;;  %v6410_v39 = vadd.f32 %v5401_v20, %v3943_v16  ;;  %v5573_v57 = vpop.f32.mrb[17].mxu1  ;;  %v5403_v22 = vpop.f32.mrb[18].mxu0 }
 0x4a4   :  { %5580 = vst [vmem:[%s7394_s8] sm:$0xff] %v6409_v18  ;;  %v6414_v58 = vadd.f32 %v5573_v57, %v3951_v17  ;;  %v6411_v12 = vadd.f32 %v5403_v22, %v3939_v48  ;;  %v5575_v23 = vpop.f32.mrb[18].mxu1  ;;  %v5405_v24 = vpop.f32.mrb[19].mxu0 }
 0x4a5   :  { %5582 = vst [vmem:[%s7394_s8 + $0x10] sm:$0xff] %v6413_v21  ;;  %5581 = vst [vmem:[%s7394_s8 + $0x8] sm:$0xff] %v6410_v39  ;;  %v6415_v7 = vadd.f32 %v5575_v23, %v3947_v13  ;;  %v6412_v30 = vadd.f32 %v5405_v24, %v3943_v16  ;;  %v5577_v14 = vpop.f32.mrb[19].mxu1 }
 0x4a6   :  { %5583 = vst [vmem:[%s7394_s8 + $0x18] sm:$0xff] %v6414_v58  ;;  %5584 = vst [vmem:[%s7394_s8 + $0x20] sm:$0xff] %v6411_v12  ;;  %v6416_v26 = vadd.f32 %v5577_v14, %v3951_v17 }
 0x4a7   :  { %5586 = vst [vmem:[%s7394_s8 + $0x30] sm:$0xff] %v6415_v7  ;;  %5585 = vst [vmem:[%s7394_s8 + $0x28] sm:$0xff] %v6412_v30 }
 0x4a8   :  { %5587 = vst [vmem:[%s7394_s8 + $0x38] sm:$0xff] %v6416_v26 }
 0x4a9   :  { %5596 = vsyncpa [#allocation3], 1 }
 0x4aa   :  { %5597 = vsyncpa [#allocation5], 1 }
 0x4ab   :  { %5598 = vsyncpa [#allocation8], 1 }
 0x4ac   :  { %5599 = vsyncpa [#allocation11], 1 }

</bundles_post_ra>
